<compile_context>
chip_gen: v6e
topology: v6e:2x2x1
jax: 0.10.0
libtpu: 0.0.40
codegen_flags: <defaults>
</compile_context>

<pallas_src>
import functools
import math

import jax
import jax.numpy as jnp
from jax.experimental import pallas as pl
from jax.experimental.pallas import tpu as pltpu


def _sattention_kernel(x_ref, wqkv_ref, ln_ref, w1_ref, bf1_ref, w2_ref, bf2_ref,
                       o_ref, att_ref, *, nhead, eps):
    # x_ref block: (S, bt, D) float32 slab of the native (S, B, D) input.
    S, bt, D = x_ref.shape

    gamma1 = ln_ref[0:1, :]
    beta1 = ln_ref[1:2, :]
    gamma2 = ln_ref[2:3, :]
    beta2 = ln_ref[3:4, :]

    # Gather the bt batch columns into batch-major merged rows (bt*S, D).
    # Each x_ref[:, b, :] is a (strided) VMEM read; no HBM transpose anywhere.
    x2 = jnp.concatenate([x_ref[:, b, :] for b in range(bt)], axis=0)   # (R, D) f32

    # --- LayerNorm 1 (f32) ---
    mu = jnp.mean(x2, axis=-1, keepdims=True)
    var = jnp.mean(jnp.square(x2 - mu), axis=-1, keepdims=True)
    xn = (x2 - mu) * jax.lax.rsqrt(var + eps) * gamma1 + beta1          # (R, D) f32

    # --- fused Q/K/V projection over all R = bt*S rows (one MXU pass).
    #     1/temperature is pre-folded into the Q columns of wqkv. ---
    qkv = jnp.dot(xn.astype(jnp.bfloat16), wqkv_ref[...],
                  preferred_element_type=jnp.float32)                   # (R, 3D) f32
    qkv_b = qkv.astype(jnp.bfloat16)            # single hoisted cast for all heads

    # --- per-batch / per-head attention (scores stay per batch element) ---
    hd = D // nhead
    for b in range(bt):
        r0 = b * S
        for h in range(nhead):
            lo = h * hd
            hi = D if h == nhead - 1 else (h + 1) * hd                  # last head: remainder
            qh = qkv_b[r0:r0 + S, 0 * D + lo:0 * D + hi]                # (S, hd) bf16
            kh = qkv_b[r0:r0 + S, 1 * D + lo:1 * D + hi]
            vh = qkv_b[r0:r0 + S, 2 * D + lo:2 * D + hi]
            # q @ k^T without an explicit transpose (contract the head dims).
            s = jax.lax.dot_general(qh, kh, (((1,), (1,)), ((), ())),
                                    preferred_element_type=jnp.float32)  # (S, S) f32
            s = s - jnp.max(s, axis=-1, keepdims=True)
            p = jnp.exp(s)
            p = p * pl.reciprocal(jnp.sum(p, axis=-1, keepdims=True), approx=True)
            # TODO(synk): attn_dropout is identity in eval mode; not emitted.
            att_ref[r0:r0 + S, lo:hi] = jnp.dot(
                p.astype(jnp.bfloat16), vh, preferred_element_type=jnp.float32)

    # --- residual + LayerNorm 2 (f32) ---
    xt = xn + att_ref[...]
    mu2 = jnp.mean(xt, axis=-1, keepdims=True)
    var2 = jnp.mean(jnp.square(xt - mu2), axis=-1, keepdims=True)
    xt = (xt - mu2) * jax.lax.rsqrt(var2 + eps) * gamma2 + beta2        # (R, D) f32

    # --- FFN over all R rows: Linear -> ReLU -> Linear (bf16 MXU, f32 accum) ---
    h1 = jnp.maximum(
        jnp.dot(xt.astype(jnp.bfloat16), w1_ref[...],
                preferred_element_type=jnp.float32) + bf1_ref[...], 0.0)
    h2 = (jnp.dot(h1.astype(jnp.bfloat16), w2_ref[...],
                  preferred_element_type=jnp.float32) + bf2_ref[...])
    out = xt + h2                                                       # (R, D) f32

    # Scatter merged rows back into the (S, bt, D) output block.
    for b in range(bt):
        o_ref[:, b, :] = out[b * S:(b + 1) * S, :].astype(o_ref.dtype)


def sattention_forward(x, params, *, nhead, eps=1e-5):
    """x: (S, B, D) float32, matching the PyTorch module's input convention."""
    S, B, D = x.shape
    inv_temp = 1.0 / math.sqrt(D / nhead)

    # Pack parameters (pre-transposed so the kernel computes y = x @ W^T).
    # Q/K/V fused along the output dim; 1/temperature folded into the Q columns.
    wqkv = jnp.concatenate(
        [params["wq"].T * inv_temp, params["wk"].T, params["wv"].T],
        axis=1).astype(jnp.bfloat16)                                     # (D, 3D)
    ln = jnp.stack([params["g1"], params["b1"],
                    params["g2"], params["b2"]]).astype(jnp.float32)     # (4, D)
    w1 = params["w1"].T.astype(jnp.bfloat16)                             # (D, Dff)
    w2 = params["w2"].T.astype(jnp.bfloat16)                             # (Dff, D)
    bf1 = params["bf1"].astype(jnp.float32)[None, :]                     # (1, Dff)
    bf2 = params["bf2"].astype(jnp.float32)[None, :]                     # (1, D)
    Dff = w1.shape[1]

    # Batches per grid step: the block's sublane dim (the B axis) must be a
    # multiple of 8 or cover the whole batch.  Prefer 8 (keeps >=2 grid steps
    # for megacore sharding on v7x when B >= 16), else take the full batch.
    bt = 8 if B % 8 == 0 else B
    # TODO(synk): shrink bt / tile S (flash-style) when S*bt*D grows so the
    #             per-step intermediates fit the per-generation VMEM budget.

    # Per-generation VMEM limit (review item): ~75% of physical VMEM.
    try:
        vmem_cap = pltpu.get_tpu_info().vmem_capacity_bytes
    except Exception:
        vmem_cap = 64 * 1024 * 1024
    vmem_limit = min(vmem_cap * 3 // 4, 100 * 1024 * 1024)

    kernel = functools.partial(_sattention_kernel, nhead=nhead, eps=eps)

    def run(single_buffer_weights):
        # Grid-invariant weights can be single-buffered to halve their VMEM
        # footprint (important on v7x's 64 MiB VMEM, harmless on v5e/v6e).
        wmode = ({"pipeline_mode": pl.Buffered(1)} if single_buffer_weights else {})
        grid_spec = pltpu.PrefetchScalarGridSpec(
            num_scalar_prefetch=0,
            grid=(B // bt,),
            in_specs=[
                pl.BlockSpec((S, bt, D), lambda i: (0, i, 0)),
                pl.BlockSpec((D, 3 * D), lambda i: (0, 0), **wmode),
                pl.BlockSpec((4, D), lambda i: (0, 0), **wmode),
                pl.BlockSpec((D, Dff), lambda i: (0, 0), **wmode),
                pl.BlockSpec((1, Dff), lambda i: (0, 0), **wmode),
                pl.BlockSpec((Dff, D), lambda i: (0, 0), **wmode),
                pl.BlockSpec((1, D), lambda i: (0, 0), **wmode),
            ],
            out_specs=pl.BlockSpec((S, bt, D), lambda i: (0, i, 0)),
            scratch_shapes=[pltpu.VMEM((bt * S, D), jnp.float32)],
        )
        return pl.pallas_call(
            kernel,
            out_shape=jax.ShapeDtypeStruct((S, B, D), x.dtype),
            grid_spec=grid_spec,
            compiler_params=pltpu.CompilerParams(
                dimension_semantics=("parallel",),
                vmem_limit_bytes=int(vmem_limit)),
        )(x, wqkv, ln, w1, bf1, w2, bf2)

    try:
        return run(True)
    except Exception:
        # Fallback for JAX builds that reject per-BlockSpec pipeline_mode.
        return run(False)


def sattention_ref(x, params, *, nhead, eps=1e-5):
    """Pure-JAX f32 reference mirroring the PyTorch forward (eval mode)."""
    S, B, D = x.shape
    temperature = math.sqrt(D / nhead)

    def ln(z, g, b):
        m = jnp.mean(z, axis=-1, keepdims=True)
        v = jnp.mean((z - m) ** 2, axis=-1, keepdims=True)
        return (z - m) / jnp.sqrt(v + eps) * g + b

    xn = ln(x, params["g1"], params["b1"])
    q = (xn @ params["wq"].T).transpose(1, 0, 2)
    k = (xn @ params["wk"].T).transpose(1, 0, 2)
    v = (xn @ params["wv"].T).transpose(1, 0, 2)
    dim = D // nhead
    outs = []
    for i in range(nhead):
        lo = i * dim
        hi = D if i == nhead - 1 else (i + 1) * dim
        qh, kh, vh = q[:, :, lo:hi], k[:, :, lo:hi], v[:, :, lo:hi]
        a = jax.nn.softmax(
            jnp.einsum("bqd,bkd->bqk", qh, kh) / temperature, axis=-1)
        outs.append(jnp.einsum("bqk,bkd->bqd", a, vh).transpose(1, 0, 2))
    att = jnp.concatenate(outs, axis=-1)
    xt = ln(xn + att, params["g2"], params["b2"])
    h1 = jnp.maximum(xt @ params["w1"].T + params["bf1"], 0.0)
    h2 = h1 @ params["w2"].T + params["bf2"]
    return xt + h2


if __name__ == "__main__":
    S, B, D, NHEAD = 8, 2, 32, 4

    key = jax.random.PRNGKey(0)
    ks = jax.random.split(key, 8)
    bound = 1.0 / math.sqrt(D)

    params = {
        "wq": jax.random.uniform(ks[0], (D, D), jnp.float32, -bound, bound),
        "wk": jax.random.uniform(ks[1], (D, D), jnp.float32, -bound, bound),
        "wv": jax.random.uniform(ks[2], (D, D), jnp.float32, -bound, bound),
        "g1": jnp.ones((D,), jnp.float32),
        "b1": jnp.zeros((D,), jnp.float32),
        "g2": jnp.ones((D,), jnp.float32),
        "b2": jnp.zeros((D,), jnp.float32),
        "w1": jax.random.uniform(ks[3], (D, D), jnp.float32, -bound, bound),
        "bf1": jax.random.uniform(ks[4], (D,), jnp.float32, -bound, bound),
        "w2": jax.random.uniform(ks[5], (D, D), jnp.float32, -bound, bound),
        "bf2": jax.random.uniform(ks[6], (D,), jnp.float32, -bound, bound),
    }
    x = jax.random.normal(ks[7], (S, B, D), jnp.float32)

    out = jax.block_until_ready(sattention_forward(x, params, nhead=NHEAD))
    ref = sattention_ref(x, params, nhead=NHEAD)

    assert out.shape == (S, B, D), out.shape
    # Tolerance relaxed because matmul operands are bf16 (f32 accumulation).
    if not bool(jnp.allclose(out, ref, rtol=3e-2, atol=3e-2)):
        raise SystemExit("kernel/reference mismatch")
    print("KERNEL_OK")
</pallas_src>

<mosaic_0001>
module attributes {stable_mosaic.version = 11 : i64} {
  func.func @_sattention_kernel(%arg0: i32, %arg1: memref<8x2x32xf32, #tpu.memory_space<vmem>>, %arg2: memref<32x96xbf16, #tpu.memory_space<vmem>>, %arg3: memref<4x32xf32, #tpu.memory_space<vmem>>, %arg4: memref<32x32xbf16, #tpu.memory_space<vmem>>, %arg5: memref<1x32xf32, #tpu.memory_space<vmem>>, %arg6: memref<32x32xbf16, #tpu.memory_space<vmem>>, %arg7: memref<1x32xf32, #tpu.memory_space<vmem>>, %arg8: memref<8x2x32xf32, #tpu.memory_space<vmem>>, %arg9: memref<16x32xf32, #tpu.memory_space<vmem>>) attributes {dimension_semantics = [#tpu.dimension_semantics<parallel>], iteration_bounds = array<i64: 1>, scalar_prefetch = 0 : i64, scratch_operands = 1 : i64, tpu.core_type = #tpu.core_type<tc>, window_params = [{transform_indices = @transform_0, window_bounds = array<i64: 8, 2, 32>}, {pipeline_mode = #tpu.pipeline_mode<synchronous>, transform_indices = @transform_1, window_bounds = array<i64: 32, 96>}, {pipeline_mode = #tpu.pipeline_mode<synchronous>, transform_indices = @transform_2, window_bounds = array<i64: 4, 32>}, {pipeline_mode = #tpu.pipeline_mode<synchronous>, transform_indices = @transform_3, window_bounds = array<i64: 32, 32>}, {pipeline_mode = #tpu.pipeline_mode<synchronous>, transform_indices = @transform_4, window_bounds = array<i64: 1, 32>}, {pipeline_mode = #tpu.pipeline_mode<synchronous>, transform_indices = @transform_5, window_bounds = array<i64: 32, 32>}, {pipeline_mode = #tpu.pipeline_mode<synchronous>, transform_indices = @transform_6, window_bounds = array<i64: 1, 32>}, {transform_indices = @transform_7, window_bounds = array<i64: 8, 2, 32>}]} {
    %c0 = arith.constant 0 : index
    %c0_0 = arith.constant 0 : index
    %0 = vector.load %arg3[%c0, %c0_0] : memref<4x32xf32, #tpu.memory_space<vmem>>, vector<1x32xf32>
    %c1 = arith.constant 1 : index
    %c0_1 = arith.constant 0 : index
    %1 = vector.load %arg3[%c1, %c0_1] : memref<4x32xf32, #tpu.memory_space<vmem>>, vector<1x32xf32>
    %c2 = arith.constant 2 : index
    %c0_2 = arith.constant 0 : index
    %2 = vector.load %arg3[%c2, %c0_2] : memref<4x32xf32, #tpu.memory_space<vmem>>, vector<1x32xf32>
    %c3 = arith.constant 3 : index
    %c0_3 = arith.constant 0 : index
    %3 = vector.load %arg3[%c3, %c0_3] : memref<4x32xf32, #tpu.memory_space<vmem>>, vector<1x32xf32>
    %c0_4 = arith.constant 0 : index
    %c0_5 = arith.constant 0 : index
    %c0_6 = arith.constant 0 : index
    %4 = vector.load %arg1[%c0_4, %c0_5, %c0_6] : memref<8x2x32xf32, #tpu.memory_space<vmem>>, vector<8x1x32xf32>
    %5 = vector.shape_cast %4 : vector<8x1x32xf32> to vector<8x32xf32>
    %c0_7 = arith.constant 0 : index
    %c1_8 = arith.constant 1 : index
    %c0_9 = arith.constant 0 : index
    %6 = vector.load %arg1[%c0_7, %c1_8, %c0_9] : memref<8x2x32xf32, #tpu.memory_space<vmem>>, vector<8x1x32xf32>
    %7 = vector.shape_cast %6 : vector<8x1x32xf32> to vector<8x32xf32>
    %8 = tpu.concatenate %5, %7 in 0 : vector<8x32xf32>, vector<8x32xf32> -> vector<16x32xf32>
    %cst = arith.constant dense<0.000000e+00> : vector<16xf32>
    %9 = vector.multi_reduction <add>, %8, %cst [1] : vector<16x32xf32> to vector<16xf32>
    %10 = vector.shape_cast %9 : vector<16xf32> to vector<16x1xf32>
    %cst_10 = arith.constant 3.200000e+01 : f32
    %11 = vector.broadcast %cst_10 : f32 to vector<16x1xf32>
    %12 = arith.divf %10, %11 : vector<16x1xf32>
    %13 = vector.broadcast %12 : vector<16x1xf32> to vector<16x32xf32>
    %14 = arith.subf %8, %13 : vector<16x32xf32>
    %15 = arith.mulf %14, %14 : vector<16x32xf32>
    %cst_11 = arith.constant dense<0.000000e+00> : vector<16xf32>
    %16 = vector.multi_reduction <add>, %15, %cst_11 [1] : vector<16x32xf32> to vector<16xf32>
    %17 = vector.shape_cast %16 : vector<16xf32> to vector<16x1xf32>
    %cst_12 = arith.constant 3.200000e+01 : f32
    %18 = vector.broadcast %cst_12 : f32 to vector<16x1xf32>
    %19 = arith.divf %17, %18 : vector<16x1xf32>
    %20 = vector.broadcast %12 : vector<16x1xf32> to vector<16x32xf32>
    %21 = arith.subf %8, %20 : vector<16x32xf32>
    %cst_13 = arith.constant 9.99999974E-6 : f32
    %22 = vector.broadcast %cst_13 : f32 to vector<16x1xf32>
    %23 = arith.addf %19, %22 : vector<16x1xf32>
    %24 = math.rsqrt %23 : vector<16x1xf32>
    %25 = vector.broadcast %24 : vector<16x1xf32> to vector<16x32xf32>
    %26 = arith.mulf %21, %25 : vector<16x32xf32>
    %27 = vector.broadcast %0 : vector<1x32xf32> to vector<16x32xf32>
    %28 = arith.mulf %26, %27 : vector<16x32xf32>
    %29 = vector.broadcast %1 : vector<1x32xf32> to vector<16x32xf32>
    %30 = arith.addf %28, %29 : vector<16x32xf32>
    %31 = arith.truncf %30 : vector<16x32xf32> to vector<16x32xbf16>
    %c0_14 = arith.constant 0 : index
    %c0_15 = arith.constant 0 : index
    %32 = vector.load %arg2[%c0_14, %c0_15] : memref<32x96xbf16, #tpu.memory_space<vmem>>, vector<32x96xbf16>
    %cst_16 = arith.constant dense<0.000000e+00> : vector<16x96xf32>
    %33 = tpu.matmul %31, %32, %cst_16 {dimension_numbers = #tpu.dot_dimension_numbers<[1], [0], [0], [1], [0, 0, 1, 1], [], []>} : vector<16x32xbf16>, vector<32x96xbf16>, vector<16x96xf32> -> vector<16x96xf32>
    %34 = arith.truncf %33 : vector<16x96xf32> to vector<16x96xbf16>
    %35 = vector.extract_strided_slice %34 {offsets = [0, 0], sizes = [8, 8], strides = [1, 1]} : vector<16x96xbf16> to vector<8x8xbf16>
    %36 = vector.extract_strided_slice %34 {offsets = [0, 32], sizes = [8, 8], strides = [1, 1]} : vector<16x96xbf16> to vector<8x8xbf16>
    %37 = vector.extract_strided_slice %34 {offsets = [0, 64], sizes = [8, 8], strides = [1, 1]} : vector<16x96xbf16> to vector<8x8xbf16>
    %cst_17 = arith.constant dense<0.000000e+00> : vector<8x8xf32>
    %38 = tpu.matmul %35, %36, %cst_17 {dimension_numbers = #tpu.dot_dimension_numbers<[1], [1], [0], [0], [0, 0, 1, 0], [], []>} : vector<8x8xbf16>, vector<8x8xbf16>, vector<8x8xf32> -> vector<8x8xf32>
    %cst_18 = arith.constant dense<0xFF800000> : vector<8xf32>
    %39 = vector.multi_reduction <maximumf>, %38, %cst_18 [1] : vector<8x8xf32> to vector<8xf32>
    %40 = vector.shape_cast %39 : vector<8xf32> to vector<8x1xf32>
    %41 = vector.broadcast %40 : vector<8x1xf32> to vector<8x8xf32>
    %42 = arith.subf %38, %41 : vector<8x8xf32>
    %43 = math.exp %42 : vector<8x8xf32>
    %cst_19 = arith.constant dense<0.000000e+00> : vector<8xf32>
    %44 = vector.multi_reduction <add>, %43, %cst_19 [1] : vector<8x8xf32> to vector<8xf32>
    %45 = vector.shape_cast %44 : vector<8xf32> to vector<8x1xf32>
    %46 = tpu.reciprocal %45 {approx = true} : vector<8x1xf32> -> vector<8x1xf32>
    %47 = vector.broadcast %46 : vector<8x1xf32> to vector<8x8xf32>
    %48 = arith.mulf %43, %47 : vector<8x8xf32>
    %49 = arith.truncf %48 : vector<8x8xf32> to vector<8x8xbf16>
    %cst_20 = arith.constant dense<0.000000e+00> : vector<8x8xf32>
    %50 = tpu.matmul %49, %37, %cst_20 {dimension_numbers = #tpu.dot_dimension_numbers<[1], [0], [0], [1], [0, 0, 1, 1], [], []>} : vector<8x8xbf16>, vector<8x8xbf16>, vector<8x8xf32> -> vector<8x8xf32>
    %c0_21 = arith.constant 0 : index
    %c0_22 = arith.constant 0 : index
    %51 = vector.load %arg9[%c0_21, %c0_22] : memref<16x32xf32, #tpu.memory_space<vmem>>, vector<8x8xf32>
    tpu.vector_store %arg9[%c0_21, %c0_22], %50 {strides = array<i32>} : memref<16x32xf32, #tpu.memory_space<vmem>>, vector<8x8xf32>,
    %52 = vector.extract_strided_slice %34 {offsets = [0, 8], sizes = [8, 8], strides = [1, 1]} : vector<16x96xbf16> to vector<8x8xbf16>
    %53 = vector.extract_strided_slice %34 {offsets = [0, 40], sizes = [8, 8], strides = [1, 1]} : vector<16x96xbf16> to vector<8x8xbf16>
    %54 = vector.extract_strided_slice %34 {offsets = [0, 72], sizes = [8, 8], strides = [1, 1]} : vector<16x96xbf16> to vector<8x8xbf16>
    %cst_23 = arith.constant dense<0.000000e+00> : vector<8x8xf32>
    %55 = tpu.matmul %52, %53, %cst_23 {dimension_numbers = #tpu.dot_dimension_numbers<[1], [1], [0], [0], [0, 0, 1, 0], [], []>} : vector<8x8xbf16>, vector<8x8xbf16>, vector<8x8xf32> -> vector<8x8xf32>
    %cst_24 = arith.constant dense<0xFF800000> : vector<8xf32>
    %56 = vector.multi_reduction <maximumf>, %55, %cst_24 [1] : vector<8x8xf32> to vector<8xf32>
    %57 = vector.shape_cast %56 : vector<8xf32> to vector<8x1xf32>
    %58 = vector.broadcast %57 : vector<8x1xf32> to vector<8x8xf32>
    %59 = arith.subf %55, %58 : vector<8x8xf32>
    %60 = math.exp %59 : vector<8x8xf32>
    %cst_25 = arith.constant dense<0.000000e+00> : vector<8xf32>
    %61 = vector.multi_reduction <add>, %60, %cst_25 [1] : vector<8x8xf32> to vector<8xf32>
    %62 = vector.shape_cast %61 : vector<8xf32> to vector<8x1xf32>
    %63 = tpu.reciprocal %62 {approx = true} : vector<8x1xf32> -> vector<8x1xf32>
    %64 = vector.broadcast %63 : vector<8x1xf32> to vector<8x8xf32>
    %65 = arith.mulf %60, %64 : vector<8x8xf32>
    %66 = arith.truncf %65 : vector<8x8xf32> to vector<8x8xbf16>
    %cst_26 = arith.constant dense<0.000000e+00> : vector<8x8xf32>
    %67 = tpu.matmul %66, %54, %cst_26 {dimension_numbers = #tpu.dot_dimension_numbers<[1], [0], [0], [1], [0, 0, 1, 1], [], []>} : vector<8x8xbf16>, vector<8x8xbf16>, vector<8x8xf32> -> vector<8x8xf32>
    %c0_27 = arith.constant 0 : index
    %c8 = arith.constant 8 : index
    %68 = vector.load %arg9[%c0_27, %c8] : memref<16x32xf32, #tpu.memory_space<vmem>>, vector<8x8xf32>
    tpu.vector_store %arg9[%c0_27, %c8], %67 {strides = array<i32>} : memref<16x32xf32, #tpu.memory_space<vmem>>, vector<8x8xf32>,
    %69 = vector.extract_strided_slice %34 {offsets = [0, 16], sizes = [8, 8], strides = [1, 1]} : vector<16x96xbf16> to vector<8x8xbf16>
    %70 = vector.extract_strided_slice %34 {offsets = [0, 48], sizes = [8, 8], strides = [1, 1]} : vector<16x96xbf16> to vector<8x8xbf16>
    %71 = vector.extract_strided_slice %34 {offsets = [0, 80], sizes = [8, 8], strides = [1, 1]} : vector<16x96xbf16> to vector<8x8xbf16>
    %cst_28 = arith.constant dense<0.000000e+00> : vector<8x8xf32>
    %72 = tpu.matmul %69, %70, %cst_28 {dimension_numbers = #tpu.dot_dimension_numbers<[1], [1], [0], [0], [0, 0, 1, 0], [], []>} : vector<8x8xbf16>, vector<8x8xbf16>, vector<8x8xf32> -> vector<8x8xf32>
    %cst_29 = arith.constant dense<0xFF800000> : vector<8xf32>
    %73 = vector.multi_reduction <maximumf>, %72, %cst_29 [1] : vector<8x8xf32> to vector<8xf32>
    %74 = vector.shape_cast %73 : vector<8xf32> to vector<8x1xf32>
    %75 = vector.broadcast %74 : vector<8x1xf32> to vector<8x8xf32>
    %76 = arith.subf %72, %75 : vector<8x8xf32>
    %77 = math.exp %76 : vector<8x8xf32>
    %cst_30 = arith.constant dense<0.000000e+00> : vector<8xf32>
    %78 = vector.multi_reduction <add>, %77, %cst_30 [1] : vector<8x8xf32> to vector<8xf32>
    %79 = vector.shape_cast %78 : vector<8xf32> to vector<8x1xf32>
    %80 = tpu.reciprocal %79 {approx = true} : vector<8x1xf32> -> vector<8x1xf32>
    %81 = vector.broadcast %80 : vector<8x1xf32> to vector<8x8xf32>
    %82 = arith.mulf %77, %81 : vector<8x8xf32>
    %83 = arith.truncf %82 : vector<8x8xf32> to vector<8x8xbf16>
    %cst_31 = arith.constant dense<0.000000e+00> : vector<8x8xf32>
    %84 = tpu.matmul %83, %71, %cst_31 {dimension_numbers = #tpu.dot_dimension_numbers<[1], [0], [0], [1], [0, 0, 1, 1], [], []>} : vector<8x8xbf16>, vector<8x8xbf16>, vector<8x8xf32> -> vector<8x8xf32>
    %c0_32 = arith.constant 0 : index
    %c16 = arith.constant 16 : index
    %85 = vector.load %arg9[%c0_32, %c16] : memref<16x32xf32, #tpu.memory_space<vmem>>, vector<8x8xf32>
    tpu.vector_store %arg9[%c0_32, %c16], %84 {strides = array<i32>} : memref<16x32xf32, #tpu.memory_space<vmem>>, vector<8x8xf32>,
    %86 = vector.extract_strided_slice %34 {offsets = [0, 24], sizes = [8, 8], strides = [1, 1]} : vector<16x96xbf16> to vector<8x8xbf16>
    %87 = vector.extract_strided_slice %34 {offsets = [0, 56], sizes = [8, 8], strides = [1, 1]} : vector<16x96xbf16> to vector<8x8xbf16>
    %88 = vector.extract_strided_slice %34 {offsets = [0, 88], sizes = [8, 8], strides = [1, 1]} : vector<16x96xbf16> to vector<8x8xbf16>
    %cst_33 = arith.constant dense<0.000000e+00> : vector<8x8xf32>
    %89 = tpu.matmul %86, %87, %cst_33 {dimension_numbers = #tpu.dot_dimension_numbers<[1], [1], [0], [0], [0, 0, 1, 0], [], []>} : vector<8x8xbf16>, vector<8x8xbf16>, vector<8x8xf32> -> vector<8x8xf32>
    %cst_34 = arith.constant dense<0xFF800000> : vector<8xf32>
    %90 = vector.multi_reduction <maximumf>, %89, %cst_34 [1] : vector<8x8xf32> to vector<8xf32>
    %91 = vector.shape_cast %90 : vector<8xf32> to vector<8x1xf32>
    %92 = vector.broadcast %91 : vector<8x1xf32> to vector<8x8xf32>
    %93 = arith.subf %89, %92 : vector<8x8xf32>
    %94 = math.exp %93 : vector<8x8xf32>
    %cst_35 = arith.constant dense<0.000000e+00> : vector<8xf32>
    %95 = vector.multi_reduction <add>, %94, %cst_35 [1] : vector<8x8xf32> to vector<8xf32>
    %96 = vector.shape_cast %95 : vector<8xf32> to vector<8x1xf32>
    %97 = tpu.reciprocal %96 {approx = true} : vector<8x1xf32> -> vector<8x1xf32>
    %98 = vector.broadcast %97 : vector<8x1xf32> to vector<8x8xf32>
    %99 = arith.mulf %94, %98 : vector<8x8xf32>
    %100 = arith.truncf %99 : vector<8x8xf32> to vector<8x8xbf16>
    %cst_36 = arith.constant dense<0.000000e+00> : vector<8x8xf32>
    %101 = tpu.matmul %100, %88, %cst_36 {dimension_numbers = #tpu.dot_dimension_numbers<[1], [0], [0], [1], [0, 0, 1, 1], [], []>} : vector<8x8xbf16>, vector<8x8xbf16>, vector<8x8xf32> -> vector<8x8xf32>
    %c0_37 = arith.constant 0 : index
    %c24 = arith.constant 24 : index
    %102 = vector.load %arg9[%c0_37, %c24] : memref<16x32xf32, #tpu.memory_space<vmem>>, vector<8x8xf32>
    tpu.vector_store %arg9[%c0_37, %c24], %101 {strides = array<i32>} : memref<16x32xf32, #tpu.memory_space<vmem>>, vector<8x8xf32>,
    %103 = vector.extract_strided_slice %34 {offsets = [8, 0], sizes = [8, 8], strides = [1, 1]} : vector<16x96xbf16> to vector<8x8xbf16>
    %104 = vector.extract_strided_slice %34 {offsets = [8, 32], sizes = [8, 8], strides = [1, 1]} : vector<16x96xbf16> to vector<8x8xbf16>
    %105 = vector.extract_strided_slice %34 {offsets = [8, 64], sizes = [8, 8], strides = [1, 1]} : vector<16x96xbf16> to vector<8x8xbf16>
    %cst_38 = arith.constant dense<0.000000e+00> : vector<8x8xf32>
    %106 = tpu.matmul %103, %104, %cst_38 {dimension_numbers = #tpu.dot_dimension_numbers<[1], [1], [0], [0], [0, 0, 1, 0], [], []>} : vector<8x8xbf16>, vector<8x8xbf16>, vector<8x8xf32> -> vector<8x8xf32>
    %cst_39 = arith.constant dense<0xFF800000> : vector<8xf32>
    %107 = vector.multi_reduction <maximumf>, %106, %cst_39 [1] : vector<8x8xf32> to vector<8xf32>
    %108 = vector.shape_cast %107 : vector<8xf32> to vector<8x1xf32>
    %109 = vector.broadcast %108 : vector<8x1xf32> to vector<8x8xf32>
    %110 = arith.subf %106, %109 : vector<8x8xf32>
    %111 = math.exp %110 : vector<8x8xf32>
    %cst_40 = arith.constant dense<0.000000e+00> : vector<8xf32>
    %112 = vector.multi_reduction <add>, %111, %cst_40 [1] : vector<8x8xf32> to vector<8xf32>
    %113 = vector.shape_cast %112 : vector<8xf32> to vector<8x1xf32>
    %114 = tpu.reciprocal %113 {approx = true} : vector<8x1xf32> -> vector<8x1xf32>
    %115 = vector.broadcast %114 : vector<8x1xf32> to vector<8x8xf32>
    %116 = arith.mulf %111, %115 : vector<8x8xf32>
    %117 = arith.truncf %116 : vector<8x8xf32> to vector<8x8xbf16>
    %cst_41 = arith.constant dense<0.000000e+00> : vector<8x8xf32>
    %118 = tpu.matmul %117, %105, %cst_41 {dimension_numbers = #tpu.dot_dimension_numbers<[1], [0], [0], [1], [0, 0, 1, 1], [], []>} : vector<8x8xbf16>, vector<8x8xbf16>, vector<8x8xf32> -> vector<8x8xf32>
    %c8_42 = arith.constant 8 : index
    %c0_43 = arith.constant 0 : index
    %119 = vector.load %arg9[%c8_42, %c0_43] : memref<16x32xf32, #tpu.memory_space<vmem>>, vector<8x8xf32>
    tpu.vector_store %arg9[%c8_42, %c0_43], %118 {strides = array<i32>} : memref<16x32xf32, #tpu.memory_space<vmem>>, vector<8x8xf32>,
    %120 = vector.extract_strided_slice %34 {offsets = [8, 8], sizes = [8, 8], strides = [1, 1]} : vector<16x96xbf16> to vector<8x8xbf16>
    %121 = vector.extract_strided_slice %34 {offsets = [8, 40], sizes = [8, 8], strides = [1, 1]} : vector<16x96xbf16> to vector<8x8xbf16>
    %122 = vector.extract_strided_slice %34 {offsets = [8, 72], sizes = [8, 8], strides = [1, 1]} : vector<16x96xbf16> to vector<8x8xbf16>
    %cst_44 = arith.constant dense<0.000000e+00> : vector<8x8xf32>
    %123 = tpu.matmul %120, %121, %cst_44 {dimension_numbers = #tpu.dot_dimension_numbers<[1], [1], [0], [0], [0, 0, 1, 0], [], []>} : vector<8x8xbf16>, vector<8x8xbf16>, vector<8x8xf32> -> vector<8x8xf32>
    %cst_45 = arith.constant dense<0xFF800000> : vector<8xf32>
    %124 = vector.multi_reduction <maximumf>, %123, %cst_45 [1] : vector<8x8xf32> to vector<8xf32>
    %125 = vector.shape_cast %124 : vector<8xf32> to vector<8x1xf32>
    %126 = vector.broadcast %125 : vector<8x1xf32> to vector<8x8xf32>
    %127 = arith.subf %123, %126 : vector<8x8xf32>
    %128 = math.exp %127 : vector<8x8xf32>
    %cst_46 = arith.constant dense<0.000000e+00> : vector<8xf32>
    %129 = vector.multi_reduction <add>, %128, %cst_46 [1] : vector<8x8xf32> to vector<8xf32>
    %130 = vector.shape_cast %129 : vector<8xf32> to vector<8x1xf32>
    %131 = tpu.reciprocal %130 {approx = true} : vector<8x1xf32> -> vector<8x1xf32>
    %132 = vector.broadcast %131 : vector<8x1xf32> to vector<8x8xf32>
    %133 = arith.mulf %128, %132 : vector<8x8xf32>
    %134 = arith.truncf %133 : vector<8x8xf32> to vector<8x8xbf16>
    %cst_47 = arith.constant dense<0.000000e+00> : vector<8x8xf32>
    %135 = tpu.matmul %134, %122, %cst_47 {dimension_numbers = #tpu.dot_dimension_numbers<[1], [0], [0], [1], [0, 0, 1, 1], [], []>} : vector<8x8xbf16>, vector<8x8xbf16>, vector<8x8xf32> -> vector<8x8xf32>
    %c8_48 = arith.constant 8 : index
    %c8_49 = arith.constant 8 : index
    %136 = vector.load %arg9[%c8_48, %c8_49] : memref<16x32xf32, #tpu.memory_space<vmem>>, vector<8x8xf32>
    tpu.vector_store %arg9[%c8_48, %c8_49], %135 {strides = array<i32>} : memref<16x32xf32, #tpu.memory_space<vmem>>, vector<8x8xf32>,
    %137 = vector.extract_strided_slice %34 {offsets = [8, 16], sizes = [8, 8], strides = [1, 1]} : vector<16x96xbf16> to vector<8x8xbf16>
    %138 = vector.extract_strided_slice %34 {offsets = [8, 48], sizes = [8, 8], strides = [1, 1]} : vector<16x96xbf16> to vector<8x8xbf16>
    %139 = vector.extract_strided_slice %34 {offsets = [8, 80], sizes = [8, 8], strides = [1, 1]} : vector<16x96xbf16> to vector<8x8xbf16>
    %cst_50 = arith.constant dense<0.000000e+00> : vector<8x8xf32>
    %140 = tpu.matmul %137, %138, %cst_50 {dimension_numbers = #tpu.dot_dimension_numbers<[1], [1], [0], [0], [0, 0, 1, 0], [], []>} : vector<8x8xbf16>, vector<8x8xbf16>, vector<8x8xf32> -> vector<8x8xf32>
    %cst_51 = arith.constant dense<0xFF800000> : vector<8xf32>
    %141 = vector.multi_reduction <maximumf>, %140, %cst_51 [1] : vector<8x8xf32> to vector<8xf32>
    %142 = vector.shape_cast %141 : vector<8xf32> to vector<8x1xf32>
    %143 = vector.broadcast %142 : vector<8x1xf32> to vector<8x8xf32>
    %144 = arith.subf %140, %143 : vector<8x8xf32>
    %145 = math.exp %144 : vector<8x8xf32>
    %cst_52 = arith.constant dense<0.000000e+00> : vector<8xf32>
    %146 = vector.multi_reduction <add>, %145, %cst_52 [1] : vector<8x8xf32> to vector<8xf32>
    %147 = vector.shape_cast %146 : vector<8xf32> to vector<8x1xf32>
    %148 = tpu.reciprocal %147 {approx = true} : vector<8x1xf32> -> vector<8x1xf32>
    %149 = vector.broadcast %148 : vector<8x1xf32> to vector<8x8xf32>
    %150 = arith.mulf %145, %149 : vector<8x8xf32>
    %151 = arith.truncf %150 : vector<8x8xf32> to vector<8x8xbf16>
    %cst_53 = arith.constant dense<0.000000e+00> : vector<8x8xf32>
    %152 = tpu.matmul %151, %139, %cst_53 {dimension_numbers = #tpu.dot_dimension_numbers<[1], [0], [0], [1], [0, 0, 1, 1], [], []>} : vector<8x8xbf16>, vector<8x8xbf16>, vector<8x8xf32> -> vector<8x8xf32>
    %c8_54 = arith.constant 8 : index
    %c16_55 = arith.constant 16 : index
    %153 = vector.load %arg9[%c8_54, %c16_55] : memref<16x32xf32, #tpu.memory_space<vmem>>, vector<8x8xf32>
    tpu.vector_store %arg9[%c8_54, %c16_55], %152 {strides = array<i32>} : memref<16x32xf32, #tpu.memory_space<vmem>>, vector<8x8xf32>,
    %154 = vector.extract_strided_slice %34 {offsets = [8, 24], sizes = [8, 8], strides = [1, 1]} : vector<16x96xbf16> to vector<8x8xbf16>
    %155 = vector.extract_strided_slice %34 {offsets = [8, 56], sizes = [8, 8], strides = [1, 1]} : vector<16x96xbf16> to vector<8x8xbf16>
    %156 = vector.extract_strided_slice %34 {offsets = [8, 88], sizes = [8, 8], strides = [1, 1]} : vector<16x96xbf16> to vector<8x8xbf16>
    %cst_56 = arith.constant dense<0.000000e+00> : vector<8x8xf32>
    %157 = tpu.matmul %154, %155, %cst_56 {dimension_numbers = #tpu.dot_dimension_numbers<[1], [1], [0], [0], [0, 0, 1, 0], [], []>} : vector<8x8xbf16>, vector<8x8xbf16>, vector<8x8xf32> -> vector<8x8xf32>
    %cst_57 = arith.constant dense<0xFF800000> : vector<8xf32>
    %158 = vector.multi_reduction <maximumf>, %157, %cst_57 [1] : vector<8x8xf32> to vector<8xf32>
    %159 = vector.shape_cast %158 : vector<8xf32> to vector<8x1xf32>
    %160 = vector.broadcast %159 : vector<8x1xf32> to vector<8x8xf32>
    %161 = arith.subf %157, %160 : vector<8x8xf32>
    %162 = math.exp %161 : vector<8x8xf32>
    %cst_58 = arith.constant dense<0.000000e+00> : vector<8xf32>
    %163 = vector.multi_reduction <add>, %162, %cst_58 [1] : vector<8x8xf32> to vector<8xf32>
    %164 = vector.shape_cast %163 : vector<8xf32> to vector<8x1xf32>
    %165 = tpu.reciprocal %164 {approx = true} : vector<8x1xf32> -> vector<8x1xf32>
    %166 = vector.broadcast %165 : vector<8x1xf32> to vector<8x8xf32>
    %167 = arith.mulf %162, %166 : vector<8x8xf32>
    %168 = arith.truncf %167 : vector<8x8xf32> to vector<8x8xbf16>
    %cst_59 = arith.constant dense<0.000000e+00> : vector<8x8xf32>
    %169 = tpu.matmul %168, %156, %cst_59 {dimension_numbers = #tpu.dot_dimension_numbers<[1], [0], [0], [1], [0, 0, 1, 1], [], []>} : vector<8x8xbf16>, vector<8x8xbf16>, vector<8x8xf32> -> vector<8x8xf32>
    %c8_60 = arith.constant 8 : index
    %c24_61 = arith.constant 24 : index
    %170 = vector.load %arg9[%c8_60, %c24_61] : memref<16x32xf32, #tpu.memory_space<vmem>>, vector<8x8xf32>
    tpu.vector_store %arg9[%c8_60, %c24_61], %169 {strides = array<i32>} : memref<16x32xf32, #tpu.memory_space<vmem>>, vector<8x8xf32>,
    %c0_62 = arith.constant 0 : index
    %c0_63 = arith.constant 0 : index
    %171 = vector.load %arg9[%c0_62, %c0_63] : memref<16x32xf32, #tpu.memory_space<vmem>>, vector<16x32xf32>
    %172 = arith.addf %30, %171 : vector<16x32xf32>
    %cst_64 = arith.constant dense<0.000000e+00> : vector<16xf32>
    %173 = vector.multi_reduction <add>, %172, %cst_64 [1] : vector<16x32xf32> to vector<16xf32>
    %174 = vector.shape_cast %173 : vector<16xf32> to vector<16x1xf32>
    %cst_65 = arith.constant 3.200000e+01 : f32
    %175 = vector.broadcast %cst_65 : f32 to vector<16x1xf32>
    %176 = arith.divf %174, %175 : vector<16x1xf32>
    %177 = vector.broadcast %176 : vector<16x1xf32> to vector<16x32xf32>
    %178 = arith.subf %172, %177 : vector<16x32xf32>
    %179 = arith.mulf %178, %178 : vector<16x32xf32>
    %cst_66 = arith.constant dense<0.000000e+00> : vector<16xf32>
    %180 = vector.multi_reduction <add>, %179, %cst_66 [1] : vector<16x32xf32> to vector<16xf32>
    %181 = vector.shape_cast %180 : vector<16xf32> to vector<16x1xf32>
    %cst_67 = arith.constant 3.200000e+01 : f32
    %182 = vector.broadcast %cst_67 : f32 to vector<16x1xf32>
    %183 = arith.divf %181, %182 : vector<16x1xf32>
    %184 = vector.broadcast %176 : vector<16x1xf32> to vector<16x32xf32>
    %185 = arith.subf %172, %184 : vector<16x32xf32>
    %cst_68 = arith.constant 9.99999974E-6 : f32
    %186 = vector.broadcast %cst_68 : f32 to vector<16x1xf32>
    %187 = arith.addf %183, %186 : vector<16x1xf32>
    %188 = math.rsqrt %187 : vector<16x1xf32>
    %189 = vector.broadcast %188 : vector<16x1xf32> to vector<16x32xf32>
    %190 = arith.mulf %185, %189 : vector<16x32xf32>
    %191 = vector.broadcast %2 : vector<1x32xf32> to vector<16x32xf32>
    %192 = arith.mulf %190, %191 : vector<16x32xf32>
    %193 = vector.broadcast %3 : vector<1x32xf32> to vector<16x32xf32>
    %194 = arith.addf %192, %193 : vector<16x32xf32>
    %195 = arith.truncf %194 : vector<16x32xf32> to vector<16x32xbf16>
    %c0_69 = arith.constant 0 : index
    %c0_70 = arith.constant 0 : index
    %196 = vector.load %arg4[%c0_69, %c0_70] : memref<32x32xbf16, #tpu.memory_space<vmem>>, vector<32x32xbf16>
    %cst_71 = arith.constant dense<0.000000e+00> : vector<16x32xf32>
    %197 = tpu.matmul %195, %196, %cst_71 {dimension_numbers = #tpu.dot_dimension_numbers<[1], [0], [0], [1], [0, 0, 1, 1], [], []>} : vector<16x32xbf16>, vector<32x32xbf16>, vector<16x32xf32> -> vector<16x32xf32>
    %c0_72 = arith.constant 0 : index
    %c0_73 = arith.constant 0 : index
    %198 = vector.load %arg5[%c0_72, %c0_73] : memref<1x32xf32, #tpu.memory_space<vmem>>, vector<1x32xf32>
    %199 = vector.broadcast %198 : vector<1x32xf32> to vector<16x32xf32>
    %200 = arith.addf %197, %199 : vector<16x32xf32>
    %cst_74 = arith.constant 0.000000e+00 : f32
    %201 = vector.broadcast %cst_74 : f32 to vector<16x32xf32>
    %202 = arith.maximumf %200, %201 : vector<16x32xf32>
    %203 = arith.truncf %202 : vector<16x32xf32> to vector<16x32xbf16>
    %c0_75 = arith.constant 0 : index
    %c0_76 = arith.constant 0 : index
    %204 = vector.load %arg6[%c0_75, %c0_76] : memref<32x32xbf16, #tpu.memory_space<vmem>>, vector<32x32xbf16>
    %cst_77 = arith.constant dense<0.000000e+00> : vector<16x32xf32>
    %205 = tpu.matmul %203, %204, %cst_77 {dimension_numbers = #tpu.dot_dimension_numbers<[1], [0], [0], [1], [0, 0, 1, 1], [], []>} : vector<16x32xbf16>, vector<32x32xbf16>, vector<16x32xf32> -> vector<16x32xf32>
    %c0_78 = arith.constant 0 : index
    %c0_79 = arith.constant 0 : index
    %206 = vector.load %arg7[%c0_78, %c0_79] : memref<1x32xf32, #tpu.memory_space<vmem>>, vector<1x32xf32>
    %207 = vector.broadcast %206 : vector<1x32xf32> to vector<16x32xf32>
    %208 = arith.addf %205, %207 : vector<16x32xf32>
    %209 = arith.addf %194, %208 : vector<16x32xf32>
    %210 = vector.extract_strided_slice %209 {offsets = [0, 0], sizes = [8, 32], strides = [1, 1]} : vector<16x32xf32> to vector<8x32xf32>
    %c0_80 = arith.constant 0 : index
    %c0_81 = arith.constant 0 : index
    %c0_82 = arith.constant 0 : index
    %211 = vector.load %arg8[%c0_80, %c0_81, %c0_82] : memref<8x2x32xf32, #tpu.memory_space<vmem>>, vector<8x1x32xf32>
    %212 = vector.shape_cast %211 : vector<8x1x32xf32> to vector<8x32xf32>
    %213 = vector.shape_cast %210 : vector<8x32xf32> to vector<8x1x32xf32>
    tpu.vector_store %arg8[%c0_80, %c0_81, %c0_82], %213 {strides = array<i32>} : memref<8x2x32xf32, #tpu.memory_space<vmem>>, vector<8x1x32xf32>,
    %214 = vector.extract_strided_slice %209 {offsets = [8, 0], sizes = [8, 32], strides = [1, 1]} : vector<16x32xf32> to vector<8x32xf32>
    %c0_83 = arith.constant 0 : index
    %c1_84 = arith.constant 1 : index
    %c0_85 = arith.constant 0 : index
    %215 = vector.load %arg8[%c0_83, %c1_84, %c0_85] : memref<8x2x32xf32, #tpu.memory_space<vmem>>, vector<8x1x32xf32>
    %216 = vector.shape_cast %215 : vector<8x1x32xf32> to vector<8x32xf32>
    %217 = vector.shape_cast %214 : vector<8x32xf32> to vector<8x1x32xf32>
    tpu.vector_store %arg8[%c0_83, %c1_84, %c0_85], %217 {strides = array<i32>} : memref<8x2x32xf32, #tpu.memory_space<vmem>>, vector<8x1x32xf32>,
    return
  }
  func.func @transform_0(%arg0: i32) -> (i32, i32, i32) {
    %c0_i32 = arith.constant 0 : i32
    %c0_i32_0 = arith.constant 0 : i32
    %c0_i32_1 = arith.constant 0 : i32
    return %c0_i32, %arg0, %c0_i32_0 : i32, i32, i32
  }
  func.func @transform_1(%arg0: i32) -> (i32, i32) {
    %c0_i32 = arith.constant 0 : i32
    %c0_i32_0 = arith.constant 0 : i32
    %c0_i32_1 = arith.constant 0 : i32
    return %c0_i32, %c0_i32_0 : i32, i32
  }
  func.func @transform_2(%arg0: i32) -> (i32, i32) {
    %c0_i32 = arith.constant 0 : i32
    %c0_i32_0 = arith.constant 0 : i32
    %c0_i32_1 = arith.constant 0 : i32
    return %c0_i32, %c0_i32_0 : i32, i32
  }
  func.func @transform_3(%arg0: i32) -> (i32, i32) {
    %c0_i32 = arith.constant 0 : i32
    %c0_i32_0 = arith.constant 0 : i32
    %c0_i32_1 = arith.constant 0 : i32
    return %c0_i32, %c0_i32_0 : i32, i32
  }
  func.func @transform_4(%arg0: i32) -> (i32, i32) {
    %c0_i32 = arith.constant 0 : i32
    %c0_i32_0 = arith.constant 0 : i32
    %c0_i32_1 = arith.constant 0 : i32
    return %c0_i32, %c0_i32_0 : i32, i32
  }
  func.func @transform_5(%arg0: i32) -> (i32, i32) {
    %c0_i32 = arith.constant 0 : i32
    %c0_i32_0 = arith.constant 0 : i32
    %c0_i32_1 = arith.constant 0 : i32
    return %c0_i32, %c0_i32_0 : i32, i32
  }
  func.func @transform_6(%arg0: i32) -> (i32, i32) {
    %c0_i32 = arith.constant 0 : i32
    %c0_i32_0 = arith.constant 0 : i32
    %c0_i32_1 = arith.constant 0 : i32
    return %c0_i32, %c0_i32_0 : i32, i32
  }
  func.func @transform_7(%arg0: i32) -> (i32, i32, i32) {
    %c0_i32 = arith.constant 0 : i32
    %c0_i32_0 = arith.constant 0 : i32
    %c0_i32_1 = arith.constant 0 : i32
    return %c0_i32, %arg0, %c0_i32_0 : i32, i32, i32
  }
}

module attributes {stable_mosaic.version = 11 : i64} {
  func.func @_sattention_kernel(%arg0: i32, %arg1: memref<8x2x32xf32, #tpu.memory_space<vmem>>, %arg2: memref<32x96xbf16, #tpu.memory_space<vmem>>, %arg3: memref<4x32xf32, #tpu.memory_space<vmem>>, %arg4: memref<32x32xbf16, #tpu.memory_space<vmem>>, %arg5: memref<1x32xf32, #tpu.memory_space<vmem>>, %arg6: memref<32x32xbf16, #tpu.memory_space<vmem>>, %arg7: memref<1x32xf32, #tpu.memory_space<vmem>>, %arg8: memref<8x2x32xf32, #tpu.memory_space<vmem>>, %arg9: memref<16x32xf32, #tpu.memory_space<vmem>>) attributes {dimension_semantics = [#tpu.dimension_semantics<parallel>], iteration_bounds = array<i64: 1>, scalar_prefetch = 0 : i64, scratch_operands = 1 : i64, tpu.core_type = #tpu.core_type<tc>, window_params = [{transform_indices = @transform_0, window_bounds = array<i64: 8, 2, 32>}, {pipeline_mode = #tpu.pipeline_mode<synchronous>, transform_indices = @transform_1, window_bounds = array<i64: 32, 96>}, {pipeline_mode = #tpu.pipeline_mode<synchronous>, transform_indices = @transform_2, window_bounds = array<i64: 4, 32>}, {pipeline_mode = #tpu.pipeline_mode<synchronous>, transform_indices = @transform_3, window_bounds = array<i64: 32, 32>}, {pipeline_mode = #tpu.pipeline_mode<synchronous>, transform_indices = @transform_4, window_bounds = array<i64: 1, 32>}, {pipeline_mode = #tpu.pipeline_mode<synchronous>, transform_indices = @transform_5, window_bounds = array<i64: 32, 32>}, {pipeline_mode = #tpu.pipeline_mode<synchronous>, transform_indices = @transform_6, window_bounds = array<i64: 1, 32>}, {transform_indices = @transform_7, window_bounds = array<i64: 8, 2, 32>}]} {
    %c0 = arith.constant 0 : index
    %c0_0 = arith.constant 0 : index
    %0 = vector.load %arg3[%c0, %c0_0] : memref<4x32xf32, #tpu.memory_space<vmem>>, vector<1x32xf32>
    %c1 = arith.constant 1 : index
    %c0_1 = arith.constant 0 : index
    %1 = vector.load %arg3[%c1, %c0_1] : memref<4x32xf32, #tpu.memory_space<vmem>>, vector<1x32xf32>
    %c2 = arith.constant 2 : index
    %c0_2 = arith.constant 0 : index
    %2 = vector.load %arg3[%c2, %c0_2] : memref<4x32xf32, #tpu.memory_space<vmem>>, vector<1x32xf32>
    %c3 = arith.constant 3 : index
    %c0_3 = arith.constant 0 : index
    %3 = vector.load %arg3[%c3, %c0_3] : memref<4x32xf32, #tpu.memory_space<vmem>>, vector<1x32xf32>
    %c0_4 = arith.constant 0 : index
    %c0_5 = arith.constant 0 : index
    %c0_6 = arith.constant 0 : index
    %4 = vector.load %arg1[%c0_4, %c0_5, %c0_6] : memref<8x2x32xf32, #tpu.memory_space<vmem>>, vector<8x1x32xf32>
    %5 = vector.shape_cast %4 : vector<8x1x32xf32> to vector<8x32xf32>
    %c0_7 = arith.constant 0 : index
    %c1_8 = arith.constant 1 : index
    %c0_9 = arith.constant 0 : index
    %6 = vector.load %arg1[%c0_7, %c1_8, %c0_9] : memref<8x2x32xf32, #tpu.memory_space<vmem>>, vector<8x1x32xf32>
    %7 = vector.shape_cast %6 : vector<8x1x32xf32> to vector<8x32xf32>
    %8 = tpu.concatenate %5, %7 in 0 : vector<8x32xf32>, vector<8x32xf32> -> vector<16x32xf32>
    %cst = arith.constant dense<0.000000e+00> : vector<16xf32>
    %9 = vector.multi_reduction <add>, %8, %cst [1] : vector<16x32xf32> to vector<16xf32>
    %10 = vector.shape_cast %9 : vector<16xf32> to vector<16x1xf32>
    %cst_10 = arith.constant 3.200000e+01 : f32
    %11 = vector.broadcast %cst_10 : f32 to vector<16x1xf32>
    %12 = arith.divf %10, %11 : vector<16x1xf32>
    %13 = vector.broadcast %12 : vector<16x1xf32> to vector<16x32xf32>
    %14 = arith.subf %8, %13 : vector<16x32xf32>
    %15 = arith.mulf %14, %14 : vector<16x32xf32>
    %cst_11 = arith.constant dense<0.000000e+00> : vector<16xf32>
    %16 = vector.multi_reduction <add>, %15, %cst_11 [1] : vector<16x32xf32> to vector<16xf32>
    %17 = vector.shape_cast %16 : vector<16xf32> to vector<16x1xf32>
    %cst_12 = arith.constant 3.200000e+01 : f32
    %18 = vector.broadcast %cst_12 : f32 to vector<16x1xf32>
    %19 = arith.divf %17, %18 : vector<16x1xf32>
    %20 = vector.broadcast %12 : vector<16x1xf32> to vector<16x32xf32>
    %21 = arith.subf %8, %20 : vector<16x32xf32>
    %cst_13 = arith.constant 9.99999974E-6 : f32
    %22 = vector.broadcast %cst_13 : f32 to vector<16x1xf32>
    %23 = arith.addf %19, %22 : vector<16x1xf32>
    %24 = math.rsqrt %23 : vector<16x1xf32>
    %25 = vector.broadcast %24 : vector<16x1xf32> to vector<16x32xf32>
    %26 = arith.mulf %21, %25 : vector<16x32xf32>
    %27 = vector.broadcast %0 : vector<1x32xf32> to vector<16x32xf32>
    %28 = arith.mulf %26, %27 : vector<16x32xf32>
    %29 = vector.broadcast %1 : vector<1x32xf32> to vector<16x32xf32>
    %30 = arith.addf %28, %29 : vector<16x32xf32>
    %31 = arith.truncf %30 : vector<16x32xf32> to vector<16x32xbf16>
    %c0_14 = arith.constant 0 : index
    %c0_15 = arith.constant 0 : index
    %32 = vector.load %arg2[%c0_14, %c0_15] : memref<32x96xbf16, #tpu.memory_space<vmem>>, vector<32x96xbf16>
    %cst_16 = arith.constant dense<0.000000e+00> : vector<16x96xf32>
    %33 = tpu.matmul %31, %32, %cst_16 {dimension_numbers = #tpu.dot_dimension_numbers<[1], [0], [0], [1], [0, 0, 1, 1], [], []>} : vector<16x32xbf16>, vector<32x96xbf16>, vector<16x96xf32> -> vector<16x96xf32>
    %34 = arith.truncf %33 : vector<16x96xf32> to vector<16x96xbf16>
    %35 = vector.extract_strided_slice %34 {offsets = [0, 0], sizes = [8, 8], strides = [1, 1]} : vector<16x96xbf16> to vector<8x8xbf16>
    %36 = vector.extract_strided_slice %34 {offsets = [0, 32], sizes = [8, 8], strides = [1, 1]} : vector<16x96xbf16> to vector<8x8xbf16>
    %37 = vector.extract_strided_slice %34 {offsets = [0, 64], sizes = [8, 8], strides = [1, 1]} : vector<16x96xbf16> to vector<8x8xbf16>
    %cst_17 = arith.constant dense<0.000000e+00> : vector<8x8xf32>
    %38 = tpu.matmul %35, %36, %cst_17 {dimension_numbers = #tpu.dot_dimension_numbers<[1], [1], [0], [0], [0, 0, 1, 0], [], []>} : vector<8x8xbf16>, vector<8x8xbf16>, vector<8x8xf32> -> vector<8x8xf32>
    %cst_18 = arith.constant dense<0xFF800000> : vector<8xf32>
    %39 = vector.multi_reduction <maximumf>, %38, %cst_18 [1] : vector<8x8xf32> to vector<8xf32>
    %40 = vector.shape_cast %39 : vector<8xf32> to vector<8x1xf32>
    %41 = vector.broadcast %40 : vector<8x1xf32> to vector<8x8xf32>
    %42 = arith.subf %38, %41 : vector<8x8xf32>
    %43 = math.exp %42 : vector<8x8xf32>
    %cst_19 = arith.constant dense<0.000000e+00> : vector<8xf32>
    %44 = vector.multi_reduction <add>, %43, %cst_19 [1] : vector<8x8xf32> to vector<8xf32>
    %45 = vector.shape_cast %44 : vector<8xf32> to vector<8x1xf32>
    %46 = tpu.reciprocal %45 {approx = true} : vector<8x1xf32> -> vector<8x1xf32>
    %47 = vector.broadcast %46 : vector<8x1xf32> to vector<8x8xf32>
    %48 = arith.mulf %43, %47 : vector<8x8xf32>
    %49 = arith.truncf %48 : vector<8x8xf32> to vector<8x8xbf16>
    %cst_20 = arith.constant dense<0.000000e+00> : vector<8x8xf32>
    %50 = tpu.matmul %49, %37, %cst_20 {dimension_numbers = #tpu.dot_dimension_numbers<[1], [0], [0], [1], [0, 0, 1, 1], [], []>} : vector<8x8xbf16>, vector<8x8xbf16>, vector<8x8xf32> -> vector<8x8xf32>
    %c0_21 = arith.constant 0 : index
    %c0_22 = arith.constant 0 : index
    %51 = vector.load %arg9[%c0_21, %c0_22] : memref<16x32xf32, #tpu.memory_space<vmem>>, vector<8x8xf32>
    tpu.vector_store %arg9[%c0_21, %c0_22], %50 {strides = array<i32>} : memref<16x32xf32, #tpu.memory_space<vmem>>, vector<8x8xf32>,
    %52 = vector.extract_strided_slice %34 {offsets = [0, 8], sizes = [8, 8], strides = [1, 1]} : vector<16x96xbf16> to vector<8x8xbf16>
    %53 = vector.extract_strided_slice %34 {offsets = [0, 40], sizes = [8, 8], strides = [1, 1]} : vector<16x96xbf16> to vector<8x8xbf16>
    %54 = vector.extract_strided_slice %34 {offsets = [0, 72], sizes = [8, 8], strides = [1, 1]} : vector<16x96xbf16> to vector<8x8xbf16>
    %cst_23 = arith.constant dense<0.000000e+00> : vector<8x8xf32>
    %55 = tpu.matmul %52, %53, %cst_23 {dimension_numbers = #tpu.dot_dimension_numbers<[1], [1], [0], [0], [0, 0, 1, 0], [], []>} : vector<8x8xbf16>, vector<8x8xbf16>, vector<8x8xf32> -> vector<8x8xf32>
    %cst_24 = arith.constant dense<0xFF800000> : vector<8xf32>
    %56 = vector.multi_reduction <maximumf>, %55, %cst_24 [1] : vector<8x8xf32> to vector<8xf32>
    %57 = vector.shape_cast %56 : vector<8xf32> to vector<8x1xf32>
    %58 = vector.broadcast %57 : vector<8x1xf32> to vector<8x8xf32>
    %59 = arith.subf %55, %58 : vector<8x8xf32>
    %60 = math.exp %59 : vector<8x8xf32>
    %cst_25 = arith.constant dense<0.000000e+00> : vector<8xf32>
    %61 = vector.multi_reduction <add>, %60, %cst_25 [1] : vector<8x8xf32> to vector<8xf32>
    %62 = vector.shape_cast %61 : vector<8xf32> to vector<8x1xf32>
    %63 = tpu.reciprocal %62 {approx = true} : vector<8x1xf32> -> vector<8x1xf32>
    %64 = vector.broadcast %63 : vector<8x1xf32> to vector<8x8xf32>
    %65 = arith.mulf %60, %64 : vector<8x8xf32>
    %66 = arith.truncf %65 : vector<8x8xf32> to vector<8x8xbf16>
    %cst_26 = arith.constant dense<0.000000e+00> : vector<8x8xf32>
    %67 = tpu.matmul %66, %54, %cst_26 {dimension_numbers = #tpu.dot_dimension_numbers<[1], [0], [0], [1], [0, 0, 1, 1], [], []>} : vector<8x8xbf16>, vector<8x8xbf16>, vector<8x8xf32> -> vector<8x8xf32>
    %c0_27 = arith.constant 0 : index
    %c8 = arith.constant 8 : index
    %68 = vector.load %arg9[%c0_27, %c8] : memref<16x32xf32, #tpu.memory_space<vmem>>, vector<8x8xf32>
    tpu.vector_store %arg9[%c0_27, %c8], %67 {strides = array<i32>} : memref<16x32xf32, #tpu.memory_space<vmem>>, vector<8x8xf32>,
    %69 = vector.extract_strided_slice %34 {offsets = [0, 16], sizes = [8, 8], strides = [1, 1]} : vector<16x96xbf16> to vector<8x8xbf16>
    %70 = vector.extract_strided_slice %34 {offsets = [0, 48], sizes = [8, 8], strides = [1, 1]} : vector<16x96xbf16> to vector<8x8xbf16>
    %71 = vector.extract_strided_slice %34 {offsets = [0, 80], sizes = [8, 8], strides = [1, 1]} : vector<16x96xbf16> to vector<8x8xbf16>
    %cst_28 = arith.constant dense<0.000000e+00> : vector<8x8xf32>
    %72 = tpu.matmul %69, %70, %cst_28 {dimension_numbers = #tpu.dot_dimension_numbers<[1], [1], [0], [0], [0, 0, 1, 0], [], []>} : vector<8x8xbf16>, vector<8x8xbf16>, vector<8x8xf32> -> vector<8x8xf32>
    %cst_29 = arith.constant dense<0xFF800000> : vector<8xf32>
    %73 = vector.multi_reduction <maximumf>, %72, %cst_29 [1] : vector<8x8xf32> to vector<8xf32>
    %74 = vector.shape_cast %73 : vector<8xf32> to vector<8x1xf32>
    %75 = vector.broadcast %74 : vector<8x1xf32> to vector<8x8xf32>
    %76 = arith.subf %72, %75 : vector<8x8xf32>
    %77 = math.exp %76 : vector<8x8xf32>
    %cst_30 = arith.constant dense<0.000000e+00> : vector<8xf32>
    %78 = vector.multi_reduction <add>, %77, %cst_30 [1] : vector<8x8xf32> to vector<8xf32>
    %79 = vector.shape_cast %78 : vector<8xf32> to vector<8x1xf32>
    %80 = tpu.reciprocal %79 {approx = true} : vector<8x1xf32> -> vector<8x1xf32>
    %81 = vector.broadcast %80 : vector<8x1xf32> to vector<8x8xf32>
    %82 = arith.mulf %77, %81 : vector<8x8xf32>
    %83 = arith.truncf %82 : vector<8x8xf32> to vector<8x8xbf16>
    %cst_31 = arith.constant dense<0.000000e+00> : vector<8x8xf32>
    %84 = tpu.matmul %83, %71, %cst_31 {dimension_numbers = #tpu.dot_dimension_numbers<[1], [0], [0], [1], [0, 0, 1, 1], [], []>} : vector<8x8xbf16>, vector<8x8xbf16>, vector<8x8xf32> -> vector<8x8xf32>
    %c0_32 = arith.constant 0 : index
    %c16 = arith.constant 16 : index
    %85 = vector.load %arg9[%c0_32, %c16] : memref<16x32xf32, #tpu.memory_space<vmem>>, vector<8x8xf32>
    tpu.vector_store %arg9[%c0_32, %c16], %84 {strides = array<i32>} : memref<16x32xf32, #tpu.memory_space<vmem>>, vector<8x8xf32>,
    %86 = vector.extract_strided_slice %34 {offsets = [0, 24], sizes = [8, 8], strides = [1, 1]} : vector<16x96xbf16> to vector<8x8xbf16>
    %87 = vector.extract_strided_slice %34 {offsets = [0, 56], sizes = [8, 8], strides = [1, 1]} : vector<16x96xbf16> to vector<8x8xbf16>
    %88 = vector.extract_strided_slice %34 {offsets = [0, 88], sizes = [8, 8], strides = [1, 1]} : vector<16x96xbf16> to vector<8x8xbf16>
    %cst_33 = arith.constant dense<0.000000e+00> : vector<8x8xf32>
    %89 = tpu.matmul %86, %87, %cst_33 {dimension_numbers = #tpu.dot_dimension_numbers<[1], [1], [0], [0], [0, 0, 1, 0], [], []>} : vector<8x8xbf16>, vector<8x8xbf16>, vector<8x8xf32> -> vector<8x8xf32>
    %cst_34 = arith.constant dense<0xFF800000> : vector<8xf32>
    %90 = vector.multi_reduction <maximumf>, %89, %cst_34 [1] : vector<8x8xf32> to vector<8xf32>
    %91 = vector.shape_cast %90 : vector<8xf32> to vector<8x1xf32>
    %92 = vector.broadcast %91 : vector<8x1xf32> to vector<8x8xf32>
    %93 = arith.subf %89, %92 : vector<8x8xf32>
    %94 = math.exp %93 : vector<8x8xf32>
    %cst_35 = arith.constant dense<0.000000e+00> : vector<8xf32>
    %95 = vector.multi_reduction <add>, %94, %cst_35 [1] : vector<8x8xf32> to vector<8xf32>
    %96 = vector.shape_cast %95 : vector<8xf32> to vector<8x1xf32>
    %97 = tpu.reciprocal %96 {approx = true} : vector<8x1xf32> -> vector<8x1xf32>
    %98 = vector.broadcast %97 : vector<8x1xf32> to vector<8x8xf32>
    %99 = arith.mulf %94, %98 : vector<8x8xf32>
    %100 = arith.truncf %99 : vector<8x8xf32> to vector<8x8xbf16>
    %cst_36 = arith.constant dense<0.000000e+00> : vector<8x8xf32>
    %101 = tpu.matmul %100, %88, %cst_36 {dimension_numbers = #tpu.dot_dimension_numbers<[1], [0], [0], [1], [0, 0, 1, 1], [], []>} : vector<8x8xbf16>, vector<8x8xbf16>, vector<8x8xf32> -> vector<8x8xf32>
    %c0_37 = arith.constant 0 : index
    %c24 = arith.constant 24 : index
    %102 = vector.load %arg9[%c0_37, %c24] : memref<16x32xf32, #tpu.memory_space<vmem>>, vector<8x8xf32>
    tpu.vector_store %arg9[%c0_37, %c24], %101 {strides = array<i32>} : memref<16x32xf32, #tpu.memory_space<vmem>>, vector<8x8xf32>,
    %103 = vector.extract_strided_slice %34 {offsets = [8, 0], sizes = [8, 8], strides = [1, 1]} : vector<16x96xbf16> to vector<8x8xbf16>
    %104 = vector.extract_strided_slice %34 {offsets = [8, 32], sizes = [8, 8], strides = [1, 1]} : vector<16x96xbf16> to vector<8x8xbf16>
    %105 = vector.extract_strided_slice %34 {offsets = [8, 64], sizes = [8, 8], strides = [1, 1]} : vector<16x96xbf16> to vector<8x8xbf16>
    %cst_38 = arith.constant dense<0.000000e+00> : vector<8x8xf32>
    %106 = tpu.matmul %103, %104, %cst_38 {dimension_numbers = #tpu.dot_dimension_numbers<[1], [1], [0], [0], [0, 0, 1, 0], [], []>} : vector<8x8xbf16>, vector<8x8xbf16>, vector<8x8xf32> -> vector<8x8xf32>
    %cst_39 = arith.constant dense<0xFF800000> : vector<8xf32>
    %107 = vector.multi_reduction <maximumf>, %106, %cst_39 [1] : vector<8x8xf32> to vector<8xf32>
    %108 = vector.shape_cast %107 : vector<8xf32> to vector<8x1xf32>
    %109 = vector.broadcast %108 : vector<8x1xf32> to vector<8x8xf32>
    %110 = arith.subf %106, %109 : vector<8x8xf32>
    %111 = math.exp %110 : vector<8x8xf32>
    %cst_40 = arith.constant dense<0.000000e+00> : vector<8xf32>
    %112 = vector.multi_reduction <add>, %111, %cst_40 [1] : vector<8x8xf32> to vector<8xf32>
    %113 = vector.shape_cast %112 : vector<8xf32> to vector<8x1xf32>
    %114 = tpu.reciprocal %113 {approx = true} : vector<8x1xf32> -> vector<8x1xf32>
    %115 = vector.broadcast %114 : vector<8x1xf32> to vector<8x8xf32>
    %116 = arith.mulf %111, %115 : vector<8x8xf32>
    %117 = arith.truncf %116 : vector<8x8xf32> to vector<8x8xbf16>
    %cst_41 = arith.constant dense<0.000000e+00> : vector<8x8xf32>
    %118 = tpu.matmul %117, %105, %cst_41 {dimension_numbers = #tpu.dot_dimension_numbers<[1], [0], [0], [1], [0, 0, 1, 1], [], []>} : vector<8x8xbf16>, vector<8x8xbf16>, vector<8x8xf32> -> vector<8x8xf32>
    %c8_42 = arith.constant 8 : index
    %c0_43 = arith.constant 0 : index
    %119 = vector.load %arg9[%c8_42, %c0_43] : memref<16x32xf32, #tpu.memory_space<vmem>>, vector<8x8xf32>
    tpu.vector_store %arg9[%c8_42, %c0_43], %118 {strides = array<i32>} : memref<16x32xf32, #tpu.memory_space<vmem>>, vector<8x8xf32>,
    %120 = vector.extract_strided_slice %34 {offsets = [8, 8], sizes = [8, 8], strides = [1, 1]} : vector<16x96xbf16> to vector<8x8xbf16>
    %121 = vector.extract_strided_slice %34 {offsets = [8, 40], sizes = [8, 8], strides = [1, 1]} : vector<16x96xbf16> to vector<8x8xbf16>
    %122 = vector.extract_strided_slice %34 {offsets = [8, 72], sizes = [8, 8], strides = [1, 1]} : vector<16x96xbf16> to vector<8x8xbf16>
    %cst_44 = arith.constant dense<0.000000e+00> : vector<8x8xf32>
    %123 = tpu.matmul %120, %121, %cst_44 {dimension_numbers = #tpu.dot_dimension_numbers<[1], [1], [0], [0], [0, 0, 1, 0], [], []>} : vector<8x8xbf16>, vector<8x8xbf16>, vector<8x8xf32> -> vector<8x8xf32>
    %cst_45 = arith.constant dense<0xFF800000> : vector<8xf32>
    %124 = vector.multi_reduction <maximumf>, %123, %cst_45 [1] : vector<8x8xf32> to vector<8xf32>
    %125 = vector.shape_cast %124 : vector<8xf32> to vector<8x1xf32>
    %126 = vector.broadcast %125 : vector<8x1xf32> to vector<8x8xf32>
    %127 = arith.subf %123, %126 : vector<8x8xf32>
    %128 = math.exp %127 : vector<8x8xf32>
    %cst_46 = arith.constant dense<0.000000e+00> : vector<8xf32>
    %129 = vector.multi_reduction <add>, %128, %cst_46 [1] : vector<8x8xf32> to vector<8xf32>
    %130 = vector.shape_cast %129 : vector<8xf32> to vector<8x1xf32>
    %131 = tpu.reciprocal %130 {approx = true} : vector<8x1xf32> -> vector<8x1xf32>
    %132 = vector.broadcast %131 : vector<8x1xf32> to vector<8x8xf32>
    %133 = arith.mulf %128, %132 : vector<8x8xf32>
    %134 = arith.truncf %133 : vector<8x8xf32> to vector<8x8xbf16>
    %cst_47 = arith.constant dense<0.000000e+00> : vector<8x8xf32>
    %135 = tpu.matmul %134, %122, %cst_47 {dimension_numbers = #tpu.dot_dimension_numbers<[1], [0], [0], [1], [0, 0, 1, 1], [], []>} : vector<8x8xbf16>, vector<8x8xbf16>, vector<8x8xf32> -> vector<8x8xf32>
    %c8_48 = arith.constant 8 : index
    %c8_49 = arith.constant 8 : index
    %136 = vector.load %arg9[%c8_48, %c8_49] : memref<16x32xf32, #tpu.memory_space<vmem>>, vector<8x8xf32>
    tpu.vector_store %arg9[%c8_48, %c8_49], %135 {strides = array<i32>} : memref<16x32xf32, #tpu.memory_space<vmem>>, vector<8x8xf32>,
    %137 = vector.extract_strided_slice %34 {offsets = [8, 16], sizes = [8, 8], strides = [1, 1]} : vector<16x96xbf16> to vector<8x8xbf16>
    %138 = vector.extract_strided_slice %34 {offsets = [8, 48], sizes = [8, 8], strides = [1, 1]} : vector<16x96xbf16> to vector<8x8xbf16>
    %139 = vector.extract_strided_slice %34 {offsets = [8, 80], sizes = [8, 8], strides = [1, 1]} : vector<16x96xbf16> to vector<8x8xbf16>
    %cst_50 = arith.constant dense<0.000000e+00> : vector<8x8xf32>
    %140 = tpu.matmul %137, %138, %cst_50 {dimension_numbers = #tpu.dot_dimension_numbers<[1], [1], [0], [0], [0, 0, 1, 0], [], []>} : vector<8x8xbf16>, vector<8x8xbf16>, vector<8x8xf32> -> vector<8x8xf32>
    %cst_51 = arith.constant dense<0xFF800000> : vector<8xf32>
    %141 = vector.multi_reduction <maximumf>, %140, %cst_51 [1] : vector<8x8xf32> to vector<8xf32>
    %142 = vector.shape_cast %141 : vector<8xf32> to vector<8x1xf32>
    %143 = vector.broadcast %142 : vector<8x1xf32> to vector<8x8xf32>
    %144 = arith.subf %140, %143 : vector<8x8xf32>
    %145 = math.exp %144 : vector<8x8xf32>
    %cst_52 = arith.constant dense<0.000000e+00> : vector<8xf32>
    %146 = vector.multi_reduction <add>, %145, %cst_52 [1] : vector<8x8xf32> to vector<8xf32>
    %147 = vector.shape_cast %146 : vector<8xf32> to vector<8x1xf32>
    %148 = tpu.reciprocal %147 {approx = true} : vector<8x1xf32> -> vector<8x1xf32>
    %149 = vector.broadcast %148 : vector<8x1xf32> to vector<8x8xf32>
    %150 = arith.mulf %145, %149 : vector<8x8xf32>
    %151 = arith.truncf %150 : vector<8x8xf32> to vector<8x8xbf16>
    %cst_53 = arith.constant dense<0.000000e+00> : vector<8x8xf32>
    %152 = tpu.matmul %151, %139, %cst_53 {dimension_numbers = #tpu.dot_dimension_numbers<[1], [0], [0], [1], [0, 0, 1, 1], [], []>} : vector<8x8xbf16>, vector<8x8xbf16>, vector<8x8xf32> -> vector<8x8xf32>
    %c8_54 = arith.constant 8 : index
    %c16_55 = arith.constant 16 : index
    %153 = vector.load %arg9[%c8_54, %c16_55] : memref<16x32xf32, #tpu.memory_space<vmem>>, vector<8x8xf32>
    tpu.vector_store %arg9[%c8_54, %c16_55], %152 {strides = array<i32>} : memref<16x32xf32, #tpu.memory_space<vmem>>, vector<8x8xf32>,
    %154 = vector.extract_strided_slice %34 {offsets = [8, 24], sizes = [8, 8], strides = [1, 1]} : vector<16x96xbf16> to vector<8x8xbf16>
    %155 = vector.extract_strided_slice %34 {offsets = [8, 56], sizes = [8, 8], strides = [1, 1]} : vector<16x96xbf16> to vector<8x8xbf16>
    %156 = vector.extract_strided_slice %34 {offsets = [8, 88], sizes = [8, 8], strides = [1, 1]} : vector<16x96xbf16> to vector<8x8xbf16>
    %cst_56 = arith.constant dense<0.000000e+00> : vector<8x8xf32>
    %157 = tpu.matmul %154, %155, %cst_56 {dimension_numbers = #tpu.dot_dimension_numbers<[1], [1], [0], [0], [0, 0, 1, 0], [], []>} : vector<8x8xbf16>, vector<8x8xbf16>, vector<8x8xf32> -> vector<8x8xf32>
    %cst_57 = arith.constant dense<0xFF800000> : vector<8xf32>
    %158 = vector.multi_reduction <maximumf>, %157, %cst_57 [1] : vector<8x8xf32> to vector<8xf32>
    %159 = vector.shape_cast %158 : vector<8xf32> to vector<8x1xf32>
    %160 = vector.broadcast %159 : vector<8x1xf32> to vector<8x8xf32>
    %161 = arith.subf %157, %160 : vector<8x8xf32>
    %162 = math.exp %161 : vector<8x8xf32>
    %cst_58 = arith.constant dense<0.000000e+00> : vector<8xf32>
    %163 = vector.multi_reduction <add>, %162, %cst_58 [1] : vector<8x8xf32> to vector<8xf32>
    %164 = vector.shape_cast %163 : vector<8xf32> to vector<8x1xf32>
    %165 = tpu.reciprocal %164 {approx = true} : vector<8x1xf32> -> vector<8x1xf32>
    %166 = vector.broadcast %165 : vector<8x1xf32> to vector<8x8xf32>
    %167 = arith.mulf %162, %166 : vector<8x8xf32>
    %168 = arith.truncf %167 : vector<8x8xf32> to vector<8x8xbf16>
    %cst_59 = arith.constant dense<0.000000e+00> : vector<8x8xf32>
    %169 = tpu.matmul %168, %156, %cst_59 {dimension_numbers = #tpu.dot_dimension_numbers<[1], [0], [0], [1], [0, 0, 1, 1], [], []>} : vector<8x8xbf16>, vector<8x8xbf16>, vector<8x8xf32> -> vector<8x8xf32>
    %c8_60 = arith.constant 8 : index
    %c24_61 = arith.constant 24 : index
    %170 = vector.load %arg9[%c8_60, %c24_61] : memref<16x32xf32, #tpu.memory_space<vmem>>, vector<8x8xf32>
    tpu.vector_store %arg9[%c8_60, %c24_61], %169 {strides = array<i32>} : memref<16x32xf32, #tpu.memory_space<vmem>>, vector<8x8xf32>,
    %c0_62 = arith.constant 0 : index
    %c0_63 = arith.constant 0 : index
    %171 = vector.load %arg9[%c0_62, %c0_63] : memref<16x32xf32, #tpu.memory_space<vmem>>, vector<16x32xf32>
    %172 = arith.addf %30, %171 : vector<16x32xf32>
    %cst_64 = arith.constant dense<0.000000e+00> : vector<16xf32>
    %173 = vector.multi_reduction <add>, %172, %cst_64 [1] : vector<16x32xf32> to vector<16xf32>
    %174 = vector.shape_cast %173 : vector<16xf32> to vector<16x1xf32>
    %cst_65 = arith.constant 3.200000e+01 : f32
    %175 = vector.broadcast %cst_65 : f32 to vector<16x1xf32>
    %176 = arith.divf %174, %175 : vector<16x1xf32>
    %177 = vector.broadcast %176 : vector<16x1xf32> to vector<16x32xf32>
    %178 = arith.subf %172, %177 : vector<16x32xf32>
    %179 = arith.mulf %178, %178 : vector<16x32xf32>
    %cst_66 = arith.constant dense<0.000000e+00> : vector<16xf32>
    %180 = vector.multi_reduction <add>, %179, %cst_66 [1] : vector<16x32xf32> to vector<16xf32>
    %181 = vector.shape_cast %180 : vector<16xf32> to vector<16x1xf32>
    %cst_67 = arith.constant 3.200000e+01 : f32
    %182 = vector.broadcast %cst_67 : f32 to vector<16x1xf32>
    %183 = arith.divf %181, %182 : vector<16x1xf32>
    %184 = vector.broadcast %176 : vector<16x1xf32> to vector<16x32xf32>
    %185 = arith.subf %172, %184 : vector<16x32xf32>
    %cst_68 = arith.constant 9.99999974E-6 : f32
    %186 = vector.broadcast %cst_68 : f32 to vector<16x1xf32>
    %187 = arith.addf %183, %186 : vector<16x1xf32>
    %188 = math.rsqrt %187 : vector<16x1xf32>
    %189 = vector.broadcast %188 : vector<16x1xf32> to vector<16x32xf32>
    %190 = arith.mulf %185, %189 : vector<16x32xf32>
    %191 = vector.broadcast %2 : vector<1x32xf32> to vector<16x32xf32>
    %192 = arith.mulf %190, %191 : vector<16x32xf32>
    %193 = vector.broadcast %3 : vector<1x32xf32> to vector<16x32xf32>
    %194 = arith.addf %192, %193 : vector<16x32xf32>
    %195 = arith.truncf %194 : vector<16x32xf32> to vector<16x32xbf16>
    %c0_69 = arith.constant 0 : index
    %c0_70 = arith.constant 0 : index
    %196 = vector.load %arg4[%c0_69, %c0_70] : memref<32x32xbf16, #tpu.memory_space<vmem>>, vector<32x32xbf16>
    %cst_71 = arith.constant dense<0.000000e+00> : vector<16x32xf32>
    %197 = tpu.matmul %195, %196, %cst_71 {dimension_numbers = #tpu.dot_dimension_numbers<[1], [0], [0], [1], [0, 0, 1, 1], [], []>} : vector<16x32xbf16>, vector<32x32xbf16>, vector<16x32xf32> -> vector<16x32xf32>
    %c0_72 = arith.constant 0 : index
    %c0_73 = arith.constant 0 : index
    %198 = vector.load %arg5[%c0_72, %c0_73] : memref<1x32xf32, #tpu.memory_space<vmem>>, vector<1x32xf32>
    %199 = vector.broadcast %198 : vector<1x32xf32> to vector<16x32xf32>
    %200 = arith.addf %197, %199 : vector<16x32xf32>
    %cst_74 = arith.constant 0.000000e+00 : f32
    %201 = vector.broadcast %cst_74 : f32 to vector<16x32xf32>
    %202 = arith.maximumf %200, %201 : vector<16x32xf32>
    %203 = arith.truncf %202 : vector<16x32xf32> to vector<16x32xbf16>
    %c0_75 = arith.constant 0 : index
    %c0_76 = arith.constant 0 : index
    %204 = vector.load %arg6[%c0_75, %c0_76] : memref<32x32xbf16, #tpu.memory_space<vmem>>, vector<32x32xbf16>
    %cst_77 = arith.constant dense<0.000000e+00> : vector<16x32xf32>
    %205 = tpu.matmul %203, %204, %cst_77 {dimension_numbers = #tpu.dot_dimension_numbers<[1], [0], [0], [1], [0, 0, 1, 1], [], []>} : vector<16x32xbf16>, vector<32x32xbf16>, vector<16x32xf32> -> vector<16x32xf32>
    %c0_78 = arith.constant 0 : index
    %c0_79 = arith.constant 0 : index
    %206 = vector.load %arg7[%c0_78, %c0_79] : memref<1x32xf32, #tpu.memory_space<vmem>>, vector<1x32xf32>
    %207 = vector.broadcast %206 : vector<1x32xf32> to vector<16x32xf32>
    %208 = arith.addf %205, %207 : vector<16x32xf32>
    %209 = arith.addf %194, %208 : vector<16x32xf32>
    %210 = vector.extract_strided_slice %209 {offsets = [0, 0], sizes = [8, 32], strides = [1, 1]} : vector<16x32xf32> to vector<8x32xf32>
    %c0_80 = arith.constant 0 : index
    %c0_81 = arith.constant 0 : index
    %c0_82 = arith.constant 0 : index
    %211 = vector.load %arg8[%c0_80, %c0_81, %c0_82] : memref<8x2x32xf32, #tpu.memory_space<vmem>>, vector<8x1x32xf32>
    %212 = vector.shape_cast %211 : vector<8x1x32xf32> to vector<8x32xf32>
    %213 = vector.shape_cast %210 : vector<8x32xf32> to vector<8x1x32xf32>
    tpu.vector_store %arg8[%c0_80, %c0_81, %c0_82], %213 {strides = array<i32>} : memref<8x2x32xf32, #tpu.memory_space<vmem>>, vector<8x1x32xf32>,
    %214 = vector.extract_strided_slice %209 {offsets = [8, 0], sizes = [8, 32], strides = [1, 1]} : vector<16x32xf32> to vector<8x32xf32>
    %c0_83 = arith.constant 0 : index
    %c1_84 = arith.constant 1 : index
    %c0_85 = arith.constant 0 : index
    %215 = vector.load %arg8[%c0_83, %c1_84, %c0_85] : memref<8x2x32xf32, #tpu.memory_space<vmem>>, vector<8x1x32xf32>
    %216 = vector.shape_cast %215 : vector<8x1x32xf32> to vector<8x32xf32>
    %217 = vector.shape_cast %214 : vector<8x32xf32> to vector<8x1x32xf32>
    tpu.vector_store %arg8[%c0_83, %c1_84, %c0_85], %217 {strides = array<i32>} : memref<8x2x32xf32, #tpu.memory_space<vmem>>, vector<8x1x32xf32>,
    return
  }
  func.func @transform_0(%arg0: i32) -> (i32, i32, i32) {
    %c0_i32 = arith.constant 0 : i32
    %c0_i32_0 = arith.constant 0 : i32
    %c0_i32_1 = arith.constant 0 : i32
    return %c0_i32, %arg0, %c0_i32_0 : i32, i32, i32
  }
  func.func @transform_1(%arg0: i32) -> (i32, i32) {
    %c0_i32 = arith.constant 0 : i32
    %c0_i32_0 = arith.constant 0 : i32
    %c0_i32_1 = arith.constant 0 : i32
    return %c0_i32, %c0_i32_0 : i32, i32
  }
  func.func @transform_2(%arg0: i32) -> (i32, i32) {
    %c0_i32 = arith.constant 0 : i32
    %c0_i32_0 = arith.constant 0 : i32
    %c0_i32_1 = arith.constant 0 : i32
    return %c0_i32, %c0_i32_0 : i32, i32
  }
  func.func @transform_3(%arg0: i32) -> (i32, i32) {
    %c0_i32 = arith.constant 0 : i32
    %c0_i32_0 = arith.constant 0 : i32
    %c0_i32_1 = arith.constant 0 : i32
    return %c0_i32, %c0_i32_0 : i32, i32
  }
  func.func @transform_4(%arg0: i32) -> (i32, i32) {
    %c0_i32 = arith.constant 0 : i32
    %c0_i32_0 = arith.constant 0 : i32
    %c0_i32_1 = arith.constant 0 : i32
    return %c0_i32, %c0_i32_0 : i32, i32
  }
  func.func @transform_5(%arg0: i32) -> (i32, i32) {
    %c0_i32 = arith.constant 0 : i32
    %c0_i32_0 = arith.constant 0 : i32
    %c0_i32_1 = arith.constant 0 : i32
    return %c0_i32, %c0_i32_0 : i32, i32
  }
  func.func @transform_6(%arg0: i32) -> (i32, i32) {
    %c0_i32 = arith.constant 0 : i32
    %c0_i32_0 = arith.constant 0 : i32
    %c0_i32_1 = arith.constant 0 : i32
    return %c0_i32, %c0_i32_0 : i32, i32
  }
  func.func @transform_7(%arg0: i32) -> (i32, i32, i32) {
    %c0_i32 = arith.constant 0 : i32
    %c0_i32_0 = arith.constant 0 : i32
    %c0_i32_1 = arith.constant 0 : i32
    return %c0_i32, %arg0, %c0_i32_0 : i32, i32, i32
  }
}

</mosaic_0001>

<bundles_post_ra>
// kernel: tpu_custom_call.1
= control target key start
LH: loop header
LB: loop body
LE: loop exit
PB: predicated region body
PF: predicated region fallthrough
CT: control target
= control target key end

     0   :  { %12 = vsyncpa [#allocation4], 0  ;;  %s2251_s0 = inlined_call_operand.hbm [shape: f32[8,2,32], index: 0, kind: input, shape index: {}]   ;;  %s2252_s1 = inlined_call_operand.hbm [shape: bf16[32,96], index: 1, kind: input, shape index: {}]   ;;  %s2253_s2 = inlined_call_operand.hbm [shape: f32[4,32], index: 2, kind: input, shape index: {}]   ;;  %s2254_s3 = inlined_call_operand.hbm [shape: bf16[32,32], index: 3, kind: input, shape index: {}]   ;;  %s2255_s4 = inlined_call_operand.vmem [shape: f32[1,32], index: 4, kind: input, shape index: {}]   ;;  %s2256_s5 = inlined_call_operand.hbm [shape: bf16[32,32], index: 5, kind: input, shape index: {}]   ;;  %s2257_s6 = inlined_call_operand.vmem [shape: f32[1,32], index: 6, kind: input, shape index: {}]   ;;  %s2258_s7 = inlined_call_operand.hbm [shape: f32[8,2,32], index: 7, kind: output, shape index: {}]  }
   0x1   :  { %13 = vsyncpa [#allocation7], 0 }
   0x2   :  { %14 = vsyncpa [#allocation10], 0 }
   0x3   :  { %15 = vsyncpa [#allocation5], 0  ;;  %s1910_s24 = smov [#allocation6]  }
   0x4   :  { %s33_s25 = sshll.u32 %s1910_s24, 4  ;;  %s34_s25 = int_to_ptr.vmem [resolvable:$true] %s33_s25 }
   0x5   :  { %s1790_s26 = scalar_lea.vmem %s34_s25, 256  ;;  %p1795_p1 = scmp.lt.s32.totalorder %s34_s25, %s34_s25 }
   0x6   :  { %p1791_p0 = scmp.ne.s32.totalorder %s34_s25, %s1790_s26  ;;  %p1796_p2 = scmp.lt.s32.totalorder %s1790_s26, %s1790_s26 }
   0x8   :  { %p1797_p3 = por %p1796_p2, %p1795_p1 }
   0xa   :  { %p1798_p4 = pnand %p1797_p3, %p1791_p0 }
   0xc   :  { %1801 = shalt.err (!%p1798_p4)
}
   0xd   :  { %s1911_s27 = smov 64   ;;  %s1912_s28 = smov 4  }
   0xe   :  { %39 = dma.hbm_to_vmem [thread:$0]  %s2252_s1, 256, %s34_s25, [#allocation7], %s1911_s27, %s1911_s27, %s1912_s28  }
   0xf   :  { %s1913_s8 = smov [#allocation9]   ;;  %s1914_s10 = smov [#allocation3]  }
  0x10   :  { %s55_s9 = sshll.u32 %s1913_s8, 4  ;;  %s21_s11 = sshll.u32 %s1914_s10, 4  ;;  %s56_s9 = int_to_ptr.vmem [resolvable:$true] %s55_s9  ;;  %s22_s11 = int_to_ptr.vmem [resolvable:$true] %s21_s11 }
  0x11   :  { %s1810_s12 = scalar_lea.vmem %s56_s9, 256  ;;  %p1815_p6 = scmp.lt.s32.totalorder %s56_s9, %s56_s9 }
  0x12   :  { %p1811_p5 = scmp.ne.s32.totalorder %s56_s9, %s1810_s12  ;;  %p1816_p7 = scmp.lt.s32.totalorder %s1810_s12, %s1810_s12 }
  0x14   :  { %p1817_p8 = por %p1816_p7, %p1815_p6 }
  0x16   :  { %p1818_p9 = pnand %p1817_p8, %p1811_p5 }
  0x18   :  { %1821 = shalt.err (!%p1818_p9)
}
  0x19   :  { %61 = dma.hbm_to_vmem [thread:$0]  %s2254_s3, 256, %s56_s9, [#allocation10], %s1911_s27, %s1911_s27, %s1912_s28  }
  0x1a   :  { %s1830_s1 = scalar_lea.vmem %s22_s11, 256  ;;  %p1835_p11 = scmp.lt.s32.totalorder %s22_s11, %s22_s11 }
  0x1b   :  { %p1831_p10 = scmp.ne.s32.totalorder %s22_s11, %s1830_s1  ;;  %p1836_p12 = scmp.lt.s32.totalorder %s1830_s1, %s1830_s1 }
  0x1d   :  { %p1837_p13 = por %p1836_p12, %p1835_p11 }
  0x1f   :  { %p1838_p0 = pnand %p1837_p13, %p1831_p10 }
  0x21   :  { %1841 = shalt.err (!%p1838_p0)
}
  0x22   :  { %s1915_s15 = smov 32   ;;  %s1916_s16 = smov 2  }
  0x23   :  { %27 = dma.hbm_to_vmem [thread:$0]  %s2251_s0, 256, %s22_s11, [#allocation4], %s1915_s15, %s1915_s15, %s1916_s16  }
  0x24   :  { %s1917_s19 = smov [#allocation8]   ;;  %s1918_s3 = smov [#allocation11]  }
  0x25   :  { %s46_s20 = sshll.u32 %s1917_s19, 4  ;;  %s69_s21 = sshll.u32 %s1918_s3, 4  ;;  %s47_s20 = int_to_ptr.vmem [resolvable:$true] %s46_s20  ;;  %s70_s21 = int_to_ptr.vmem [resolvable:$true] %s69_s21 }
  0x26   :  { %s1850_s22 = scalar_lea.vmem %s47_s20, 64  ;;  %p1855_p2 = scmp.lt.s32.totalorder %s47_s20, %s47_s20 }
  0x27   :  { %p1851_p1 = scmp.ne.s32.totalorder %s47_s20, %s1850_s22  ;;  %p1856_p3 = scmp.lt.s32.totalorder %s1850_s22, %s1850_s22 }
  0x29   :  { %p1857_p4 = por %p1856_p3, %p1855_p2 }
  0x2b   :  { %p1858_p5 = pnand %p1857_p4, %p1851_p1 }
  0x2d   :  { %1861 = shalt.err (!%p1858_p5)
}
  0x2e   :  { %49 = dma.hbm_to_vmem [thread:$0]  %s2253_s2, 64, %s47_s20, [#allocation7]  }
  0x2f   :  { %s1870_s25 = scalar_lea.vmem %s70_s21, 256  ;;  %p1875_p7 = scmp.lt.s32.totalorder %s70_s21, %s70_s21 }
  0x30   :  { %p1871_p6 = scmp.ne.s32.totalorder %s70_s21, %s1870_s25  ;;  %p1876_p8 = scmp.lt.s32.totalorder %s1870_s25, %s1870_s25 }
  0x32   :  { %p1877_p9 = por %p1876_p8, %p1875_p7 }
  0x34   :  { %p1878_p10 = pnand %p1877_p9, %p1871_p6 }
  0x36   :  { %1881 = shalt.err (!%p1878_p10)
}
  0x37   :  { %75 = dma.hbm_to_vmem [thread:$0]  %s2256_s5, 256, %s70_s21, [#allocation10], %s1911_s27, %s1911_s27, %s1912_s28  }
  0x38   :  { %1902 = dma.done.wait [#allocation4], 256  }
  0x39   :  { %1903 = vsyncadd [#allocation4], 4294967040 }
  0x3a   :  { %1904 = dma.done.wait [#allocation7], 320  }
  0x3b   :  { %1905 = vsyncadd [#allocation7], 4294966976 }
  0x3c   :  { %1906 = dma.done.wait [#allocation10], 512  }
  0x3d   :  { %1907 = vsyncadd [#allocation10], 4294966784  ;;  %vm123_vm0 = vcmask 1041409   ;;  %vm126_vm1 = vcmask 1042434   ;;  %vm129_vm2 = vcmask 1043459   ;;  %vm132_vm3 = vcmask 1044484  }
  0x3e   :  { %vm135_vm4 = vcmask 1045509   ;;  %vm138_vm5 = vcmask 1046534   ;;  %vm141_vm6 = vcmask 1047559   ;;  %v98_v0 = vld [vmem:[#allocation3] sm:$0x1]  ;;  %vm167_vm7 = vcmask 261120  }
  0x3f   :  { %v99_v1 = vld [vmem:[#allocation3 + $0x2] sm:$0x1]  ;;  %v100_v2 = vld [vmem:[#allocation3 + $0x4] sm:$0x1]  ;;  %v101_v3 = vld [vmem:[#allocation3 + $0x6] sm:$0x1] }
  0x40   :  { %v102_v4 = vld [vmem:[#allocation3 + $0x8] sm:$0x1]  ;;  %v103_v5 = vld [vmem:[#allocation3 + $0xa] sm:$0x1]  ;;  %v104_v6 = vld [vmem:[#allocation3 + $0xc] sm:$0x1] }
  0x41   :  { %v105_v7 = vld [vmem:[#allocation3 + $0xe] sm:$0x1]  ;;  %v122_v8 = vrot.slane %v99_v1, 7  ;;  %v125_v9 = vrot.slane %v100_v2, 6  ;;  %v128_v10 = vrot.slane %v101_v3, 5  ;;  %v131_v11 = vrot.slane %v102_v4, 4 }
  0x42   :  { %v134_v12 = vrot.slane %v103_v5, 3  ;;  %v106_v13 = vld [vmem:[#allocation3 + $0x1] sm:$0x1]  ;;  %v137_v15 = vrot.slane %v104_v6, 2  ;;  %v140_v16 = vrot.slane %v105_v7, 1  ;;  %v1736_v56 = vld [vmem:[#allocation6 + $0x8] sm:$0xff]  }
  0x43   :  { %v124_v14 = vsel %vm123_vm0, %v122_v8, %v98_v0  ;;  %v107_v17 = vld [vmem:[#allocation3 + $0x3] sm:$0x1]  ;;  %v108_v18 = vld [vmem:[#allocation3 + $0x5] sm:$0x1]  ;;  %v109_v20 = vld [vmem:[#allocation3 + $0x7] sm:$0x1] }
  0x44   :  { %v127_v19 = vsel %vm126_vm1, %v125_v9, %v124_v14  ;;  %v110_v21 = vld [vmem:[#allocation3 + $0x9] sm:$0x1]  ;;  %v111_v22 = vld [vmem:[#allocation3 + $0xb] sm:$0x1]  ;;  %v112_v24 = vld [vmem:[#allocation3 + $0xd] sm:$0x1] }
  0x45   :  { %v130_v23 = vsel %vm129_vm2, %v128_v10, %v127_v19  ;;  %v113_v25 = vld [vmem:[#allocation3 + $0xf] sm:$0x1]  ;;  %v152_v26 = vrot.slane %v107_v17, 7  ;;  %v154_v27 = vrot.slane %v108_v18, 6  ;;  %v156_v29 = vrot.slane %v109_v20, 5  ;;  %v1737_v58 = vld [vmem:[#allocation6] sm:$0xff]  }
  0x46   :  { %v133_v28 = vsel %vm132_vm3, %v131_v11, %v130_v23  ;;  %v158_v30 = vrot.slane %v110_v21, 4  ;;  %v160_v31 = vrot.slane %v111_v22, 3  ;;  %v162_v34 = vrot.slane %v112_v24, 2  ;;  %v1518_v3 = vld [vmem:[#allocation8] ss:$0 sm:$0xff]  ;;  %s1921_s2 = smov 88  }
  0x47   :  { %v136_v32 = vsel %vm135_vm4, %v134_v12, %v133_v28  ;;  %v153_v33 = vsel %vm123_vm0, %v152_v26, %v106_v13  ;;  %v164_v35 = vrot.slane %v113_v25, 1  ;;  %v1919_v57 = vmov 0.0   ;;  %v1519_v7 = vld [vmem:[#allocation8 + $0x1] ss:$0 sm:$0xff]  ;;  %s1922_s5 = smov 96   ;;  %s1923_s28 = smov 120  }
  0x48   :  { %v139_v36 = vsel %vm138_vm5, %v137_v15, %v136_v32  ;;  %v155_v37 = vsel %vm126_vm1, %v154_v27, %v153_v33  ;;  %1590 = vmatprep.subr.bf16.mxu0 %v1919_v57  ;;  %vm1920_vm8 = vmmov 0   ;;  %1598 = vmatprep.subr.bf16.mxu1 %v1919_v57  ;;  %s1924_s29 = smov 112   ;;  %s1925_s30 = smov 80   ;;  %vm272_vm9 = vcmask 64512  }
  0x49   :  { %v142_v38 = vsel %vm141_vm6, %v140_v16, %v139_v36  ;;  %v157_v39 = vsel %vm129_vm2, %v156_v29, %v155_v37  ;;  %1594 = vmatprep.mubr.msk.bf16.mxu0 %vm1920_vm8, %v1919_v57  ;;  %1591 = vmatpush3.bf16.msra.mxu0 %v1736_v56  ;;  %s1926_s8 = smov 104   ;;  %s1927_s9 = smov 72   ;;  %vm336_vm10 = vcmask 1043456   ;;  %vm495_vm11 = vcmask 130112  }
  0x4a   :  { %v168_v40 = vsel %vm167_vm7, %v142_v38, 0.0  ;;  %v159_v41 = vsel %vm132_vm3, %v158_v30, %v157_v39  ;;  %1592 = vmatprep.subr.bf16.mxu0 %v1919_v57  ;;  %1600 = vmatprep.mubr.msk.bf16.mxu1 %vm1920_vm8, %v1919_v57  ;;  %s1928_s10 = smov 56   ;;  %s1929_s11 = smov 48   ;;  %vm611_vm12 = vcmask 195712   ;;  %vm727_vm13 = vcmask 261312  }
  0x4b   :  { %169 = vadd.xlane.f32.xlu0 %v168_v40  ;;  %v161_v42 = vsel %vm135_vm4, %v160_v31, %v159_v41  ;;  %s1931_s12 = smov 8   ;;  %s1932_s13 = smov 16   ;;  %vm1424_vm14 = vcmask 253952  }
  0x4c   :  { %v163_v43 = vsel %vm138_vm5, %v162_v34, %v161_v42  ;;  %s1933_s14 = smov 24  }
  0x4d   :  { %v165_v44 = vsel %vm141_vm6, %v164_v35, %v163_v43  ;;  %1593 = vmatpush3.bf16.msra.mxu0 %v1737_v58 }
  0x4e   :  { %v171_v45 = vsel %vm167_vm7, %v165_v44, 0.0  ;;  %1604 = vmatprep.subr.bf16.mxu0 %v1919_v57 }
  0x4f   :  { %172 = vadd.xlane.f32.xlu0 %v171_v45 }
  0xd4   :  { %v170_v46 = vpop.xlane.xlu0 %169 }
  0xd5   :  { %v175_v47 = vmul.f32 0.03125, %v170_v46 }
  0xd7   :  { %v177_v48 = vsub.f32 %v142_v38, %v175_v47 }
  0xd8   :  { %v173_v49 = vpop.xlane.xlu0 %172 }
  0xd9   :  { %v176_v50 = vmul.f32 0.03125, %v173_v49  ;;  %v179_v51 = vmul.f32 %v177_v48, %v177_v48 }
  0xdb   :  { %v178_v52 = vsub.f32 %v165_v44, %v176_v50  ;;  %v181_v53 = vsel %vm167_vm7, %v179_v51, 0.0 }
  0xdc   :  { %182 = vadd.xlane.f32.xlu1 %v181_v53 }
  0xdd   :  { %v180_v54 = vmul.f32 %v178_v52, %v178_v52 }
  0xdf   :  { %v184_v55 = vsel %vm167_vm7, %v180_v54, 0.0 }
  0xe0   :  { %185 = vadd.xlane.f32.xlu1 %v184_v55 }
 0x165   :  { %v183_v59 = vpop.xlane.xlu1 %182 }
 0x166   :  { %v187_v60 = vmul.f32 0.03125, %v183_v59 }
 0x168   :  { %v189_v61 = vadd.f32 1e-05, %v187_v60 }
 0x169   :  { %v186_v62 = vpop.xlane.xlu1 %185 }
 0x16a   :  { %1742 = vrsqrt.f32 %v189_v61  ;;  %v188_v63 = vmul.f32 0.03125, %v186_v62 }
 0x16c   :  { %v190_v0 = vadd.f32 1e-05, %v188_v63 }
 0x16e   :  { %1744 = vrsqrt.f32 %v190_v0 }
 0x177   :  { %v1743_v1 = vpop.eup %1742 }
 0x178   :  { %v193_v2 = vmul.f32 %v1743_v1, %v177_v48 }
 0x17a   :  { %v199_v6 = vmul.f32 %v1518_v3, %v193_v2 }
 0x17b   :  { %v1745_v4 = vpop.eup %1744 }
 0x17c   :  { %v194_v5 = vmul.f32 %v1745_v4, %v178_v52  ;;  %v2029_v9 = vadd.f32 %v1519_v7, %v199_v6 }
 0x17e   :  { %v200_v8 = vmul.f32 %v1518_v3, %v194_v5 }
 0x180   :  { %v2031_v10 = vadd.f32 %v1519_v7, %v200_v8 }
 0x182   :  { %v207_v11 = vpack.c.bf16 %v2031_v10, %v2029_v9 }
 0x184   :  { %1595 = vmatmul.mubr.msk.bf16.vlgmr.msra.gmra.mxu0 %vm167_vm7, %v207_v11 }
 0x185   :  { %1606 = vmatprep.mubr.msk.bf16.mxu0 %vm1920_vm8, %v1919_v57 }
 0x244   :  { %v261_v12 = vpop.f32.mrf.mxu0 }
 0x246   :  { %v1596_v13 = vpop.f32.mrf.mxu0 }
 0x248   :  { %v264_v14 = vpop.f32.mrf.mxu0 }
 0x249   :  { %v2038_v15 = vpack.c.bf16 %v264_v14, %v261_v12 }
 0x24a   :  { %v1597_v16 = vpop.f32.mrf.mxu0 }
 0x24b   :  { %383 = vrot.lane.b32.xlu1 %v2038_v15, %s1921_s2  ;;  %270 = vrot.lane.b32.xlu0 %v2038_v15, %s1922_s5  ;;  %v2047_v17 = vrot.slane %v2038_v15, 4 }
 0x24f   :  { %381 = vrot.lane.b32.xlu1 %v2038_v15, %s1923_s28  ;;  %497 = vrot.lane.b32.xlu0 %v2038_v15, %s1924_s29 }
 0x253   :  { %499 = vrot.lane.b32.xlu1 %v2038_v15, %s1925_s30  ;;  %613 = vrot.lane.b32.xlu0 %v2038_v15, %s1926_s8 }
 0x257   :  { %615 = vrot.lane.b32.xlu1 %v2038_v15, %s1927_s9  ;;  %841 = vrot.lane.b32.xlu0 %v2047_v17, %s1921_s2 }
 0x25b   :  { %956 = vrot.lane.b32.xlu0 %v2047_v17, %s1925_s30  ;;  %730 = vrot.lane.b32.xlu1 %v2047_v17, %s1922_s5 }
 0x25f   :  { %1071 = vrot.lane.b32.xlu0 %v2047_v17, %s1927_s9  ;;  %839 = vrot.lane.b32.xlu1 %v2047_v17, %s1923_s28 }
 0x263   :  { %954 = vrot.lane.b32.xlu1 %v2047_v17, %s1924_s29 }
 0x267   :  { %1069 = vrot.lane.b32.xlu1 %v2047_v17, %s1926_s8 }
 0x2bd   :  { %v271_v18 = vpop.permute.xlu0 %270  ;;  %v384_v20 = vpop.permute.xlu1 %383 }
 0x2be   :  { %v277_v19 = vsel %vm272_vm9, %v271_v18, 0  ;;  %v389_v22 = vsel %vm272_vm9, %v384_v20, 0 }
 0x2bf   :  { %1599 = vmatpush3.bf16.xpose.msra.mxu1 %v277_v19 }
 0x2c0   :  { %1610 = vmatprep.subr.bf16.mxu1 %v1919_v57 }
 0x2c1   :  { %v382_v21 = vpop.permute.xlu1 %381  ;;  %v498_v26 = vpop.permute.xlu0 %497 }
 0x2c5   :  { %v500_v23 = vpop.permute.xlu1 %499  ;;  %v614_v29 = vpop.permute.xlu0 %613 }
 0x2c6   :  { %1601 = vmatmul.mubr.msk.bf16.vlgmr.msra.gmra.mxu1 %vm272_vm9, %v2038_v15  ;;  %v505_v24 = vsel %vm272_vm9, %v500_v23, 0 }
 0x2c7   :  { %1611 = vmatpush3.bf16.xpose.msra.mxu1 %v389_v22  ;;  %1612 = vmatprep.mubr.msk.bf16.mxu1 %vm1920_vm8, %v1919_v57 }
 0x2c8   :  { %1622 = vmatprep.subr.bf16.mxu1 %v1919_v57 }
 0x2c9   :  { %v616_v25 = vpop.permute.xlu1 %615  ;;  %v842_v31 = vpop.permute.xlu0 %841 }
 0x2ca   :  { %v621_v27 = vsel %vm272_vm9, %v616_v25, 0  ;;  %v847_v32 = vsel %vm272_vm9, %v842_v31, 0 }
 0x2cd   :  { %v731_v28 = vpop.permute.xlu1 %730  ;;  %v957_v33 = vpop.permute.xlu0 %956 }
 0x2ce   :  { %1613 = vmatmul.mubr.msk.bf16.vlgmr.msra.gmra.mxu1 %vm272_vm9, %v382_v21  ;;  %v736_v30 = vsel %vm272_vm9, %v731_v28, 0  ;;  %v962_v35 = vsel %vm272_vm9, %v957_v33, 0 }
 0x2cf   :  { %1623 = vmatpush3.bf16.xpose.msra.mxu1 %v505_v24  ;;  %1624 = vmatprep.mubr.msk.bf16.mxu1 %vm1920_vm8, %v1919_v57 }
 0x2d0   :  { %1634 = vmatprep.subr.bf16.mxu1 %v1919_v57 }
 0x2d1   :  { %v840_v34 = vpop.permute.xlu1 %839  ;;  %v1072_v36 = vpop.permute.xlu0 %1071 }
 0x2d2   :  { %v1077_v38 = vsel %vm272_vm9, %v1072_v36, 0 }
 0x2d5   :  { %v955_v37 = vpop.permute.xlu1 %954 }
 0x2d6   :  { %1625 = vmatmul.mubr.msk.bf16.vlgmr.msra.gmra.mxu1 %vm272_vm9, %v498_v26 }
 0x2d7   :  { %1635 = vmatpush3.bf16.xpose.msra.mxu1 %v621_v27  ;;  %1636 = vmatprep.mubr.msk.bf16.mxu1 %vm1920_vm8, %v1919_v57 }
 0x2d8   :  { %1646 = vmatprep.subr.bf16.mxu1 %v1919_v57 }
 0x2d9   :  { %v1070_v39 = vpop.permute.xlu1 %1069 }
 0x2de   :  { %1637 = vmatmul.mubr.msk.bf16.vlgmr.msra.gmra.mxu1 %vm272_vm9, %v614_v29 }
 0x2df   :  { %1647 = vmatpush3.bf16.xpose.msra.mxu1 %v736_v30  ;;  %1648 = vmatprep.mubr.msk.bf16.mxu1 %vm1920_vm8, %v1919_v57 }
 0x2e0   :  { %1658 = vmatprep.subr.bf16.mxu1 %v1919_v57 }
 0x2e6   :  { %1649 = vmatmul.mubr.msk.bf16.vlgmr.msra.gmra.mxu1 %vm272_vm9, %v2047_v17 }
 0x2e7   :  { %1659 = vmatpush3.bf16.xpose.msra.mxu1 %v847_v32  ;;  %1660 = vmatprep.mubr.msk.bf16.mxu1 %vm1920_vm8, %v1919_v57 }
 0x2e8   :  { %1670 = vmatprep.subr.bf16.mxu1 %v1919_v57 }
 0x2ee   :  { %1661 = vmatmul.mubr.msk.bf16.vlgmr.msra.gmra.mxu1 %vm272_vm9, %v840_v34 }
 0x2ef   :  { %1671 = vmatpush3.bf16.xpose.msra.mxu1 %v962_v35  ;;  %1672 = vmatprep.mubr.msk.bf16.mxu1 %vm1920_vm8, %v1919_v57 }
 0x2f0   :  { %1682 = vmatprep.subr.bf16.mxu1 %v1919_v57 }
 0x2f6   :  { %1673 = vmatmul.mubr.msk.bf16.vlgmr.msra.gmra.mxu1 %vm272_vm9, %v955_v37 }
 0x2f7   :  { %1683 = vmatpush3.bf16.xpose.msra.mxu1 %v1077_v38  ;;  %1684 = vmatprep.mubr.msk.bf16.mxu1 %vm1920_vm8, %v1919_v57 }
 0x2f8   :  { %1694 = vmatprep.subr.bf16.mxu1 %v1919_v57 }
 0x2fe   :  { %1685 = vmatmul.mubr.msk.bf16.vlgmr.msra.gmra.mxu1 %vm272_vm9, %v1070_v39 }
 0x2ff   :  { %1698 = vmatprep.mubr.msk.bf16.mxu1 %vm1920_vm8, %v1919_v57 }
 0x386   :  { %v313_v40 = vpop.f32.mrf.mxu1 }
 0x387   :  { %v319_v41 = vsel %vm272_vm9, %v313_v40, -inf }
 0x388   :  { %v1602_v42 = vpop.f32.mrf.mxu1  ;;  %320 = vmax.xlane.f32.xlu0 %v319_v41 }
 0x38a   :  { %v316_v43 = vpop.f32.mrf.mxu1 }
 0x38c   :  { %v1603_v44 = vpop.f32.mrf.mxu1 }
 0x38e   :  { %v425_v45 = vpop.f32.mrf.mxu1 }
 0x38f   :  { %v431_v46 = vsel %vm272_vm9, %v425_v45, -inf }
 0x390   :  { %v1614_v47 = vpop.f32.mrf.mxu1  ;;  %432 = vmax.xlane.f32.xlu1 %v431_v46 }
 0x392   :  { %v428_v48 = vpop.f32.mrf.mxu1 }
 0x394   :  { %v1615_v49 = vpop.f32.mrf.mxu1 }
 0x396   :  { %v2101_v50 = vpop.f32.mrf.mxu1 }
 0x397   :  { %v547_v7 = vsel %vm272_vm9, %v2101_v50, -inf }
 0x398   :  { %v1626_v51 = vpop.f32.mrf.mxu1 }
 0x39a   :  { %v544_v52 = vpop.f32.mrf.mxu1 }
 0x39c   :  { %v1627_v53 = vpop.f32.mrf.mxu1 }
 0x39e   :  { %v2103_v54 = vpop.f32.mrf.mxu1  ;;  %331 = vrot.lane.b32.xlu0 %v2038_v15, %s1911_s27 }
 0x39f   :  { %v663_v12 = vsel %vm272_vm9, %v2103_v54, -inf }
 0x3a0   :  { %v1638_v55 = vpop.f32.mrf.mxu1 }
 0x3a1   :  { %443 = vrot.lane.b32.xlu1 %v2038_v15, %s1928_s10 }
 0x3a2   :  { %v660_v56 = vpop.f32.mrf.mxu1 }
 0x3a4   :  { %v1639_v58 = vpop.f32.mrf.mxu1 }
 0x3a6   :  { %v772_v59 = vpop.f32.mrf.mxu1 }
 0x3a7   :  { %v778_v16 = vsel %vm272_vm9, %v772_v59, -inf }
 0x3a8   :  { %v1650_v60 = vpop.f32.mrf.mxu1 }
 0x3aa   :  { %v775_v61 = vpop.f32.mrf.mxu1 }
 0x3ac   :  { %v1651_v62 = vpop.f32.mrf.mxu1 }
 0x3ae   :  { %v883_v63 = vpop.f32.mrf.mxu1 }
 0x3af   :  { %v889_v18 = vsel %vm272_vm9, %v883_v63, -inf }
 0x3b0   :  { %v1662_v0 = vpop.f32.mrf.mxu1 }
 0x3b2   :  { %v886_v1 = vpop.f32.mrf.mxu1 }
 0x3b4   :  { %v1663_v2 = vpop.f32.mrf.mxu1 }
 0x3b6   :  { %v2109_v3 = vpop.f32.mrf.mxu1 }
 0x3b7   :  { %v1004_v19 = vsel %vm272_vm9, %v2109_v3, -inf }
 0x3b8   :  { %v1674_v4 = vpop.f32.mrf.mxu1 }
 0x3ba   :  { %v1001_v5 = vpop.f32.mrf.mxu1 }
 0x3bc   :  { %v1675_v6 = vpop.f32.mrf.mxu1 }
 0x3bd   :  { %548 = vmax.xlane.f32.xlu0 %v547_v7 }
 0x3be   :  { %v2113_v8 = vpop.f32.mrf.mxu1 }
 0x3bf   :  { %v1119_v20 = vsel %vm272_vm9, %v2113_v8, -inf }
 0x3c0   :  { %v1686_v11 = vpop.f32.mrf.mxu1 }
 0x3c1   :  { %664 = vmax.xlane.f32.xlu0 %v663_v12 }
 0x3c2   :  { %v1116_v13 = vpop.f32.mrf.mxu1 }
 0x3c4   :  { %v1687_v14 = vpop.f32.mrf.mxu1 }
 0x3c5   :  { %779 = vmax.xlane.f32.xlu0 %v778_v16  ;;  %890 = vmax.xlane.f32.xlu1 %v889_v18 }
 0x3c9   :  { %1005 = vmax.xlane.f32.xlu0 %v1004_v19  ;;  %1120 = vmax.xlane.f32.xlu1 %v1119_v20 }
 0x3df   :  { %559 = vrot.lane.b32.xlu0 %v2038_v15, %s1929_s11 }
 0x411   :  { %v321_v21 = vpop.xlane.xlu0 %320 }
 0x412   :  { %v322_v22 = vsub.f32 %v313_v40, %v321_v21 }
 0x414   :  { %v323_v23 = vmul.f32 1.442695, %v322_v22 }
 0x415   :  { %v332_v24 = vpop.permute.xlu0 %331 }
 0x416   :  { %1746 = vpow2.f32 %v323_v23  ;;  %v338_v25 = vsel %vm336_vm10, %v332_v24, 0 }
 0x417   :  { %1605 = vmatpush3.bf16.msra.mxu0 %v338_v25 }
 0x418   :  { %1616 = vmatprep.subr.bf16.mxu0 %v1919_v57 }
 0x419   :  { %v433_v26 = vpop.xlane.xlu1 %432 }
 0x41a   :  { %v434_v27 = vsub.f32 %v425_v45, %v433_v26 }
 0x41c   :  { %v435_v28 = vmul.f32 1.442695, %v434_v27 }
 0x41d   :  { %v444_v36 = vpop.permute.xlu1 %443 }
 0x41e   :  { %1748 = vpow2.f32 %v435_v28  ;;  %v449_v6 = vsel %vm336_vm10, %v444_v36, 0 }
 0x423   :  { %v1747_v29 = vpop.eup %1746 }
 0x424   :  { %v325_v30 = vsel %vm272_vm9, %v1747_v29, 0.0 }
 0x425   :  { %326 = vadd.xlane.f32.xlu0 %v325_v30 }
 0x42b   :  { %v2128_v31 = vpop.eup %1748 }
 0x42c   :  { %v437_v32 = vsel %vm272_vm9, %v2128_v31, 0.0 }
 0x42d   :  { %438 = vadd.xlane.f32.xlu1 %v437_v32 }
 0x43e   :  { %790 = vrot.lane.b32.xlu1 %v2047_v17, %s1911_s27  ;;  %s1930_s27 = smov 40  }
 0x446   :  { %v549_v33 = vpop.xlane.xlu0 %548 }
 0x447   :  { %v550_v34 = vsub.f32 %v2101_v50, %v549_v33 }
 0x449   :  { %v551_v35 = vmul.f32 1.442695, %v550_v34 }
 0x44a   :  { %v665_v37 = vpop.xlane.xlu0 %664 }
 0x44b   :  { %1750 = vpow2.f32 %v551_v35  ;;  %v666_v38 = vsub.f32 %v2103_v54, %v665_v37 }
 0x44d   :  { %v667_v39 = vmul.f32 1.442695, %v666_v38 }
 0x44e   :  { %v780_v40 = vpop.xlane.xlu0 %779  ;;  %v891_v41 = vpop.xlane.xlu1 %890 }
 0x44f   :  { %v781_v42 = vsub.f32 %v772_v59, %v780_v40  ;;  %1752 = vpow2.f32 %v667_v39  ;;  %v892_v44 = vsub.f32 %v883_v63, %v891_v41 }
 0x451   :  { %v782_v43 = vmul.f32 1.442695, %v781_v42  ;;  %v893_v45 = vmul.f32 1.442695, %v892_v44 }
 0x452   :  { %v1006_v54 = vpop.xlane.xlu0 %1005  ;;  %v1121_v58 = vpop.xlane.xlu1 %1120 }
 0x453   :  { %1754 = vpow2.f32 %v782_v43  ;;  %v1007_v55 = vsub.f32 %v2109_v3, %v1006_v54  ;;  %v1122_v59 = vsub.f32 %v2113_v8, %v1121_v58 }
 0x454   :  { %1756 = vpow2.f32 %v893_v45 }
 0x455   :  { %v1008_v56 = vmul.f32 1.442695, %v1007_v55  ;;  %v1123_v60 = vmul.f32 1.442695, %v1122_v59 }
 0x456   :  { %v560_v0 = vpop.permute.xlu0 %559 }
 0x457   :  { %1758 = vpow2.f32 %v1008_v56 }
 0x458   :  { %v1751_v46 = vpop.eup %1750  ;;  %1760 = vpow2.f32 %v1123_v60 }
 0x459   :  { %v553_v47 = vsel %vm272_vm9, %v1751_v46, 0.0 }
 0x45a   :  { %554 = vadd.xlane.f32.xlu0 %v553_v47 }
 0x45c   :  { %v2137_v48 = vpop.eup %1752 }
 0x45d   :  { %v669_v49 = vsel %vm272_vm9, %v2137_v48, 0.0 }
 0x460   :  { %v2141_v50 = vpop.eup %1754 }
 0x461   :  { %v784_v51 = vsel %vm272_vm9, %v2141_v50, 0.0  ;;  %v2145_v52 = vpop.eup %1756 }
 0x462   :  { %670 = vadd.xlane.f32.xlu1 %v669_v49  ;;  %v895_v53 = vsel %vm272_vm9, %v2145_v52, 0.0 }
 0x464   :  { %v2154_v61 = vpop.eup %1758 }
 0x465   :  { %v1010_v62 = vsel %vm272_vm9, %v2154_v61, 0.0 }
 0x466   :  { %785 = vadd.xlane.f32.xlu1 %v784_v51 }
 0x46a   :  { %896 = vadd.xlane.f32.xlu1 %v895_v53 }
 0x470   :  { %675 = vrot.lane.b32.xlu0 %v2038_v15, %s1930_s27  ;;  %v2158_v15 = vpop.eup %1760 }
 0x471   :  { %v1125_v63 = vsel %vm272_vm9, %v2158_v15, 0.0 }
 0x47b   :  { %901 = vrot.lane.b32.xlu1 %v2047_v17, %s1928_s10 }
 0x48f   :  { %1011 = vadd.xlane.f32.xlu0 %v1010_v62 }
 0x49f   :  { %1126 = vadd.xlane.f32.xlu1 %v1125_v63 }
 0x4a5   :  { %1016 = vrot.lane.b32.xlu0 %v2047_v17, %s1929_s11 }
 0x4ae   :  { %v327_v1 = vpop.xlane.xlu0 %326 }
 0x4af   :  { %1762 = vrcp.f32 %v327_v1 }
 0x4b0   :  { %1131 = vrot.lane.b32.xlu1 %v2047_v17, %s1930_s27  ;;  %v565_v17 = vsel %vm336_vm10, %v560_v0, 0 }
 0x4b6   :  { %v439_v2 = vpop.xlane.xlu1 %438 }
 0x4b7   :  { %1764 = vrcp.f32 %v439_v2 }
 0x4ba   :  { %v791_v13 = vpop.permute.xlu1 %790 }
 0x4bb   :  { %v796_v28 = vsel %vm336_vm10, %v791_v13, 0 }
 0x4bc   :  { %v1763_v3 = vpop.eup %1762 }
 0x4bd   :  { %v329_v4 = vmul.f32 %v1763_v3, %v1747_v29 }
 0x4bf   :  { %v330_v5 = vpack.c.bf16 %v329_v4, %v329_v4 }
 0x4c1   :  { %1607 = vmatmul.mubr.msk.bf16.vlgmr.msra.gmra.mxu0 %vm272_vm9, %v330_v5 }
 0x4c2   :  { %1617 = vmatpush3.bf16.msra.mxu0 %v449_v6  ;;  %1618 = vmatprep.mubr.msk.bf16.mxu0 %vm1920_vm8, %v1919_v57 }
 0x4c3   :  { %1628 = vmatprep.subr.bf16.mxu0 %v1919_v57 }
 0x4c4   :  { %v1765_v7 = vpop.eup %1764 }
 0x4c5   :  { %v441_v8 = vmul.f32 %v1765_v7, %v2128_v31 }
 0x4c7   :  { %v442_v11 = vpack.c.bf16 %v441_v8, %v441_v8 }
 0x4c9   :  { %1619 = vmatmul.mubr.msk.bf16.vlgmr.msra.gmra.mxu0 %vm272_vm9, %v442_v11 }
 0x4ca   :  { %1629 = vmatpush3.bf16.msra.mxu0 %v565_v17  ;;  %1630 = vmatprep.mubr.msk.bf16.mxu0 %vm1920_vm8, %v1919_v57 }
 0x4cb   :  { %1640 = vmatprep.subr.bf16.mxu0 %v1919_v57 }
 0x4e3   :  { %v555_v12 = vpop.xlane.xlu0 %554 }
 0x4e4   :  { %1766 = vrcp.f32 %v555_v12 }
 0x4e7   :  { %v676_v20 = vpop.permute.xlu0 %675 }
 0x4e8   :  { %v681_v23 = vsel %vm336_vm10, %v676_v20, 0 }
 0x4eb   :  { %v671_v14 = vpop.xlane.xlu1 %670 }
 0x4ec   :  { %1768 = vrcp.f32 %v671_v14 }
 0x4ef   :  { %v786_v16 = vpop.xlane.xlu1 %785 }
 0x4f0   :  { %1770 = vrcp.f32 %v786_v16 }
 0x4f1   :  { %v1767_v18 = vpop.eup %1766 }
 0x4f2   :  { %v557_v19 = vmul.f32 %v1767_v18, %v1751_v46 }
 0x4f3   :  { %v897_v22 = vpop.xlane.xlu1 %896 }
 0x4f4   :  { %v558_v21 = vpack.c.bf16 %v557_v19, %v557_v19  ;;  %1772 = vrcp.f32 %v897_v22 }
 0x4f6   :  { %1631 = vmatmul.mubr.msk.bf16.vlgmr.msra.gmra.mxu0 %vm272_vm9, %v558_v21 }
 0x4f7   :  { %1641 = vmatpush3.bf16.msra.mxu0 %v681_v23  ;;  %1642 = vmatprep.mubr.msk.bf16.mxu0 %vm1920_vm8, %v1919_v57  ;;  %v902_v30 = vpop.permute.xlu1 %901 }
 0x4f8   :  { %1652 = vmatprep.subr.bf16.mxu0 %v1919_v57  ;;  %v907_v33 = vsel %vm336_vm10, %v902_v30, 0 }
 0x4f9   :  { %v1769_v24 = vpop.eup %1768 }
 0x4fa   :  { %v673_v25 = vmul.f32 %v1769_v24, %v2137_v48 }
 0x4fc   :  { %v674_v26 = vpack.c.bf16 %v673_v25, %v673_v25 }
 0x4fd   :  { %v1771_v27 = vpop.eup %1770 }
 0x4fe   :  { %1643 = vmatmul.mubr.msk.bf16.vlgmr.msra.gmra.mxu0 %vm272_vm9, %v674_v26  ;;  %v788_v29 = vmul.f32 %v1771_v27, %v2141_v50 }
 0x4ff   :  { %1653 = vmatpush3.bf16.msra.mxu0 %v796_v28  ;;  %1654 = vmatprep.mubr.msk.bf16.mxu0 %vm1920_vm8, %v1919_v57 }
 0x500   :  { %1664 = vmatprep.subr.bf16.mxu0 %v1919_v57  ;;  %v789_v31 = vpack.c.bf16 %v788_v29, %v788_v29 }
 0x501   :  { %v1773_v32 = vpop.eup %1772 }
 0x502   :  { %v899_v34 = vmul.f32 %v1773_v32, %v2145_v52 }
 0x504   :  { %v900_v35 = vpack.c.bf16 %v899_v34, %v899_v34 }
 0x506   :  { %1655 = vmatmul.mubr.msk.bf16.vlgmr.msra.gmra.mxu0 %vm272_vm9, %v789_v31 }
 0x507   :  { %1665 = vmatpush3.bf16.msra.mxu0 %v907_v33  ;;  %1666 = vmatprep.mubr.msk.bf16.mxu0 %vm1920_vm8, %v1919_v57 }
 0x508   :  { %1676 = vmatprep.subr.bf16.mxu0 %v1919_v57 }
 0x50e   :  { %1667 = vmatmul.mubr.msk.bf16.vlgmr.msra.gmra.mxu0 %vm272_vm9, %v900_v35 }
 0x50f   :  { %1678 = vmatprep.mubr.msk.bf16.mxu0 %vm1920_vm8, %v1919_v57 }
 0x518   :  { %v1012_v36 = vpop.xlane.xlu0 %1011 }
 0x519   :  { %1774 = vrcp.f32 %v1012_v36 }
 0x51c   :  { %v1017_v37 = vpop.permute.xlu0 %1016 }
 0x51d   :  { %v1022_v38 = vsel %vm336_vm10, %v1017_v37, 0 }
 0x51e   :  { %1677 = vmatpush3.bf16.msra.mxu0 %v1022_v38 }
 0x51f   :  { %1688 = vmatprep.subr.bf16.mxu0 %v1919_v57 }
 0x526   :  { %v1775_v39 = vpop.eup %1774 }
 0x527   :  { %v1014_v40 = vmul.f32 %v1775_v39, %v2154_v61 }
 0x528   :  { %v1127_v41 = vpop.xlane.xlu1 %1126 }
 0x529   :  { %1776 = vrcp.f32 %v1127_v41  ;;  %v1015_v42 = vpack.c.bf16 %v1014_v40, %v1014_v40  ;;  %v1738_v40 = vld [vmem:[#allocation9 + $0x8] sm:$0xff]  }
 0x52a   :  { %1695 = vmatpush3.bf16.msra.mxu1 %v1738_v40 }
 0x52b   :  { %1679 = vmatmul.mubr.msk.bf16.vlgmr.msra.gmra.mxu0 %vm272_vm9, %v1015_v42  ;;  %1696 = vmatprep.subr.bf16.mxu1 %v1919_v57 }
 0x52c   :  { %v1132_v43 = vpop.permute.xlu1 %1131  ;;  %1690 = vmatprep.mubr.msk.bf16.mxu0 %vm1920_vm8, %v1919_v57 }
 0x52d   :  { %v1137_v44 = vsel %vm336_vm10, %v1132_v43, 0 }
 0x52e   :  { %1689 = vmatpush3.bf16.msra.mxu0 %v1137_v44 }
 0x52f   :  { %1702 = vmatprep.subr.bf16.mxu0 %v1919_v57 }
 0x536   :  { %v1777_v45 = vpop.eup %1776 }
 0x537   :  { %v1129_v46 = vmul.f32 %v1777_v45, %v2158_v15 }
 0x539   :  { %v1130_v47 = vpack.c.bf16 %v1129_v46, %v1129_v46 }
 0x53b   :  { %1691 = vmatmul.mubr.msk.bf16.vlgmr.msra.gmra.mxu0 %vm272_vm9, %v1130_v47 }
 0x53c   :  { %1706 = vmatprep.mubr.msk.bf16.mxu0 %vm1920_vm8, %v1919_v57 }
 0x581   :  { %v374_v48 = vpop.f32.mrf.mxu0 }
 0x582   :  { %380 = vst.msk [vmem:[#allocation2] sm:$0xff] %vm272_vm9, %v374_v48 }
 0x583   :  { %v1608_v49 = vpop.f32.mrf.mxu0 }
 0x584   :  { %v1539_v49 = vld [vmem:[#allocation8 + $0x2] ss:$0 sm:$0xff] }
 0x585   :  { %v377_v50 = vpop.f32.mrf.mxu0 }
 0x587   :  { %v1609_v51 = vpop.f32.mrf.mxu0 }
 0x589   :  { %v485_v52 = vpop.f32.mrf.mxu0 }
 0x58a   :  { %492 = vrot.lane.b32.xlu0 %v485_v52, %s1931_s12 }
 0x58b   :  { %v1620_v53 = vpop.f32.mrf.mxu0 }
 0x58c   :  { %v1540_v53 = vld [vmem:[#allocation8 + $0x3] ss:$0 sm:$0xff] }
 0x58d   :  { %v488_v54 = vpop.f32.mrf.mxu0 }
 0x58f   :  { %v1621_v55 = vpop.f32.mrf.mxu0 }
 0x5b6   :  { %v601_v56 = vpop.f32.mrf.mxu0 }
 0x5b7   :  { %608 = vrot.lane.b32.xlu0 %v601_v56, %s1932_s13 }
 0x5b8   :  { %v1632_v58 = vpop.f32.mrf.mxu0 }
 0x5ba   :  { %v604_v59 = vpop.f32.mrf.mxu0 }
 0x5bb   :  { %v1740_v59 = vld [vmem:[#allocation11 + $0x8] sm:$0xff]  }
 0x5bc   :  { %v1633_v60 = vpop.f32.mrf.mxu0  ;;  %1703 = vmatpush3.bf16.msra.mxu0 %v1740_v59 }
 0x5bd   :  { %1704 = vmatprep.subr.bf16.mxu0 %v1919_v57  ;;  %v1741_v60 = vld [vmem:[#allocation11] sm:$0xff]   ;;  %v1371_v57 = vlaneseq }
 0x5be   :  { %v717_v61 = vpop.f32.mrf.mxu0 }
 0x5bf   :  { %724 = vrot.lane.b32.xlu0 %v717_v61, %s1933_s14  ;;  %v1541_v61 = vld [vmem:[%s2255_s4] ss:$0 sm:$0xff]  ;;  %s1935_s4 = smov [#allocation12]  }
 0x5c0   :  { %v1644_v62 = vpop.f32.mrf.mxu0  ;;  %1705 = vmatpush3.bf16.msra.mxu0 %v1741_v60 }
 0x5c2   :  { %v720_v15 = vpop.f32.mrf.mxu0 }
 0x5c4   :  { %v1645_v63 = vpop.f32.mrf.mxu0 }
 0x5c6   :  { %v832_v0 = vpop.f32.mrf.mxu0 }
 0x5c7   :  { %838 = vst.msk [vmem:[#allocation2 + $0x8] sm:$0xff] %vm272_vm9, %v832_v0 }
 0x5c8   :  { %v1656_v1 = vpop.f32.mrf.mxu0 }
 0x5ca   :  { %v835_v2 = vpop.f32.mrf.mxu0 }
 0x5cc   :  { %v1657_v3 = vpop.f32.mrf.mxu0 }
 0x5ce   :  { %v943_v4 = vpop.f32.mrf.mxu0 }
 0x5cf   :  { %950 = vrot.lane.b32.xlu1 %v943_v4, %s1931_s12 }
 0x5d0   :  { %v1668_v5 = vpop.f32.mrf.mxu0 }
 0x5d2   :  { %v946_v6 = vpop.f32.mrf.mxu0 }
 0x5d3   :  { %v1934_v6 = vmov 1966171168  }
 0x5d4   :  { %v1669_v7 = vpop.f32.mrf.mxu0 }
 0x5d5   :  { %v1369_v7 = vunpack.c.l.s4 %v1934_v6 }
 0x5eb   :  { %v1058_v8 = vpop.f32.mrf.mxu0 }
 0x5ec   :  { %1065 = vrot.lane.b32.xlu1 %v1058_v8, %s1932_s13  ;;  %v1370_v8 = vunpack.c.0.s8 %v1369_v7 }
 0x5ed   :  { %v1680_v11 = vpop.f32.mrf.mxu0 }
 0x5ee   :  { %v1372_v11 = vshrl.u32 %v1371_v57, 7 }
 0x5ef   :  { %v1061_v17 = vpop.f32.mrf.mxu0 }
 0x5f0   :  { %v1545_v17 = vld [vmem:[%s2257_s6] ss:$0 sm:$0xff]  ;;  %s1504_s6 = sshll.u32 %s1935_s4, 4  ;;  %s1505_s6 = int_to_ptr.vmem [resolvable:$true] %s1504_s6 }
 0x5f1   :  { %v1681_v12 = vpop.f32.mrf.mxu0  ;;  %s1882_s20 = scalar_lea.vmem %s1505_s6, 256  ;;  %p1887_p12 = scmp.lt.s32.totalorder %s1505_s6, %s1505_s6 }
 0x5f2   :  { %p1883_p11 = scmp.ne.s32.totalorder %s1505_s6, %s1882_s20  ;;  %p1888_p13 = scmp.lt.s32.totalorder %s1882_s20, %s1882_s20 }
 0x5f4   :  { %p1889_p0 = por %p1888_p13, %p1887_p12 }
 0x5f6   :  { %p1890_p1 = pnand %p1889_p0, %p1883_p11 }
 0x5fb   :  { %v1173_v13 = vpop.f32.mrf.mxu0 }
 0x5fc   :  { %v493_v14 = vpop.permute.xlu0 %492  ;;  %1180 = vrot.lane.b32.xlu1 %v1173_v13, %s1933_s14 }
 0x5fd   :  { %496 = vst.msk [vmem:[#allocation2] sm:$0xff] %vm495_vm11, %v493_v14  ;;  %v1692_v16 = vpop.f32.mrf.mxu0  ;;  %v1373_v14 = vsub.s32 %v1370_v8, %v1372_v11 }
 0x5ff   :  { %v1176_v18 = vpop.f32.mrf.mxu0 }
 0x601   :  { %v1693_v19 = vpop.f32.mrf.mxu0 }
 0x629   :  { %v609_v20 = vpop.permute.xlu0 %608 }
 0x62a   :  { %612 = vst.msk [vmem:[#allocation2] sm:$0xff] %vm611_vm12, %v609_v20 }
 0x631   :  { %v725_v21 = vpop.permute.xlu0 %724 }
 0x632   :  { %728 = vst.msk [vmem:[#allocation2] sm:$0xff] %vm727_vm13, %v725_v21 }
 0x639   :  { %v1184_v22 = vld [vmem:[#allocation2] sm:$0xff] }
 0x63a   :  { %v1186_v23 = vadd.f32 %v1184_v22, %v2029_v9 }
 0x63c   :  { %v1188_v24 = vsel %vm167_vm7, %v1186_v23, 0.0 }
 0x63d   :  { %1189 = vadd.xlane.f32.xlu0 %v1188_v24 }
 0x641   :  { %v951_v25 = vpop.permute.xlu1 %950 }
 0x642   :  { %953 = vst.msk [vmem:[#allocation2 + $0x8] sm:$0xff] %vm495_vm11, %v951_v25 }
 0x65e   :  { %v1066_v26 = vpop.permute.xlu1 %1065 }
 0x65f   :  { %1068 = vst.msk [vmem:[#allocation2 + $0x8] sm:$0xff] %vm611_vm12, %v1066_v26 }
 0x66e   :  { %v1181_v27 = vpop.permute.xlu1 %1180 }
 0x66f   :  { %1183 = vst.msk [vmem:[#allocation2 + $0x8] sm:$0xff] %vm727_vm13, %v1181_v27 }
 0x676   :  { %v1185_v28 = vld [vmem:[#allocation2 + $0x8] sm:$0xff] }
 0x677   :  { %v1187_v29 = vadd.f32 %v1185_v28, %v2031_v10  ;;  %v1739_v10 = vld [vmem:[#allocation9] sm:$0xff]  }
 0x678   :  { %1697 = vmatpush3.bf16.msra.mxu1 %v1739_v10 }
 0x679   :  { %v1191_v30 = vsel %vm167_vm7, %v1187_v29, 0.0 }
 0x67a   :  { %1192 = vadd.xlane.f32.xlu1 %v1191_v30 }
 0x6c6   :  { %v1190_v31 = vpop.xlane.xlu0 %1189 }
 0x6c7   :  { %v1194_v32 = vmul.f32 0.03125, %v1190_v31 }
 0x6c9   :  { %v1196_v33 = vsub.f32 %v1186_v23, %v1194_v32 }
 0x6cb   :  { %v1198_v9 = vmul.f32 %v1196_v33, %v1196_v33 }
 0x6cd   :  { %v1200_v34 = vsel %vm167_vm7, %v1198_v9, 0.0 }
 0x6ce   :  { %1201 = vadd.xlane.f32.xlu0 %v1200_v34 }
 0x703   :  { %v1193_v35 = vpop.xlane.xlu1 %1192 }
 0x704   :  { %v1195_v36 = vmul.f32 0.03125, %v1193_v35 }
 0x706   :  { %v1197_v37 = vsub.f32 %v1187_v29, %v1195_v36 }
 0x708   :  { %v1199_v38 = vmul.f32 %v1197_v37, %v1197_v37 }
 0x70a   :  { %v1203_v39 = vsel %vm167_vm7, %v1199_v38, 0.0 }
 0x70b   :  { %1204 = vadd.xlane.f32.xlu0 %v1203_v39 }
 0x757   :  { %v1202_v41 = vpop.xlane.xlu0 %1201 }
 0x758   :  { %v1206_v42 = vmul.f32 0.03125, %v1202_v41 }
 0x75a   :  { %v1208_v43 = vadd.f32 1e-05, %v1206_v42 }
 0x75c   :  { %1778 = vrsqrt.f32 %v1208_v43 }
 0x769   :  { %v1779_v47 = vpop.eup %1778 }
 0x76a   :  { %v1212_v48 = vmul.f32 %v1779_v47, %v1196_v33 }
 0x76c   :  { %v1218_v52 = vmul.f32 %v1539_v49, %v1212_v48 }
 0x76e   :  { %v1224_v55 = vadd.f32 %v1540_v53, %v1218_v52 }
 0x794   :  { %v1205_v44 = vpop.xlane.xlu0 %1204 }
 0x795   :  { %v1207_v45 = vmul.f32 0.03125, %v1205_v44 }
 0x797   :  { %v1209_v46 = vadd.f32 1e-05, %v1207_v45 }
 0x799   :  { %1780 = vrsqrt.f32 %v1209_v46 }
 0x7a6   :  { %v1781_v50 = vpop.eup %1780 }
 0x7a7   :  { %v1213_v51 = vmul.f32 %v1781_v50, %v1197_v37 }
 0x7a9   :  { %v1219_v54 = vmul.f32 %v1539_v49, %v1213_v51 }
 0x7ab   :  { %v1225_v56 = vadd.f32 %v1540_v53, %v1219_v54 }
 0x7ad   :  { %v1226_v58 = vpack.c.bf16 %v1225_v56, %v1224_v55 }
 0x7af   :  { %1699 = vmatmul.mubr.msk.bf16.vlgmr.msra.gmra.mxu1 %vm167_vm7, %v1226_v58 }
 0x86f   :  { %v1287_v62 = vpop.f32.mrf.mxu1 }
 0x870   :  { %v1288_v63 = vadd.f32 %v1541_v61, %v1287_v62 }
 0x871   :  { %v1700_v15 = vpop.f32.mrf.mxu1 }
 0x872   :  { %v1294_v3 = vmax.f32 %v1288_v63, 0.0 }
 0x873   :  { %v1290_v0 = vpop.f32.mrf.mxu1 }
 0x874   :  { %v1291_v1 = vadd.f32 %v1541_v61, %v1290_v0 }
 0x875   :  { %v1701_v2 = vpop.f32.mrf.mxu1 }
 0x876   :  { %v1295_v4 = vmax.f32 %v1291_v1, 0.0 }
 0x878   :  { %v1296_v5 = vpack.c.bf16 %v1295_v4, %v1294_v3 }
 0x87a   :  { %1707 = vmatmul.mubr.msk.bf16.vlgmr.msra.gmra.mxu0 %vm167_vm7, %v1296_v5 }
 0x93a   :  { %v1357_v12 = vpop.f32.mrf.mxu0 }
 0x93b   :  { %v1358_v13 = vadd.f32 %v1545_v17, %v1357_v12 }
 0x93c   :  { %v1708_v16 = vpop.f32.mrf.mxu0 }
 0x93d   :  { %v1364_v18 = vadd.f32 %v1358_v13, %v1224_v55 }
 0x93e   :  { %v1360_v19 = vpop.f32.mrf.mxu0 }
 0x93f   :  { %v1367_v20 = vcombine.high %v1364_v18, %v1364_v18  ;;  %v1374_v21 = vrot.slane %v1364_v18, %v1373_v14  ;;  %v1361_v22 = vadd.f32 %v1545_v17, %v1360_v19 }
 0x940   :  { %v1709_v23 = vpop.f32.mrf.mxu0 }
 0x941   :  { %v1381_v24 = vrot.slane %v1367_v20, %v1373_v14  ;;  %v1382_v25 = vcombine.high %v1374_v21, %v1374_v21  ;;  %v1390_v26 = vrot.slane %v1374_v21, %v1373_v14  ;;  %v1365_v27 = vadd.f32 %v1361_v22, %v1225_v56 }
 0x943   :  { %v1383_v28 = vcombine.high %v1381_v24, %v1381_v24  ;;  %v1397_v29 = vrot.slane %v1381_v24, %v1373_v14  ;;  %v1404_v30 = vrot.slane %v1382_v25, %v1373_v14  ;;  %v1412_v31 = vcombine.high %v1390_v26, %v1390_v26  ;;  %1425 = vst.msk [vmem:[#allocation12] sm:$0x1] %vm1424_vm14, %v1390_v26 }
 0x944   :  { %v1434_v32 = vcombine.high %v1365_v27, %v1365_v27  ;;  %v1441_v33 = vrot.slane %v1365_v27, %v1373_v14 }
 0x945   :  { %v1411_v9 = vrot.slane %v1383_v28, %v1373_v14  ;;  %v1413_v34 = vcombine.high %v1397_v29, %v1397_v29  ;;  %v1414_v35 = vcombine.high %v1404_v30, %v1404_v30  ;;  %1426 = vst.msk [vmem:[#allocation12 + $0x2] sm:$0x1] %vm1424_vm14, %v1404_v30  ;;  %1427 = vst.msk [vmem:[#allocation12 + $0x4] sm:$0x1] %vm1424_vm14, %v1412_v31 }
 0x946   :  { %1429 = vst.msk [vmem:[#allocation12 + $0x8] sm:$0x1] %vm1424_vm14, %v1397_v29  ;;  %v1448_v36 = vrot.slane %v1434_v32, %v1373_v14  ;;  %v1449_v37 = vcombine.high %v1441_v33, %v1441_v33  ;;  %v1457_v38 = vrot.slane %v1441_v33, %v1373_v14 }
 0x947   :  { %v1415_v39 = vcombine.high %v1411_v9, %v1411_v9  ;;  %1428 = vst.msk [vmem:[#allocation12 + $0x6] sm:$0x1] %vm1424_vm14, %v1414_v35  ;;  %1430 = vst.msk [vmem:[#allocation12 + $0xa] sm:$0x1] %vm1424_vm14, %v1411_v9 }
 0x948   :  { %1431 = vst.msk [vmem:[#allocation12 + $0xc] sm:$0x1] %vm1424_vm14, %v1413_v34  ;;  %v1450_v40 = vcombine.high %v1448_v36, %v1448_v36  ;;  %v1464_v10 = vrot.slane %v1448_v36, %v1373_v14  ;;  %v1471_v41 = vrot.slane %v1449_v37, %v1373_v14  ;;  %v1479_v42 = vcombine.high %v1457_v38, %v1457_v38 }
 0x949   :  { %1491 = vst.msk [vmem:[#allocation12 + $0x1] sm:$0x1] %vm1424_vm14, %v1457_v38  ;;  %1432 = vst.msk [vmem:[#allocation12 + $0xe] sm:$0x1] %vm1424_vm14, %v1415_v39 }
 0x94a   :  { %v1478_v43 = vrot.slane %v1450_v40, %v1373_v14  ;;  %v1480_v44 = vcombine.high %v1464_v10, %v1464_v10  ;;  %v1481_v45 = vcombine.high %v1471_v41, %v1471_v41  ;;  %1492 = vst.msk [vmem:[#allocation12 + $0x3] sm:$0x1] %vm1424_vm14, %v1471_v41  ;;  %1493 = vst.msk [vmem:[#allocation12 + $0x5] sm:$0x1] %vm1424_vm14, %v1479_v42 }
 0x94b   :  { %1495 = vst.msk [vmem:[#allocation12 + $0x9] sm:$0x1] %vm1424_vm14, %v1464_v10 }
 0x94c   :  { %v1482_v46 = vcombine.high %v1478_v43, %v1478_v43  ;;  %1494 = vst.msk [vmem:[#allocation12 + $0x7] sm:$0x1] %vm1424_vm14, %v1481_v45  ;;  %1496 = vst.msk [vmem:[#allocation12 + $0xb] sm:$0x1] %vm1424_vm14, %v1478_v43 }
 0x94d   :  { %1497 = vst.msk [vmem:[#allocation12 + $0xd] sm:$0x1] %vm1424_vm14, %v1480_v44 }
 0x94e   :  { %1498 = vst.msk [vmem:[#allocation12 + $0xf] sm:$0x1] %vm1424_vm14, %v1482_v46 }
 0x94f   :  { %1893 = shalt.err (!%p1890_p1)
}
 0x950   :  { %1510 = dma.vmem_to_hbm [thread:$0]  %s1505_s6, 256, %s2258_s7, [#allocation5], %s1915_s15, %s1915_s15, %s1916_s16  }
 0x951   :  { %1908 = dma.done.wait [#allocation5], 256  }
 0x952   :  { %1909 = vsyncadd [#allocation5], 4294967040 }
 0x953   :  { %1514 = vsyncpa [#allocation4], 1 }
 0x954   :  { %1515 = vsyncpa [#allocation7], 1 }
 0x955   :  { %1516 = vsyncpa [#allocation10], 1 }
 0x956   :  { %1517 = vsyncpa [#allocation5], 1 }

// kernel: tpu_custom_call.1
= control target key start
LH: loop header
LB: loop body
LE: loop exit
PB: predicated region body
PF: predicated region fallthrough
CT: control target
= control target key end

     0   :  { %12 = vsyncpa [#allocation4], 0  ;;  %s2251_s0 = inlined_call_operand.hbm [shape: f32[8,2,32], index: 0, kind: input, shape index: {}]   ;;  %s2252_s1 = inlined_call_operand.hbm [shape: bf16[32,96], index: 1, kind: input, shape index: {}]   ;;  %s2253_s2 = inlined_call_operand.hbm [shape: f32[4,32], index: 2, kind: input, shape index: {}]   ;;  %s2254_s3 = inlined_call_operand.hbm [shape: bf16[32,32], index: 3, kind: input, shape index: {}]   ;;  %s2255_s4 = inlined_call_operand.vmem [shape: f32[1,32], index: 4, kind: input, shape index: {}]   ;;  %s2256_s5 = inlined_call_operand.hbm [shape: bf16[32,32], index: 5, kind: input, shape index: {}]   ;;  %s2257_s6 = inlined_call_operand.vmem [shape: f32[1,32], index: 6, kind: input, shape index: {}]   ;;  %s2258_s7 = inlined_call_operand.hbm [shape: f32[8,2,32], index: 7, kind: output, shape index: {}]  }
   0x1   :  { %13 = vsyncpa [#allocation7], 0 }
   0x2   :  { %14 = vsyncpa [#allocation10], 0 }
   0x3   :  { %15 = vsyncpa [#allocation5], 0  ;;  %s1910_s24 = smov [#allocation6]  }
   0x4   :  { %s33_s25 = sshll.u32 %s1910_s24, 4  ;;  %s34_s25 = int_to_ptr.vmem [resolvable:$true] %s33_s25 }
   0x5   :  { %s1790_s26 = scalar_lea.vmem %s34_s25, 256  ;;  %p1795_p1 = scmp.lt.s32.totalorder %s34_s25, %s34_s25 }
   0x6   :  { %p1791_p0 = scmp.ne.s32.totalorder %s34_s25, %s1790_s26  ;;  %p1796_p2 = scmp.lt.s32.totalorder %s1790_s26, %s1790_s26 }
   0x8   :  { %p1797_p3 = por %p1796_p2, %p1795_p1 }
   0xa   :  { %p1798_p4 = pnand %p1797_p3, %p1791_p0 }
   0xc   :  { %1801 = shalt.err (!%p1798_p4)
}
   0xd   :  { %s1911_s27 = smov 64   ;;  %s1912_s28 = smov 4  }
   0xe   :  { %39 = dma.hbm_to_vmem [thread:$0]  %s2252_s1, 256, %s34_s25, [#allocation7], %s1911_s27, %s1911_s27, %s1912_s28  }
   0xf   :  { %s1913_s8 = smov [#allocation9]   ;;  %s1914_s10 = smov [#allocation3]  }
  0x10   :  { %s55_s9 = sshll.u32 %s1913_s8, 4  ;;  %s21_s11 = sshll.u32 %s1914_s10, 4  ;;  %s56_s9 = int_to_ptr.vmem [resolvable:$true] %s55_s9  ;;  %s22_s11 = int_to_ptr.vmem [resolvable:$true] %s21_s11 }
  0x11   :  { %s1810_s12 = scalar_lea.vmem %s56_s9, 256  ;;  %p1815_p6 = scmp.lt.s32.totalorder %s56_s9, %s56_s9 }
  0x12   :  { %p1811_p5 = scmp.ne.s32.totalorder %s56_s9, %s1810_s12  ;;  %p1816_p7 = scmp.lt.s32.totalorder %s1810_s12, %s1810_s12 }
  0x14   :  { %p1817_p8 = por %p1816_p7, %p1815_p6 }
  0x16   :  { %p1818_p9 = pnand %p1817_p8, %p1811_p5 }
  0x18   :  { %1821 = shalt.err (!%p1818_p9)
}
  0x19   :  { %61 = dma.hbm_to_vmem [thread:$0]  %s2254_s3, 256, %s56_s9, [#allocation10], %s1911_s27, %s1911_s27, %s1912_s28  }
  0x1a   :  { %s1830_s1 = scalar_lea.vmem %s22_s11, 256  ;;  %p1835_p11 = scmp.lt.s32.totalorder %s22_s11, %s22_s11 }
  0x1b   :  { %p1831_p10 = scmp.ne.s32.totalorder %s22_s11, %s1830_s1  ;;  %p1836_p12 = scmp.lt.s32.totalorder %s1830_s1, %s1830_s1 }
  0x1d   :  { %p1837_p13 = por %p1836_p12, %p1835_p11 }
  0x1f   :  { %p1838_p0 = pnand %p1837_p13, %p1831_p10 }
  0x21   :  { %1841 = shalt.err (!%p1838_p0)
}
  0x22   :  { %s1915_s15 = smov 32   ;;  %s1916_s16 = smov 2  }
  0x23   :  { %27 = dma.hbm_to_vmem [thread:$0]  %s2251_s0, 256, %s22_s11, [#allocation4], %s1915_s15, %s1915_s15, %s1916_s16  }
  0x24   :  { %s1917_s19 = smov [#allocation8]   ;;  %s1918_s3 = smov [#allocation11]  }
  0x25   :  { %s46_s20 = sshll.u32 %s1917_s19, 4  ;;  %s69_s21 = sshll.u32 %s1918_s3, 4  ;;  %s47_s20 = int_to_ptr.vmem [resolvable:$true] %s46_s20  ;;  %s70_s21 = int_to_ptr.vmem [resolvable:$true] %s69_s21 }
  0x26   :  { %s1850_s22 = scalar_lea.vmem %s47_s20, 64  ;;  %p1855_p2 = scmp.lt.s32.totalorder %s47_s20, %s47_s20 }
  0x27   :  { %p1851_p1 = scmp.ne.s32.totalorder %s47_s20, %s1850_s22  ;;  %p1856_p3 = scmp.lt.s32.totalorder %s1850_s22, %s1850_s22 }
  0x29   :  { %p1857_p4 = por %p1856_p3, %p1855_p2 }
  0x2b   :  { %p1858_p5 = pnand %p1857_p4, %p1851_p1 }
  0x2d   :  { %1861 = shalt.err (!%p1858_p5)
}
  0x2e   :  { %49 = dma.hbm_to_vmem [thread:$0]  %s2253_s2, 64, %s47_s20, [#allocation7]  }
  0x2f   :  { %s1870_s25 = scalar_lea.vmem %s70_s21, 256  ;;  %p1875_p7 = scmp.lt.s32.totalorder %s70_s21, %s70_s21 }
  0x30   :  { %p1871_p6 = scmp.ne.s32.totalorder %s70_s21, %s1870_s25  ;;  %p1876_p8 = scmp.lt.s32.totalorder %s1870_s25, %s1870_s25 }
  0x32   :  { %p1877_p9 = por %p1876_p8, %p1875_p7 }
  0x34   :  { %p1878_p10 = pnand %p1877_p9, %p1871_p6 }
  0x36   :  { %1881 = shalt.err (!%p1878_p10)
}
  0x37   :  { %75 = dma.hbm_to_vmem [thread:$0]  %s2256_s5, 256, %s70_s21, [#allocation10], %s1911_s27, %s1911_s27, %s1912_s28  }
  0x38   :  { %1902 = dma.done.wait [#allocation4], 256  }
  0x39   :  { %1903 = vsyncadd [#allocation4], 4294967040 }
  0x3a   :  { %1904 = dma.done.wait [#allocation7], 320  }
  0x3b   :  { %1905 = vsyncadd [#allocation7], 4294966976 }
  0x3c   :  { %1906 = dma.done.wait [#allocation10], 512  }
  0x3d   :  { %1907 = vsyncadd [#allocation10], 4294966784  ;;  %vm123_vm0 = vcmask 1041409   ;;  %vm126_vm1 = vcmask 1042434   ;;  %vm129_vm2 = vcmask 1043459   ;;  %vm132_vm3 = vcmask 1044484  }
  0x3e   :  { %vm135_vm4 = vcmask 1045509   ;;  %vm138_vm5 = vcmask 1046534   ;;  %vm141_vm6 = vcmask 1047559   ;;  %v98_v0 = vld [vmem:[#allocation3] sm:$0x1]  ;;  %vm167_vm7 = vcmask 261120  }
  0x3f   :  { %v99_v1 = vld [vmem:[#allocation3 + $0x2] sm:$0x1]  ;;  %v100_v2 = vld [vmem:[#allocation3 + $0x4] sm:$0x1]  ;;  %v101_v3 = vld [vmem:[#allocation3 + $0x6] sm:$0x1] }
  0x40   :  { %v102_v4 = vld [vmem:[#allocation3 + $0x8] sm:$0x1]  ;;  %v103_v5 = vld [vmem:[#allocation3 + $0xa] sm:$0x1]  ;;  %v104_v6 = vld [vmem:[#allocation3 + $0xc] sm:$0x1] }
  0x41   :  { %v105_v7 = vld [vmem:[#allocation3 + $0xe] sm:$0x1]  ;;  %v122_v8 = vrot.slane %v99_v1, 7  ;;  %v125_v9 = vrot.slane %v100_v2, 6  ;;  %v128_v10 = vrot.slane %v101_v3, 5  ;;  %v131_v11 = vrot.slane %v102_v4, 4 }
  0x42   :  { %v134_v12 = vrot.slane %v103_v5, 3  ;;  %v106_v13 = vld [vmem:[#allocation3 + $0x1] sm:$0x1]  ;;  %v137_v15 = vrot.slane %v104_v6, 2  ;;  %v140_v16 = vrot.slane %v105_v7, 1  ;;  %v1736_v56 = vld [vmem:[#allocation6 + $0x8] sm:$0xff]  }
  0x43   :  { %v124_v14 = vsel %vm123_vm0, %v122_v8, %v98_v0  ;;  %v107_v17 = vld [vmem:[#allocation3 + $0x3] sm:$0x1]  ;;  %v108_v18 = vld [vmem:[#allocation3 + $0x5] sm:$0x1]  ;;  %v109_v20 = vld [vmem:[#allocation3 + $0x7] sm:$0x1] }
  0x44   :  { %v127_v19 = vsel %vm126_vm1, %v125_v9, %v124_v14  ;;  %v110_v21 = vld [vmem:[#allocation3 + $0x9] sm:$0x1]  ;;  %v111_v22 = vld [vmem:[#allocation3 + $0xb] sm:$0x1]  ;;  %v112_v24 = vld [vmem:[#allocation3 + $0xd] sm:$0x1] }
  0x45   :  { %v130_v23 = vsel %vm129_vm2, %v128_v10, %v127_v19  ;;  %v113_v25 = vld [vmem:[#allocation3 + $0xf] sm:$0x1]  ;;  %v152_v26 = vrot.slane %v107_v17, 7  ;;  %v154_v27 = vrot.slane %v108_v18, 6  ;;  %v156_v29 = vrot.slane %v109_v20, 5  ;;  %v1737_v58 = vld [vmem:[#allocation6] sm:$0xff]  }
  0x46   :  { %v133_v28 = vsel %vm132_vm3, %v131_v11, %v130_v23  ;;  %v158_v30 = vrot.slane %v110_v21, 4  ;;  %v160_v31 = vrot.slane %v111_v22, 3  ;;  %v162_v34 = vrot.slane %v112_v24, 2  ;;  %v1518_v3 = vld [vmem:[#allocation8] ss:$0 sm:$0xff]  ;;  %s1921_s2 = smov 88  }
  0x47   :  { %v136_v32 = vsel %vm135_vm4, %v134_v12, %v133_v28  ;;  %v153_v33 = vsel %vm123_vm0, %v152_v26, %v106_v13  ;;  %v164_v35 = vrot.slane %v113_v25, 1  ;;  %v1919_v57 = vmov 0.0   ;;  %v1519_v7 = vld [vmem:[#allocation8 + $0x1] ss:$0 sm:$0xff]  ;;  %s1922_s5 = smov 96   ;;  %s1923_s28 = smov 120  }
  0x48   :  { %v139_v36 = vsel %vm138_vm5, %v137_v15, %v136_v32  ;;  %v155_v37 = vsel %vm126_vm1, %v154_v27, %v153_v33  ;;  %1590 = vmatprep.subr.bf16.mxu0 %v1919_v57  ;;  %vm1920_vm8 = vmmov 0   ;;  %1598 = vmatprep.subr.bf16.mxu1 %v1919_v57  ;;  %s1924_s29 = smov 112   ;;  %s1925_s30 = smov 80   ;;  %vm272_vm9 = vcmask 64512  }
  0x49   :  { %v142_v38 = vsel %vm141_vm6, %v140_v16, %v139_v36  ;;  %v157_v39 = vsel %vm129_vm2, %v156_v29, %v155_v37  ;;  %1594 = vmatprep.mubr.msk.bf16.mxu0 %vm1920_vm8, %v1919_v57  ;;  %1591 = vmatpush3.bf16.msra.mxu0 %v1736_v56  ;;  %s1926_s8 = smov 104   ;;  %s1927_s9 = smov 72   ;;  %vm336_vm10 = vcmask 1043456   ;;  %vm495_vm11 = vcmask 130112  }
  0x4a   :  { %v168_v40 = vsel %vm167_vm7, %v142_v38, 0.0  ;;  %v159_v41 = vsel %vm132_vm3, %v158_v30, %v157_v39  ;;  %1592 = vmatprep.subr.bf16.mxu0 %v1919_v57  ;;  %1600 = vmatprep.mubr.msk.bf16.mxu1 %vm1920_vm8, %v1919_v57  ;;  %s1928_s10 = smov 56   ;;  %s1929_s11 = smov 48   ;;  %vm611_vm12 = vcmask 195712   ;;  %vm727_vm13 = vcmask 261312  }
  0x4b   :  { %169 = vadd.xlane.f32.xlu0 %v168_v40  ;;  %v161_v42 = vsel %vm135_vm4, %v160_v31, %v159_v41  ;;  %s1931_s12 = smov 8   ;;  %s1932_s13 = smov 16   ;;  %vm1424_vm14 = vcmask 253952  }
  0x4c   :  { %v163_v43 = vsel %vm138_vm5, %v162_v34, %v161_v42  ;;  %s1933_s14 = smov 24  }
  0x4d   :  { %v165_v44 = vsel %vm141_vm6, %v164_v35, %v163_v43  ;;  %1593 = vmatpush3.bf16.msra.mxu0 %v1737_v58 }
  0x4e   :  { %v171_v45 = vsel %vm167_vm7, %v165_v44, 0.0  ;;  %1604 = vmatprep.subr.bf16.mxu0 %v1919_v57 }
  0x4f   :  { %172 = vadd.xlane.f32.xlu0 %v171_v45 }
  0xd4   :  { %v170_v46 = vpop.xlane.xlu0 %169 }
  0xd5   :  { %v175_v47 = vmul.f32 0.03125, %v170_v46 }
  0xd7   :  { %v177_v48 = vsub.f32 %v142_v38, %v175_v47 }
  0xd8   :  { %v173_v49 = vpop.xlane.xlu0 %172 }
  0xd9   :  { %v176_v50 = vmul.f32 0.03125, %v173_v49  ;;  %v179_v51 = vmul.f32 %v177_v48, %v177_v48 }
  0xdb   :  { %v178_v52 = vsub.f32 %v165_v44, %v176_v50  ;;  %v181_v53 = vsel %vm167_vm7, %v179_v51, 0.0 }
  0xdc   :  { %182 = vadd.xlane.f32.xlu1 %v181_v53 }
  0xdd   :  { %v180_v54 = vmul.f32 %v178_v52, %v178_v52 }
  0xdf   :  { %v184_v55 = vsel %vm167_vm7, %v180_v54, 0.0 }
  0xe0   :  { %185 = vadd.xlane.f32.xlu1 %v184_v55 }
 0x165   :  { %v183_v59 = vpop.xlane.xlu1 %182 }
 0x166   :  { %v187_v60 = vmul.f32 0.03125, %v183_v59 }
 0x168   :  { %v189_v61 = vadd.f32 1e-05, %v187_v60 }
 0x169   :  { %v186_v62 = vpop.xlane.xlu1 %185 }
 0x16a   :  { %1742 = vrsqrt.f32 %v189_v61  ;;  %v188_v63 = vmul.f32 0.03125, %v186_v62 }
 0x16c   :  { %v190_v0 = vadd.f32 1e-05, %v188_v63 }
 0x16e   :  { %1744 = vrsqrt.f32 %v190_v0 }
 0x177   :  { %v1743_v1 = vpop.eup %1742 }
 0x178   :  { %v193_v2 = vmul.f32 %v1743_v1, %v177_v48 }
 0x17a   :  { %v199_v6 = vmul.f32 %v1518_v3, %v193_v2 }
 0x17b   :  { %v1745_v4 = vpop.eup %1744 }
 0x17c   :  { %v194_v5 = vmul.f32 %v1745_v4, %v178_v52  ;;  %v2029_v9 = vadd.f32 %v1519_v7, %v199_v6 }
 0x17e   :  { %v200_v8 = vmul.f32 %v1518_v3, %v194_v5 }
 0x180   :  { %v2031_v10 = vadd.f32 %v1519_v7, %v200_v8 }
 0x182   :  { %v207_v11 = vpack.c.bf16 %v2031_v10, %v2029_v9 }
 0x184   :  { %1595 = vmatmul.mubr.msk.bf16.vlgmr.msra.gmra.mxu0 %vm167_vm7, %v207_v11 }
 0x185   :  { %1606 = vmatprep.mubr.msk.bf16.mxu0 %vm1920_vm8, %v1919_v57 }
 0x244   :  { %v261_v12 = vpop.f32.mrf.mxu0 }
 0x246   :  { %v1596_v13 = vpop.f32.mrf.mxu0 }
 0x248   :  { %v264_v14 = vpop.f32.mrf.mxu0 }
 0x249   :  { %v2038_v15 = vpack.c.bf16 %v264_v14, %v261_v12 }
 0x24a   :  { %v1597_v16 = vpop.f32.mrf.mxu0 }
 0x24b   :  { %383 = vrot.lane.b32.xlu1 %v2038_v15, %s1921_s2  ;;  %270 = vrot.lane.b32.xlu0 %v2038_v15, %s1922_s5  ;;  %v2047_v17 = vrot.slane %v2038_v15, 4 }
 0x24f   :  { %381 = vrot.lane.b32.xlu1 %v2038_v15, %s1923_s28  ;;  %497 = vrot.lane.b32.xlu0 %v2038_v15, %s1924_s29 }
 0x253   :  { %499 = vrot.lane.b32.xlu1 %v2038_v15, %s1925_s30  ;;  %613 = vrot.lane.b32.xlu0 %v2038_v15, %s1926_s8 }
 0x257   :  { %615 = vrot.lane.b32.xlu1 %v2038_v15, %s1927_s9  ;;  %841 = vrot.lane.b32.xlu0 %v2047_v17, %s1921_s2 }
 0x25b   :  { %956 = vrot.lane.b32.xlu0 %v2047_v17, %s1925_s30  ;;  %730 = vrot.lane.b32.xlu1 %v2047_v17, %s1922_s5 }
 0x25f   :  { %1071 = vrot.lane.b32.xlu0 %v2047_v17, %s1927_s9  ;;  %839 = vrot.lane.b32.xlu1 %v2047_v17, %s1923_s28 }
 0x263   :  { %954 = vrot.lane.b32.xlu1 %v2047_v17, %s1924_s29 }
 0x267   :  { %1069 = vrot.lane.b32.xlu1 %v2047_v17, %s1926_s8 }
 0x2bd   :  { %v271_v18 = vpop.permute.xlu0 %270  ;;  %v384_v20 = vpop.permute.xlu1 %383 }
 0x2be   :  { %v277_v19 = vsel %vm272_vm9, %v271_v18, 0  ;;  %v389_v22 = vsel %vm272_vm9, %v384_v20, 0 }
 0x2bf   :  { %1599 = vmatpush3.bf16.xpose.msra.mxu1 %v277_v19 }
 0x2c0   :  { %1610 = vmatprep.subr.bf16.mxu1 %v1919_v57 }
 0x2c1   :  { %v382_v21 = vpop.permute.xlu1 %381  ;;  %v498_v26 = vpop.permute.xlu0 %497 }
 0x2c5   :  { %v500_v23 = vpop.permute.xlu1 %499  ;;  %v614_v29 = vpop.permute.xlu0 %613 }
 0x2c6   :  { %1601 = vmatmul.mubr.msk.bf16.vlgmr.msra.gmra.mxu1 %vm272_vm9, %v2038_v15  ;;  %v505_v24 = vsel %vm272_vm9, %v500_v23, 0 }
 0x2c7   :  { %1611 = vmatpush3.bf16.xpose.msra.mxu1 %v389_v22  ;;  %1612 = vmatprep.mubr.msk.bf16.mxu1 %vm1920_vm8, %v1919_v57 }
 0x2c8   :  { %1622 = vmatprep.subr.bf16.mxu1 %v1919_v57 }
 0x2c9   :  { %v616_v25 = vpop.permute.xlu1 %615  ;;  %v842_v31 = vpop.permute.xlu0 %841 }
 0x2ca   :  { %v621_v27 = vsel %vm272_vm9, %v616_v25, 0  ;;  %v847_v32 = vsel %vm272_vm9, %v842_v31, 0 }
 0x2cd   :  { %v731_v28 = vpop.permute.xlu1 %730  ;;  %v957_v33 = vpop.permute.xlu0 %956 }
 0x2ce   :  { %1613 = vmatmul.mubr.msk.bf16.vlgmr.msra.gmra.mxu1 %vm272_vm9, %v382_v21  ;;  %v736_v30 = vsel %vm272_vm9, %v731_v28, 0  ;;  %v962_v35 = vsel %vm272_vm9, %v957_v33, 0 }
 0x2cf   :  { %1623 = vmatpush3.bf16.xpose.msra.mxu1 %v505_v24  ;;  %1624 = vmatprep.mubr.msk.bf16.mxu1 %vm1920_vm8, %v1919_v57 }
 0x2d0   :  { %1634 = vmatprep.subr.bf16.mxu1 %v1919_v57 }
 0x2d1   :  { %v840_v34 = vpop.permute.xlu1 %839  ;;  %v1072_v36 = vpop.permute.xlu0 %1071 }
 0x2d2   :  { %v1077_v38 = vsel %vm272_vm9, %v1072_v36, 0 }
 0x2d5   :  { %v955_v37 = vpop.permute.xlu1 %954 }
 0x2d6   :  { %1625 = vmatmul.mubr.msk.bf16.vlgmr.msra.gmra.mxu1 %vm272_vm9, %v498_v26 }
 0x2d7   :  { %1635 = vmatpush3.bf16.xpose.msra.mxu1 %v621_v27  ;;  %1636 = vmatprep.mubr.msk.bf16.mxu1 %vm1920_vm8, %v1919_v57 }
 0x2d8   :  { %1646 = vmatprep.subr.bf16.mxu1 %v1919_v57 }
 0x2d9   :  { %v1070_v39 = vpop.permute.xlu1 %1069 }
 0x2de   :  { %1637 = vmatmul.mubr.msk.bf16.vlgmr.msra.gmra.mxu1 %vm272_vm9, %v614_v29 }
 0x2df   :  { %1647 = vmatpush3.bf16.xpose.msra.mxu1 %v736_v30  ;;  %1648 = vmatprep.mubr.msk.bf16.mxu1 %vm1920_vm8, %v1919_v57 }
 0x2e0   :  { %1658 = vmatprep.subr.bf16.mxu1 %v1919_v57 }
 0x2e6   :  { %1649 = vmatmul.mubr.msk.bf16.vlgmr.msra.gmra.mxu1 %vm272_vm9, %v2047_v17 }
 0x2e7   :  { %1659 = vmatpush3.bf16.xpose.msra.mxu1 %v847_v32  ;;  %1660 = vmatprep.mubr.msk.bf16.mxu1 %vm1920_vm8, %v1919_v57 }
 0x2e8   :  { %1670 = vmatprep.subr.bf16.mxu1 %v1919_v57 }
 0x2ee   :  { %1661 = vmatmul.mubr.msk.bf16.vlgmr.msra.gmra.mxu1 %vm272_vm9, %v840_v34 }
 0x2ef   :  { %1671 = vmatpush3.bf16.xpose.msra.mxu1 %v962_v35  ;;  %1672 = vmatprep.mubr.msk.bf16.mxu1 %vm1920_vm8, %v1919_v57 }
 0x2f0   :  { %1682 = vmatprep.subr.bf16.mxu1 %v1919_v57 }
 0x2f6   :  { %1673 = vmatmul.mubr.msk.bf16.vlgmr.msra.gmra.mxu1 %vm272_vm9, %v955_v37 }
 0x2f7   :  { %1683 = vmatpush3.bf16.xpose.msra.mxu1 %v1077_v38  ;;  %1684 = vmatprep.mubr.msk.bf16.mxu1 %vm1920_vm8, %v1919_v57 }
 0x2f8   :  { %1694 = vmatprep.subr.bf16.mxu1 %v1919_v57 }
 0x2fe   :  { %1685 = vmatmul.mubr.msk.bf16.vlgmr.msra.gmra.mxu1 %vm272_vm9, %v1070_v39 }
 0x2ff   :  { %1698 = vmatprep.mubr.msk.bf16.mxu1 %vm1920_vm8, %v1919_v57 }
 0x386   :  { %v313_v40 = vpop.f32.mrf.mxu1 }
 0x387   :  { %v319_v41 = vsel %vm272_vm9, %v313_v40, -inf }
 0x388   :  { %v1602_v42 = vpop.f32.mrf.mxu1  ;;  %320 = vmax.xlane.f32.xlu0 %v319_v41 }
 0x38a   :  { %v316_v43 = vpop.f32.mrf.mxu1 }
 0x38c   :  { %v1603_v44 = vpop.f32.mrf.mxu1 }
 0x38e   :  { %v425_v45 = vpop.f32.mrf.mxu1 }
 0x38f   :  { %v431_v46 = vsel %vm272_vm9, %v425_v45, -inf }
 0x390   :  { %v1614_v47 = vpop.f32.mrf.mxu1  ;;  %432 = vmax.xlane.f32.xlu1 %v431_v46 }
 0x392   :  { %v428_v48 = vpop.f32.mrf.mxu1 }
 0x394   :  { %v1615_v49 = vpop.f32.mrf.mxu1 }
 0x396   :  { %v2101_v50 = vpop.f32.mrf.mxu1 }
 0x397   :  { %v547_v7 = vsel %vm272_vm9, %v2101_v50, -inf }
 0x398   :  { %v1626_v51 = vpop.f32.mrf.mxu1 }
 0x39a   :  { %v544_v52 = vpop.f32.mrf.mxu1 }
 0x39c   :  { %v1627_v53 = vpop.f32.mrf.mxu1 }
 0x39e   :  { %v2103_v54 = vpop.f32.mrf.mxu1  ;;  %331 = vrot.lane.b32.xlu0 %v2038_v15, %s1911_s27 }
 0x39f   :  { %v663_v12 = vsel %vm272_vm9, %v2103_v54, -inf }
 0x3a0   :  { %v1638_v55 = vpop.f32.mrf.mxu1 }
 0x3a1   :  { %443 = vrot.lane.b32.xlu1 %v2038_v15, %s1928_s10 }
 0x3a2   :  { %v660_v56 = vpop.f32.mrf.mxu1 }
 0x3a4   :  { %v1639_v58 = vpop.f32.mrf.mxu1 }
 0x3a6   :  { %v772_v59 = vpop.f32.mrf.mxu1 }
 0x3a7   :  { %v778_v16 = vsel %vm272_vm9, %v772_v59, -inf }
 0x3a8   :  { %v1650_v60 = vpop.f32.mrf.mxu1 }
 0x3aa   :  { %v775_v61 = vpop.f32.mrf.mxu1 }
 0x3ac   :  { %v1651_v62 = vpop.f32.mrf.mxu1 }
 0x3ae   :  { %v883_v63 = vpop.f32.mrf.mxu1 }
 0x3af   :  { %v889_v18 = vsel %vm272_vm9, %v883_v63, -inf }
 0x3b0   :  { %v1662_v0 = vpop.f32.mrf.mxu1 }
 0x3b2   :  { %v886_v1 = vpop.f32.mrf.mxu1 }
 0x3b4   :  { %v1663_v2 = vpop.f32.mrf.mxu1 }
 0x3b6   :  { %v2109_v3 = vpop.f32.mrf.mxu1 }
 0x3b7   :  { %v1004_v19 = vsel %vm272_vm9, %v2109_v3, -inf }
 0x3b8   :  { %v1674_v4 = vpop.f32.mrf.mxu1 }
 0x3ba   :  { %v1001_v5 = vpop.f32.mrf.mxu1 }
 0x3bc   :  { %v1675_v6 = vpop.f32.mrf.mxu1 }
 0x3bd   :  { %548 = vmax.xlane.f32.xlu0 %v547_v7 }
 0x3be   :  { %v2113_v8 = vpop.f32.mrf.mxu1 }
 0x3bf   :  { %v1119_v20 = vsel %vm272_vm9, %v2113_v8, -inf }
 0x3c0   :  { %v1686_v11 = vpop.f32.mrf.mxu1 }
 0x3c1   :  { %664 = vmax.xlane.f32.xlu0 %v663_v12 }
 0x3c2   :  { %v1116_v13 = vpop.f32.mrf.mxu1 }
 0x3c4   :  { %v1687_v14 = vpop.f32.mrf.mxu1 }
 0x3c5   :  { %779 = vmax.xlane.f32.xlu0 %v778_v16  ;;  %890 = vmax.xlane.f32.xlu1 %v889_v18 }
 0x3c9   :  { %1005 = vmax.xlane.f32.xlu0 %v1004_v19  ;;  %1120 = vmax.xlane.f32.xlu1 %v1119_v20 }
 0x3df   :  { %559 = vrot.lane.b32.xlu0 %v2038_v15, %s1929_s11 }
 0x411   :  { %v321_v21 = vpop.xlane.xlu0 %320 }
 0x412   :  { %v322_v22 = vsub.f32 %v313_v40, %v321_v21 }
 0x414   :  { %v323_v23 = vmul.f32 1.442695, %v322_v22 }
 0x415   :  { %v332_v24 = vpop.permute.xlu0 %331 }
 0x416   :  { %1746 = vpow2.f32 %v323_v23  ;;  %v338_v25 = vsel %vm336_vm10, %v332_v24, 0 }
 0x417   :  { %1605 = vmatpush3.bf16.msra.mxu0 %v338_v25 }
 0x418   :  { %1616 = vmatprep.subr.bf16.mxu0 %v1919_v57 }
 0x419   :  { %v433_v26 = vpop.xlane.xlu1 %432 }
 0x41a   :  { %v434_v27 = vsub.f32 %v425_v45, %v433_v26 }
 0x41c   :  { %v435_v28 = vmul.f32 1.442695, %v434_v27 }
 0x41d   :  { %v444_v36 = vpop.permute.xlu1 %443 }
 0x41e   :  { %1748 = vpow2.f32 %v435_v28  ;;  %v449_v6 = vsel %vm336_vm10, %v444_v36, 0 }
 0x423   :  { %v1747_v29 = vpop.eup %1746 }
 0x424   :  { %v325_v30 = vsel %vm272_vm9, %v1747_v29, 0.0 }
 0x425   :  { %326 = vadd.xlane.f32.xlu0 %v325_v30 }
 0x42b   :  { %v2128_v31 = vpop.eup %1748 }
 0x42c   :  { %v437_v32 = vsel %vm272_vm9, %v2128_v31, 0.0 }
 0x42d   :  { %438 = vadd.xlane.f32.xlu1 %v437_v32 }
 0x43e   :  { %790 = vrot.lane.b32.xlu1 %v2047_v17, %s1911_s27  ;;  %s1930_s27 = smov 40  }
 0x446   :  { %v549_v33 = vpop.xlane.xlu0 %548 }
 0x447   :  { %v550_v34 = vsub.f32 %v2101_v50, %v549_v33 }
 0x449   :  { %v551_v35 = vmul.f32 1.442695, %v550_v34 }
 0x44a   :  { %v665_v37 = vpop.xlane.xlu0 %664 }
 0x44b   :  { %1750 = vpow2.f32 %v551_v35  ;;  %v666_v38 = vsub.f32 %v2103_v54, %v665_v37 }
 0x44d   :  { %v667_v39 = vmul.f32 1.442695, %v666_v38 }
 0x44e   :  { %v780_v40 = vpop.xlane.xlu0 %779  ;;  %v891_v41 = vpop.xlane.xlu1 %890 }
 0x44f   :  { %v781_v42 = vsub.f32 %v772_v59, %v780_v40  ;;  %1752 = vpow2.f32 %v667_v39  ;;  %v892_v44 = vsub.f32 %v883_v63, %v891_v41 }
 0x451   :  { %v782_v43 = vmul.f32 1.442695, %v781_v42  ;;  %v893_v45 = vmul.f32 1.442695, %v892_v44 }
 0x452   :  { %v1006_v54 = vpop.xlane.xlu0 %1005  ;;  %v1121_v58 = vpop.xlane.xlu1 %1120 }
 0x453   :  { %1754 = vpow2.f32 %v782_v43  ;;  %v1007_v55 = vsub.f32 %v2109_v3, %v1006_v54  ;;  %v1122_v59 = vsub.f32 %v2113_v8, %v1121_v58 }
 0x454   :  { %1756 = vpow2.f32 %v893_v45 }
 0x455   :  { %v1008_v56 = vmul.f32 1.442695, %v1007_v55  ;;  %v1123_v60 = vmul.f32 1.442695, %v1122_v59 }
 0x456   :  { %v560_v0 = vpop.permute.xlu0 %559 }
 0x457   :  { %1758 = vpow2.f32 %v1008_v56 }
 0x458   :  { %v1751_v46 = vpop.eup %1750  ;;  %1760 = vpow2.f32 %v1123_v60 }
 0x459   :  { %v553_v47 = vsel %vm272_vm9, %v1751_v46, 0.0 }
 0x45a   :  { %554 = vadd.xlane.f32.xlu0 %v553_v47 }
 0x45c   :  { %v2137_v48 = vpop.eup %1752 }
 0x45d   :  { %v669_v49 = vsel %vm272_vm9, %v2137_v48, 0.0 }
 0x460   :  { %v2141_v50 = vpop.eup %1754 }
 0x461   :  { %v784_v51 = vsel %vm272_vm9, %v2141_v50, 0.0  ;;  %v2145_v52 = vpop.eup %1756 }
 0x462   :  { %670 = vadd.xlane.f32.xlu1 %v669_v49  ;;  %v895_v53 = vsel %vm272_vm9, %v2145_v52, 0.0 }
 0x464   :  { %v2154_v61 = vpop.eup %1758 }
 0x465   :  { %v1010_v62 = vsel %vm272_vm9, %v2154_v61, 0.0 }
 0x466   :  { %785 = vadd.xlane.f32.xlu1 %v784_v51 }
 0x46a   :  { %896 = vadd.xlane.f32.xlu1 %v895_v53 }
 0x470   :  { %675 = vrot.lane.b32.xlu0 %v2038_v15, %s1930_s27  ;;  %v2158_v15 = vpop.eup %1760 }
 0x471   :  { %v1125_v63 = vsel %vm272_vm9, %v2158_v15, 0.0 }
 0x47b   :  { %901 = vrot.lane.b32.xlu1 %v2047_v17, %s1928_s10 }
 0x48f   :  { %1011 = vadd.xlane.f32.xlu0 %v1010_v62 }
 0x49f   :  { %1126 = vadd.xlane.f32.xlu1 %v1125_v63 }
 0x4a5   :  { %1016 = vrot.lane.b32.xlu0 %v2047_v17, %s1929_s11 }
 0x4ae   :  { %v327_v1 = vpop.xlane.xlu0 %326 }
 0x4af   :  { %1762 = vrcp.f32 %v327_v1 }
 0x4b0   :  { %1131 = vrot.lane.b32.xlu1 %v2047_v17, %s1930_s27  ;;  %v565_v17 = vsel %vm336_vm10, %v560_v0, 0 }
 0x4b6   :  { %v439_v2 = vpop.xlane.xlu1 %438 }
 0x4b7   :  { %1764 = vrcp.f32 %v439_v2 }
 0x4ba   :  { %v791_v13 = vpop.permute.xlu1 %790 }
 0x4bb   :  { %v796_v28 = vsel %vm336_vm10, %v791_v13, 0 }
 0x4bc   :  { %v1763_v3 = vpop.eup %1762 }
 0x4bd   :  { %v329_v4 = vmul.f32 %v1763_v3, %v1747_v29 }
 0x4bf   :  { %v330_v5 = vpack.c.bf16 %v329_v4, %v329_v4 }
 0x4c1   :  { %1607 = vmatmul.mubr.msk.bf16.vlgmr.msra.gmra.mxu0 %vm272_vm9, %v330_v5 }
 0x4c2   :  { %1617 = vmatpush3.bf16.msra.mxu0 %v449_v6  ;;  %1618 = vmatprep.mubr.msk.bf16.mxu0 %vm1920_vm8, %v1919_v57 }
 0x4c3   :  { %1628 = vmatprep.subr.bf16.mxu0 %v1919_v57 }
 0x4c4   :  { %v1765_v7 = vpop.eup %1764 }
 0x4c5   :  { %v441_v8 = vmul.f32 %v1765_v7, %v2128_v31 }
 0x4c7   :  { %v442_v11 = vpack.c.bf16 %v441_v8, %v441_v8 }
 0x4c9   :  { %1619 = vmatmul.mubr.msk.bf16.vlgmr.msra.gmra.mxu0 %vm272_vm9, %v442_v11 }
 0x4ca   :  { %1629 = vmatpush3.bf16.msra.mxu0 %v565_v17  ;;  %1630 = vmatprep.mubr.msk.bf16.mxu0 %vm1920_vm8, %v1919_v57 }
 0x4cb   :  { %1640 = vmatprep.subr.bf16.mxu0 %v1919_v57 }
 0x4e3   :  { %v555_v12 = vpop.xlane.xlu0 %554 }
 0x4e4   :  { %1766 = vrcp.f32 %v555_v12 }
 0x4e7   :  { %v676_v20 = vpop.permute.xlu0 %675 }
 0x4e8   :  { %v681_v23 = vsel %vm336_vm10, %v676_v20, 0 }
 0x4eb   :  { %v671_v14 = vpop.xlane.xlu1 %670 }
 0x4ec   :  { %1768 = vrcp.f32 %v671_v14 }
 0x4ef   :  { %v786_v16 = vpop.xlane.xlu1 %785 }
 0x4f0   :  { %1770 = vrcp.f32 %v786_v16 }
 0x4f1   :  { %v1767_v18 = vpop.eup %1766 }
 0x4f2   :  { %v557_v19 = vmul.f32 %v1767_v18, %v1751_v46 }
 0x4f3   :  { %v897_v22 = vpop.xlane.xlu1 %896 }
 0x4f4   :  { %v558_v21 = vpack.c.bf16 %v557_v19, %v557_v19  ;;  %1772 = vrcp.f32 %v897_v22 }
 0x4f6   :  { %1631 = vmatmul.mubr.msk.bf16.vlgmr.msra.gmra.mxu0 %vm272_vm9, %v558_v21 }
 0x4f7   :  { %1641 = vmatpush3.bf16.msra.mxu0 %v681_v23  ;;  %1642 = vmatprep.mubr.msk.bf16.mxu0 %vm1920_vm8, %v1919_v57  ;;  %v902_v30 = vpop.permute.xlu1 %901 }
 0x4f8   :  { %1652 = vmatprep.subr.bf16.mxu0 %v1919_v57  ;;  %v907_v33 = vsel %vm336_vm10, %v902_v30, 0 }
 0x4f9   :  { %v1769_v24 = vpop.eup %1768 }
 0x4fa   :  { %v673_v25 = vmul.f32 %v1769_v24, %v2137_v48 }
 0x4fc   :  { %v674_v26 = vpack.c.bf16 %v673_v25, %v673_v25 }
 0x4fd   :  { %v1771_v27 = vpop.eup %1770 }
 0x4fe   :  { %1643 = vmatmul.mubr.msk.bf16.vlgmr.msra.gmra.mxu0 %vm272_vm9, %v674_v26  ;;  %v788_v29 = vmul.f32 %v1771_v27, %v2141_v50 }
 0x4ff   :  { %1653 = vmatpush3.bf16.msra.mxu0 %v796_v28  ;;  %1654 = vmatprep.mubr.msk.bf16.mxu0 %vm1920_vm8, %v1919_v57 }
 0x500   :  { %1664 = vmatprep.subr.bf16.mxu0 %v1919_v57  ;;  %v789_v31 = vpack.c.bf16 %v788_v29, %v788_v29 }
 0x501   :  { %v1773_v32 = vpop.eup %1772 }
 0x502   :  { %v899_v34 = vmul.f32 %v1773_v32, %v2145_v52 }
 0x504   :  { %v900_v35 = vpack.c.bf16 %v899_v34, %v899_v34 }
 0x506   :  { %1655 = vmatmul.mubr.msk.bf16.vlgmr.msra.gmra.mxu0 %vm272_vm9, %v789_v31 }
 0x507   :  { %1665 = vmatpush3.bf16.msra.mxu0 %v907_v33  ;;  %1666 = vmatprep.mubr.msk.bf16.mxu0 %vm1920_vm8, %v1919_v57 }
 0x508   :  { %1676 = vmatprep.subr.bf16.mxu0 %v1919_v57 }
 0x50e   :  { %1667 = vmatmul.mubr.msk.bf16.vlgmr.msra.gmra.mxu0 %vm272_vm9, %v900_v35 }
 0x50f   :  { %1678 = vmatprep.mubr.msk.bf16.mxu0 %vm1920_vm8, %v1919_v57 }
 0x518   :  { %v1012_v36 = vpop.xlane.xlu0 %1011 }
 0x519   :  { %1774 = vrcp.f32 %v1012_v36 }
 0x51c   :  { %v1017_v37 = vpop.permute.xlu0 %1016 }
 0x51d   :  { %v1022_v38 = vsel %vm336_vm10, %v1017_v37, 0 }
 0x51e   :  { %1677 = vmatpush3.bf16.msra.mxu0 %v1022_v38 }
 0x51f   :  { %1688 = vmatprep.subr.bf16.mxu0 %v1919_v57 }
 0x526   :  { %v1775_v39 = vpop.eup %1774 }
 0x527   :  { %v1014_v40 = vmul.f32 %v1775_v39, %v2154_v61 }
 0x528   :  { %v1127_v41 = vpop.xlane.xlu1 %1126 }
 0x529   :  { %1776 = vrcp.f32 %v1127_v41  ;;  %v1015_v42 = vpack.c.bf16 %v1014_v40, %v1014_v40  ;;  %v1738_v40 = vld [vmem:[#allocation9 + $0x8] sm:$0xff]  }
 0x52a   :  { %1695 = vmatpush3.bf16.msra.mxu1 %v1738_v40 }
 0x52b   :  { %1679 = vmatmul.mubr.msk.bf16.vlgmr.msra.gmra.mxu0 %vm272_vm9, %v1015_v42  ;;  %1696 = vmatprep.subr.bf16.mxu1 %v1919_v57 }
 0x52c   :  { %v1132_v43 = vpop.permute.xlu1 %1131  ;;  %1690 = vmatprep.mubr.msk.bf16.mxu0 %vm1920_vm8, %v1919_v57 }
 0x52d   :  { %v1137_v44 = vsel %vm336_vm10, %v1132_v43, 0 }
 0x52e   :  { %1689 = vmatpush3.bf16.msra.mxu0 %v1137_v44 }
 0x52f   :  { %1702 = vmatprep.subr.bf16.mxu0 %v1919_v57 }
 0x536   :  { %v1777_v45 = vpop.eup %1776 }
 0x537   :  { %v1129_v46 = vmul.f32 %v1777_v45, %v2158_v15 }
 0x539   :  { %v1130_v47 = vpack.c.bf16 %v1129_v46, %v1129_v46 }
 0x53b   :  { %1691 = vmatmul.mubr.msk.bf16.vlgmr.msra.gmra.mxu0 %vm272_vm9, %v1130_v47 }
 0x53c   :  { %1706 = vmatprep.mubr.msk.bf16.mxu0 %vm1920_vm8, %v1919_v57 }
 0x581   :  { %v374_v48 = vpop.f32.mrf.mxu0 }
 0x582   :  { %380 = vst.msk [vmem:[#allocation2] sm:$0xff] %vm272_vm9, %v374_v48 }
 0x583   :  { %v1608_v49 = vpop.f32.mrf.mxu0 }
 0x584   :  { %v1539_v49 = vld [vmem:[#allocation8 + $0x2] ss:$0 sm:$0xff] }
 0x585   :  { %v377_v50 = vpop.f32.mrf.mxu0 }
 0x587   :  { %v1609_v51 = vpop.f32.mrf.mxu0 }
 0x589   :  { %v485_v52 = vpop.f32.mrf.mxu0 }
 0x58a   :  { %492 = vrot.lane.b32.xlu0 %v485_v52, %s1931_s12 }
 0x58b   :  { %v1620_v53 = vpop.f32.mrf.mxu0 }
 0x58c   :  { %v1540_v53 = vld [vmem:[#allocation8 + $0x3] ss:$0 sm:$0xff] }
 0x58d   :  { %v488_v54 = vpop.f32.mrf.mxu0 }
 0x58f   :  { %v1621_v55 = vpop.f32.mrf.mxu0 }
 0x5b6   :  { %v601_v56 = vpop.f32.mrf.mxu0 }
 0x5b7   :  { %608 = vrot.lane.b32.xlu0 %v601_v56, %s1932_s13 }
 0x5b8   :  { %v1632_v58 = vpop.f32.mrf.mxu0 }
 0x5ba   :  { %v604_v59 = vpop.f32.mrf.mxu0 }
 0x5bb   :  { %v1740_v59 = vld [vmem:[#allocation11 + $0x8] sm:$0xff]  }
 0x5bc   :  { %v1633_v60 = vpop.f32.mrf.mxu0  ;;  %1703 = vmatpush3.bf16.msra.mxu0 %v1740_v59 }
 0x5bd   :  { %1704 = vmatprep.subr.bf16.mxu0 %v1919_v57  ;;  %v1741_v60 = vld [vmem:[#allocation11] sm:$0xff]   ;;  %v1371_v57 = vlaneseq }
 0x5be   :  { %v717_v61 = vpop.f32.mrf.mxu0 }
 0x5bf   :  { %724 = vrot.lane.b32.xlu0 %v717_v61, %s1933_s14  ;;  %v1541_v61 = vld [vmem:[%s2255_s4] ss:$0 sm:$0xff]  ;;  %s1935_s4 = smov [#allocation12]  }
 0x5c0   :  { %v1644_v62 = vpop.f32.mrf.mxu0  ;;  %1705 = vmatpush3.bf16.msra.mxu0 %v1741_v60 }
 0x5c2   :  { %v720_v15 = vpop.f32.mrf.mxu0 }
 0x5c4   :  { %v1645_v63 = vpop.f32.mrf.mxu0 }
 0x5c6   :  { %v832_v0 = vpop.f32.mrf.mxu0 }
 0x5c7   :  { %838 = vst.msk [vmem:[#allocation2 + $0x8] sm:$0xff] %vm272_vm9, %v832_v0 }
 0x5c8   :  { %v1656_v1 = vpop.f32.mrf.mxu0 }
 0x5ca   :  { %v835_v2 = vpop.f32.mrf.mxu0 }
 0x5cc   :  { %v1657_v3 = vpop.f32.mrf.mxu0 }
 0x5ce   :  { %v943_v4 = vpop.f32.mrf.mxu0 }
 0x5cf   :  { %950 = vrot.lane.b32.xlu1 %v943_v4, %s1931_s12 }
 0x5d0   :  { %v1668_v5 = vpop.f32.mrf.mxu0 }
 0x5d2   :  { %v946_v6 = vpop.f32.mrf.mxu0 }
 0x5d3   :  { %v1934_v6 = vmov 1966171168  }
 0x5d4   :  { %v1669_v7 = vpop.f32.mrf.mxu0 }
 0x5d5   :  { %v1369_v7 = vunpack.c.l.s4 %v1934_v6 }
 0x5eb   :  { %v1058_v8 = vpop.f32.mrf.mxu0 }
 0x5ec   :  { %1065 = vrot.lane.b32.xlu1 %v1058_v8, %s1932_s13  ;;  %v1370_v8 = vunpack.c.0.s8 %v1369_v7 }
 0x5ed   :  { %v1680_v11 = vpop.f32.mrf.mxu0 }
 0x5ee   :  { %v1372_v11 = vshrl.u32 %v1371_v57, 7 }
 0x5ef   :  { %v1061_v17 = vpop.f32.mrf.mxu0 }
 0x5f0   :  { %v1545_v17 = vld [vmem:[%s2257_s6] ss:$0 sm:$0xff]  ;;  %s1504_s6 = sshll.u32 %s1935_s4, 4  ;;  %s1505_s6 = int_to_ptr.vmem [resolvable:$true] %s1504_s6 }
 0x5f1   :  { %v1681_v12 = vpop.f32.mrf.mxu0  ;;  %s1882_s20 = scalar_lea.vmem %s1505_s6, 256  ;;  %p1887_p12 = scmp.lt.s32.totalorder %s1505_s6, %s1505_s6 }
 0x5f2   :  { %p1883_p11 = scmp.ne.s32.totalorder %s1505_s6, %s1882_s20  ;;  %p1888_p13 = scmp.lt.s32.totalorder %s1882_s20, %s1882_s20 }
 0x5f4   :  { %p1889_p0 = por %p1888_p13, %p1887_p12 }
 0x5f6   :  { %p1890_p1 = pnand %p1889_p0, %p1883_p11 }
 0x5fb   :  { %v1173_v13 = vpop.f32.mrf.mxu0 }
 0x5fc   :  { %v493_v14 = vpop.permute.xlu0 %492  ;;  %1180 = vrot.lane.b32.xlu1 %v1173_v13, %s1933_s14 }
 0x5fd   :  { %496 = vst.msk [vmem:[#allocation2] sm:$0xff] %vm495_vm11, %v493_v14  ;;  %v1692_v16 = vpop.f32.mrf.mxu0  ;;  %v1373_v14 = vsub.s32 %v1370_v8, %v1372_v11 }
 0x5ff   :  { %v1176_v18 = vpop.f32.mrf.mxu0 }
 0x601   :  { %v1693_v19 = vpop.f32.mrf.mxu0 }
 0x629   :  { %v609_v20 = vpop.permute.xlu0 %608 }
 0x62a   :  { %612 = vst.msk [vmem:[#allocation2] sm:$0xff] %vm611_vm12, %v609_v20 }
 0x631   :  { %v725_v21 = vpop.permute.xlu0 %724 }
 0x632   :  { %728 = vst.msk [vmem:[#allocation2] sm:$0xff] %vm727_vm13, %v725_v21 }
 0x639   :  { %v1184_v22 = vld [vmem:[#allocation2] sm:$0xff] }
 0x63a   :  { %v1186_v23 = vadd.f32 %v1184_v22, %v2029_v9 }
 0x63c   :  { %v1188_v24 = vsel %vm167_vm7, %v1186_v23, 0.0 }
 0x63d   :  { %1189 = vadd.xlane.f32.xlu0 %v1188_v24 }
 0x641   :  { %v951_v25 = vpop.permute.xlu1 %950 }
 0x642   :  { %953 = vst.msk [vmem:[#allocation2 + $0x8] sm:$0xff] %vm495_vm11, %v951_v25 }
 0x65e   :  { %v1066_v26 = vpop.permute.xlu1 %1065 }
 0x65f   :  { %1068 = vst.msk [vmem:[#allocation2 + $0x8] sm:$0xff] %vm611_vm12, %v1066_v26 }
 0x66e   :  { %v1181_v27 = vpop.permute.xlu1 %1180 }
 0x66f   :  { %1183 = vst.msk [vmem:[#allocation2 + $0x8] sm:$0xff] %vm727_vm13, %v1181_v27 }
 0x676   :  { %v1185_v28 = vld [vmem:[#allocation2 + $0x8] sm:$0xff] }
 0x677   :  { %v1187_v29 = vadd.f32 %v1185_v28, %v2031_v10  ;;  %v1739_v10 = vld [vmem:[#allocation9] sm:$0xff]  }
 0x678   :  { %1697 = vmatpush3.bf16.msra.mxu1 %v1739_v10 }
 0x679   :  { %v1191_v30 = vsel %vm167_vm7, %v1187_v29, 0.0 }
 0x67a   :  { %1192 = vadd.xlane.f32.xlu1 %v1191_v30 }
 0x6c6   :  { %v1190_v31 = vpop.xlane.xlu0 %1189 }
 0x6c7   :  { %v1194_v32 = vmul.f32 0.03125, %v1190_v31 }
 0x6c9   :  { %v1196_v33 = vsub.f32 %v1186_v23, %v1194_v32 }
 0x6cb   :  { %v1198_v9 = vmul.f32 %v1196_v33, %v1196_v33 }
 0x6cd   :  { %v1200_v34 = vsel %vm167_vm7, %v1198_v9, 0.0 }
 0x6ce   :  { %1201 = vadd.xlane.f32.xlu0 %v1200_v34 }
 0x703   :  { %v1193_v35 = vpop.xlane.xlu1 %1192 }
 0x704   :  { %v1195_v36 = vmul.f32 0.03125, %v1193_v35 }
 0x706   :  { %v1197_v37 = vsub.f32 %v1187_v29, %v1195_v36 }
 0x708   :  { %v1199_v38 = vmul.f32 %v1197_v37, %v1197_v37 }
 0x70a   :  { %v1203_v39 = vsel %vm167_vm7, %v1199_v38, 0.0 }
 0x70b   :  { %1204 = vadd.xlane.f32.xlu0 %v1203_v39 }
 0x757   :  { %v1202_v41 = vpop.xlane.xlu0 %1201 }
 0x758   :  { %v1206_v42 = vmul.f32 0.03125, %v1202_v41 }
 0x75a   :  { %v1208_v43 = vadd.f32 1e-05, %v1206_v42 }
 0x75c   :  { %1778 = vrsqrt.f32 %v1208_v43 }
 0x769   :  { %v1779_v47 = vpop.eup %1778 }
 0x76a   :  { %v1212_v48 = vmul.f32 %v1779_v47, %v1196_v33 }
 0x76c   :  { %v1218_v52 = vmul.f32 %v1539_v49, %v1212_v48 }
 0x76e   :  { %v1224_v55 = vadd.f32 %v1540_v53, %v1218_v52 }
 0x794   :  { %v1205_v44 = vpop.xlane.xlu0 %1204 }
 0x795   :  { %v1207_v45 = vmul.f32 0.03125, %v1205_v44 }
 0x797   :  { %v1209_v46 = vadd.f32 1e-05, %v1207_v45 }
 0x799   :  { %1780 = vrsqrt.f32 %v1209_v46 }
 0x7a6   :  { %v1781_v50 = vpop.eup %1780 }
 0x7a7   :  { %v1213_v51 = vmul.f32 %v1781_v50, %v1197_v37 }
 0x7a9   :  { %v1219_v54 = vmul.f32 %v1539_v49, %v1213_v51 }
 0x7ab   :  { %v1225_v56 = vadd.f32 %v1540_v53, %v1219_v54 }
 0x7ad   :  { %v1226_v58 = vpack.c.bf16 %v1225_v56, %v1224_v55 }
 0x7af   :  { %1699 = vmatmul.mubr.msk.bf16.vlgmr.msra.gmra.mxu1 %vm167_vm7, %v1226_v58 }
 0x86f   :  { %v1287_v62 = vpop.f32.mrf.mxu1 }
 0x870   :  { %v1288_v63 = vadd.f32 %v1541_v61, %v1287_v62 }
 0x871   :  { %v1700_v15 = vpop.f32.mrf.mxu1 }
 0x872   :  { %v1294_v3 = vmax.f32 %v1288_v63, 0.0 }
 0x873   :  { %v1290_v0 = vpop.f32.mrf.mxu1 }
 0x874   :  { %v1291_v1 = vadd.f32 %v1541_v61, %v1290_v0 }
 0x875   :  { %v1701_v2 = vpop.f32.mrf.mxu1 }
 0x876   :  { %v1295_v4 = vmax.f32 %v1291_v1, 0.0 }
 0x878   :  { %v1296_v5 = vpack.c.bf16 %v1295_v4, %v1294_v3 }
 0x87a   :  { %1707 = vmatmul.mubr.msk.bf16.vlgmr.msra.gmra.mxu0 %vm167_vm7, %v1296_v5 }
 0x93a   :  { %v1357_v12 = vpop.f32.mrf.mxu0 }
 0x93b   :  { %v1358_v13 = vadd.f32 %v1545_v17, %v1357_v12 }
 0x93c   :  { %v1708_v16 = vpop.f32.mrf.mxu0 }
 0x93d   :  { %v1364_v18 = vadd.f32 %v1358_v13, %v1224_v55 }
 0x93e   :  { %v1360_v19 = vpop.f32.mrf.mxu0 }
 0x93f   :  { %v1367_v20 = vcombine.high %v1364_v18, %v1364_v18  ;;  %v1374_v21 = vrot.slane %v1364_v18, %v1373_v14  ;;  %v1361_v22 = vadd.f32 %v1545_v17, %v1360_v19 }
 0x940   :  { %v1709_v23 = vpop.f32.mrf.mxu0 }
 0x941   :  { %v1381_v24 = vrot.slane %v1367_v20, %v1373_v14  ;;  %v1382_v25 = vcombine.high %v1374_v21, %v1374_v21  ;;  %v1390_v26 = vrot.slane %v1374_v21, %v1373_v14  ;;  %v1365_v27 = vadd.f32 %v1361_v22, %v1225_v56 }
 0x943   :  { %v1383_v28 = vcombine.high %v1381_v24, %v1381_v24  ;;  %v1397_v29 = vrot.slane %v1381_v24, %v1373_v14  ;;  %v1404_v30 = vrot.slane %v1382_v25, %v1373_v14  ;;  %v1412_v31 = vcombine.high %v1390_v26, %v1390_v26  ;;  %1425 = vst.msk [vmem:[#allocation12] sm:$0x1] %vm1424_vm14, %v1390_v26 }
 0x944   :  { %v1434_v32 = vcombine.high %v1365_v27, %v1365_v27  ;;  %v1441_v33 = vrot.slane %v1365_v27, %v1373_v14 }
 0x945   :  { %v1411_v9 = vrot.slane %v1383_v28, %v1373_v14  ;;  %v1413_v34 = vcombine.high %v1397_v29, %v1397_v29  ;;  %v1414_v35 = vcombine.high %v1404_v30, %v1404_v30  ;;  %1426 = vst.msk [vmem:[#allocation12 + $0x2] sm:$0x1] %vm1424_vm14, %v1404_v30  ;;  %1427 = vst.msk [vmem:[#allocation12 + $0x4] sm:$0x1] %vm1424_vm14, %v1412_v31 }
 0x946   :  { %1429 = vst.msk [vmem:[#allocation12 + $0x8] sm:$0x1] %vm1424_vm14, %v1397_v29  ;;  %v1448_v36 = vrot.slane %v1434_v32, %v1373_v14  ;;  %v1449_v37 = vcombine.high %v1441_v33, %v1441_v33  ;;  %v1457_v38 = vrot.slane %v1441_v33, %v1373_v14 }
 0x947   :  { %v1415_v39 = vcombine.high %v1411_v9, %v1411_v9  ;;  %1428 = vst.msk [vmem:[#allocation12 + $0x6] sm:$0x1] %vm1424_vm14, %v1414_v35  ;;  %1430 = vst.msk [vmem:[#allocation12 + $0xa] sm:$0x1] %vm1424_vm14, %v1411_v9 }
 0x948   :  { %1431 = vst.msk [vmem:[#allocation12 + $0xc] sm:$0x1] %vm1424_vm14, %v1413_v34  ;;  %v1450_v40 = vcombine.high %v1448_v36, %v1448_v36  ;;  %v1464_v10 = vrot.slane %v1448_v36, %v1373_v14  ;;  %v1471_v41 = vrot.slane %v1449_v37, %v1373_v14  ;;  %v1479_v42 = vcombine.high %v1457_v38, %v1457_v38 }
 0x949   :  { %1491 = vst.msk [vmem:[#allocation12 + $0x1] sm:$0x1] %vm1424_vm14, %v1457_v38  ;;  %1432 = vst.msk [vmem:[#allocation12 + $0xe] sm:$0x1] %vm1424_vm14, %v1415_v39 }
 0x94a   :  { %v1478_v43 = vrot.slane %v1450_v40, %v1373_v14  ;;  %v1480_v44 = vcombine.high %v1464_v10, %v1464_v10  ;;  %v1481_v45 = vcombine.high %v1471_v41, %v1471_v41  ;;  %1492 = vst.msk [vmem:[#allocation12 + $0x3] sm:$0x1] %vm1424_vm14, %v1471_v41  ;;  %1493 = vst.msk [vmem:[#allocation12 + $0x5] sm:$0x1] %vm1424_vm14, %v1479_v42 }
 0x94b   :  { %1495 = vst.msk [vmem:[#allocation12 + $0x9] sm:$0x1] %vm1424_vm14, %v1464_v10 }
 0x94c   :  { %v1482_v46 = vcombine.high %v1478_v43, %v1478_v43  ;;  %1494 = vst.msk [vmem:[#allocation12 + $0x7] sm:$0x1] %vm1424_vm14, %v1481_v45  ;;  %1496 = vst.msk [vmem:[#allocation12 + $0xb] sm:$0x1] %vm1424_vm14, %v1478_v43 }
 0x94d   :  { %1497 = vst.msk [vmem:[#allocation12 + $0xd] sm:$0x1] %vm1424_vm14, %v1480_v44 }
 0x94e   :  { %1498 = vst.msk [vmem:[#allocation12 + $0xf] sm:$0x1] %vm1424_vm14, %v1482_v46 }
 0x94f   :  { %1893 = shalt.err (!%p1890_p1)
}
 0x950   :  { %1510 = dma.vmem_to_hbm [thread:$0]  %s1505_s6, 256, %s2258_s7, [#allocation5], %s1915_s15, %s1915_s15, %s1916_s16  }
 0x951   :  { %1908 = dma.done.wait [#allocation5], 256  }
 0x952   :  { %1909 = vsyncadd [#allocation5], 4294967040 }
 0x953   :  { %1514 = vsyncpa [#allocation4], 1 }
 0x954   :  { %1515 = vsyncpa [#allocation7], 1 }
 0x955   :  { %1516 = vsyncpa [#allocation10], 1 }
 0x956   :  { %1517 = vsyncpa [#allocation5], 1 }

</bundles_post_ra>
